<compile_context>
chip_gen: v7x
topology: tpu7x:2x2x1
jax: 0.10.0
libtpu: 0.0.40
codegen_flags: <defaults>
</compile_context>

<pallas_src>
import math

import jax
import jax.numpy as jnp
from jax import lax
from jax.experimental import pallas as pl
from jax.experimental.pallas import tpu as pltpu

_VMEM = pl.BlockSpec(memory_space=pltpu.MemorySpace.VMEM)


def _round_up(x, m):
    return (x + m - 1) // m * m


# ----------------------------------------------------------------------------
# Fused kernel
# ----------------------------------------------------------------------------
def _make_fused_kernel(num_layers, H, T1, B1p, T2):
    """Build the fused kernel; all shapes are static (baked in).

    B1p is the sublane-padded batch of lstm1; lstm2's batch is num_layers*B1p.
    """
    B2p = num_layers * B1p
    G = 4 * H

    def lstm_stack(x_tm, slab_ref, B, T):
        """x_tm: (T, B) time-major scalar sequence (input_size == 1).
        slab_ref: (L, 2H+8, 4H) packed [W_ih^T ; W_hh^T ; b_ih+b_hh ; pad].
        Returns (L*B, H): last hidden of every layer, register-resident."""
        # Hoisted gate-lane constants: tanh(x) = 2*sigmoid(2x) - 1 on g-gate lanes,
        # plain sigmoid elsewhere -> ONE EUP pass over the (B, 4H) gate vreg per step.
        lane = lax.broadcasted_iota(jnp.int32, (B, G), 1)
        g_mask = (lane >= 2 * H) & (lane < 3 * H)
        g_scale = jnp.where(g_mask, 2.0, 1.0).astype(jnp.float32)
        g_bias = jnp.where(g_mask, -1.0, 0.0).astype(jnp.float32)

        def run_layer(xproj, whh):
            """xproj: (T*B, 4H) precomputed input contribution (time-major).
            Only h @ W_hh, the activation and the state update live in the loop."""
            h = jnp.zeros((B, H), jnp.float32)
            c = jnp.zeros((B, H), jnp.float32)
            hs = []
            for t in range(T):                           # fully unrolled (T static)
                gates = xproj[t * B:(t + 1) * B, :] + jnp.dot(
                    h, whh, preferred_element_type=jnp.float32)
                sig = jax.nn.sigmoid(gates * g_scale)    # single transcendental pass
                act = sig * g_scale + g_bias             # sigmoid i/f/o, tanh on g
                i_g = act[:, 0 * H:1 * H]
                f_g = act[:, 1 * H:2 * H]
                g_g = act[:, 2 * H:3 * H]
                o_g = act[:, 3 * H:4 * H]
                c = f_g * c + i_g * g_g
                h = o_g * jnp.tanh(c)
                hs.append(h)
            return h, hs

        h_last = []
        prev_hs = None
        for l in range(num_layers):
            slab_l = slab_ref[l]                         # (2H+8, 4H) value
            whh_l = slab_l[H:2 * H, :]                   # (H, 4H)
            b_l = slab_l[2 * H:2 * H + 1, :]             # (1, 4H)
            if l == 0:
                # input_size == 1 -> one broadcast multiply for ALL timesteps (VPU),
                # no MXU and no per-step lane slicing.
                wih0 = slab_l[0:1, :]                    # (1, 4H)
                xproj = (x_tm[:, :, None] * wih0[None, :, :]
                         + b_l[None, :, :]).reshape(T * B, G)
            else:
                # hoisted input projection: one (T*B, H) @ (H, 4H) matmul per layer
                seq = jnp.concatenate(prev_hs, axis=0)   # (T*B, H), time-major
                wih_l = slab_l[0:H, :]
                xproj = jnp.dot(seq, wih_l,
                                preferred_element_type=jnp.float32) + b_l
            h, prev_hs = run_layer(xproj, whh_l)
            h_last.append(h)
        return jnp.concatenate(h_last, axis=0)           # (L*B, H)

    def kernel(x_ref, lstm1_ref, lstm2_ref, fc_ref, out_ref):
        x_tm1 = x_ref[...]                               # (T1, B1p), time-major

        # lstm1 -> fc1 (fc1 output never leaves VMEM / vregs)
        h_out1 = lstm_stack(x_tm1, lstm1_ref, B1p, T1)   # (L*B1p, H)
        fc1_plane = fc_ref[0]                            # (H+8, fc_lanes)
        out1 = jnp.dot(h_out1, fc1_plane[0:H, :],
                       preferred_element_type=jnp.float32) + fc1_plane[H:H + 1, :]
        # out1: (B2p, fc_lanes); columns >= T2 are zero (lane-padded weights).
        # PyTorch's reshape(..., 1) turns fc1's output into a new batch_first
        # sequence with input_size == 1; lay it out time-major once.
        x_tm2 = jnp.transpose(out1)[0:T2, :]             # (T2, B2p)

        # lstm2 -> fc2 (lane-dense output slab; wrapper slices valid lanes/rows)
        h_out2 = lstm_stack(x_tm2, lstm2_ref, B2p, T2)   # (L*B2p, H)
        fc2_plane = fc_ref[1]
        out_ref[...] = (jnp.dot(h_out2, fc2_plane[0:H, :],
                                preferred_element_type=jnp.float32)
                        + fc2_plane[H:H + 1, :]).astype(out_ref.dtype)

    return kernel


# ----------------------------------------------------------------------------
# Wrapper
# ----------------------------------------------------------------------------
def lstm_model_forward(x, params, hidden_size):
    """x: (B, T, 1) batch_first; params in PyTorch layout. Returns (L*L*B, C)."""
    B1, T1, In = x.shape
    if In != 1:
        # The PyTorch forward itself only type-checks for input_size == 1
        # (out1.reshape(..., 1) is fed back into an LSTM built with input_size).
        raise ValueError("lstm_model_forward requires input_size == 1")
    H = hidden_size
    num_layers = len(params["lstm1"])
    T2 = params["fc1_w"].shape[0]            # fc1 out features -> lstm2 seq length
    C = params["fc2_w"].shape[0]

    B1p = _round_up(max(B1, 1), 8)           # pad batch to full 8-sublane tiles
    B2p = num_layers * B1p
    fc_lanes = _round_up(max(T2, C, 128), 128)   # lane-dense FC weights & output

    # ---- pack weights into 3 contiguous f32 slabs (few large DMAs, not ~21 tiny) ----
    def pack_lstm(layers):
        rows = 2 * H + 8
        slab = jnp.zeros((num_layers, rows, 4 * H), jnp.float32)
        for l, (w_ih, w_hh, b_ih, b_hh) in enumerate(layers):
            in_dim = w_ih.shape[1]
            slab = slab.at[l, 0:in_dim, :].set(jnp.transpose(w_ih).astype(jnp.float32))
            slab = slab.at[l, H:2 * H, :].set(jnp.transpose(w_hh).astype(jnp.float32))
            slab = slab.at[l, 2 * H, :].set((b_ih + b_hh).astype(jnp.float32))
        return slab

    fc_slab = jnp.zeros((2, H + 8, fc_lanes), jnp.float32)
    fc_slab = fc_slab.at[0, 0:H, 0:T2].set(jnp.transpose(params["fc1_w"]).astype(jnp.float32))
    fc_slab = fc_slab.at[0, H, 0:T2].set(params["fc1_b"].astype(jnp.float32))
    fc_slab = fc_slab.at[1, 0:H, 0:C].set(jnp.transpose(params["fc2_w"]).astype(jnp.float32))
    fc_slab = fc_slab.at[1, H, 0:C].set(params["fc2_b"].astype(jnp.float32))

    # zero-pad the batch and lay the scalar input sequence out time-major (T1, B1p)
    x_bt = x[..., 0].astype(jnp.float32)                      # (B1, T1)
    x_bt = jnp.pad(x_bt, ((0, B1p - B1), (0, 0)))
    x_tm = jnp.transpose(x_bt)                                 # (T1, B1p)

    kernel = _make_fused_kernel(num_layers, H, T1, B1p, T2)
    out_pad = pl.pallas_call(
        kernel,
        out_shape=jax.ShapeDtypeStruct((num_layers * B2p, fc_lanes), jnp.float32),
        in_specs=[_VMEM] * 4,
        out_specs=_VMEM,
    )(x_tm, pack_lstm(params["lstm1"]), pack_lstm(params["lstm2"]), fc_slab)

    # strip batch padding + lane padding outside the kernel
    out = out_pad.reshape(num_layers, num_layers, B1p, fc_lanes)
    return out[:, :, :B1, :C].reshape(num_layers * num_layers * B1, C)


# ----------------------------------------------------------------------------
# Pure-JAX reference (for correctness checking)
# ----------------------------------------------------------------------------
def _ref_lstm_layer(x_tm, w_ih, w_hh, b_ih, b_hh):
    T, B, _ = x_tm.shape
    H = w_hh.shape[1]

    def cell(carry, x_t):
        h, c = carry
        gates = x_t @ w_ih.T + h @ w_hh.T + b_ih + b_hh
        i, f, g, o = jnp.split(gates, 4, axis=-1)
        i, f, o = jax.nn.sigmoid(i), jax.nn.sigmoid(f), jax.nn.sigmoid(o)
        g = jnp.tanh(g)
        c = f * c + i * g
        h = o * jnp.tanh(c)
        return (h, c), h

    init = (jnp.zeros((B, H), jnp.float32), jnp.zeros((B, H), jnp.float32))
    _, ys = lax.scan(cell, init, x_tm.astype(jnp.float32))
    return ys


def _ref_multilayer(x_bsi, layer_params):
    inp = jnp.transpose(x_bsi, (1, 0, 2))
    h_outs = []
    for (w_ih, w_hh, b_ih, b_hh) in layer_params:
        y = _ref_lstm_layer(inp, w_ih, w_hh, b_ih, b_hh)
        h_outs.append(y[-1])
        inp = y
    return jnp.stack(h_outs, axis=0)


def _ref_forward(x, params, hidden_size):
    h1 = _ref_multilayer(x, params["lstm1"]).reshape(-1, hidden_size)
    o1 = h1 @ params["fc1_w"].T + params["fc1_b"]
    o1 = o1.reshape(o1.shape[0], o1.shape[1], 1)
    h2 = _ref_multilayer(o1, params["lstm2"]).reshape(-1, hidden_size)
    return h2 @ params["fc2_w"].T + params["fc2_b"]


# ----------------------------------------------------------------------------
# Parameter init (PyTorch shapes, uniform(-1/sqrt(H), 1/sqrt(H)))
# ----------------------------------------------------------------------------
def init_params(key, num_classes, input_size, hidden_size, num_layers):
    k = 1.0 / math.sqrt(hidden_size)

    def uni(key, shape):
        return jax.random.uniform(key, shape, jnp.float32, minval=-k, maxval=k)

    def make_lstm(key):
        layers = []
        for layer in range(num_layers):
            in_dim = input_size if layer == 0 else hidden_size
            key, k1, k2, k3, k4 = jax.random.split(key, 5)
            layers.append((
                uni(k1, (4 * hidden_size, in_dim)),       # weight_ih_l{layer}
                uni(k2, (4 * hidden_size, hidden_size)),  # weight_hh_l{layer}
                uni(k3, (4 * hidden_size,)),              # bias_ih_l{layer}
                uni(k4, (4 * hidden_size,)),              # bias_hh_l{layer}
            ))
        return key, layers

    key, lstm1 = make_lstm(key)
    key, lstm2 = make_lstm(key)
    key, kf1w, kf1b, kf2w, kf2b = jax.random.split(key, 5)
    return {
        "lstm1": lstm1,
        "lstm2": lstm2,
        "fc1_w": uni(kf1w, (10, hidden_size)),
        "fc1_b": uni(kf1b, (10,)),
        "fc2_w": uni(kf2w, (num_classes, hidden_size)),
        "fc2_b": uni(kf2b, (num_classes,)),
    }


# ----------------------------------------------------------------------------
# Main
# ----------------------------------------------------------------------------
if __name__ == "__main__":
    num_classes = 5
    input_size = 1        # required by the module's out1.reshape(..., 1) -> lstm2
    hidden_size = 32
    num_layers = 2
    seq_length = 8
    batch = 2

    key = jax.random.PRNGKey(0)
    key, kx, kp = jax.random.split(key, 3)
    x = jax.random.normal(kx, (batch, seq_length, input_size), jnp.float32)
    params = init_params(kp, num_classes, input_size, hidden_size, num_layers)

    forward = jax.jit(lstm_model_forward, static_argnums=2)
    out = jax.block_until_ready(forward(x, params, hidden_size))

    expected_rows = num_layers * num_layers * batch
    assert out.shape == (expected_rows, num_classes), out.shape

    ref = jax.block_until_ready(_ref_forward(x, params, hidden_size))
    assert jnp.allclose(out, ref, atol=1e-4, rtol=1e-4), (
        "mismatch vs pure-JAX reference: "
        f"max abs err {jnp.max(jnp.abs(out - ref))}"
    )

    print("KERNEL_OK")
</pallas_src>

<mosaic_0001>
module attributes {stable_mosaic.version = 11 : i64} {
  func.func @kernel(%arg0: memref<8x8xf32, #tpu.memory_space<vmem>>, %arg1: memref<2x72x128xf32, #tpu.memory_space<vmem>>, %arg2: memref<2x72x128xf32, #tpu.memory_space<vmem>>, %arg3: memref<2x40x128xf32, #tpu.memory_space<vmem>>, %arg4: memref<32x128xf32, #tpu.memory_space<vmem>>) attributes {dimension_semantics = [], scalar_prefetch = 0 : i64, scratch_operands = 0 : i64, tpu.core_type = #tpu.core_type<tc>} {
    %c0 = arith.constant 0 : index
    %c0_0 = arith.constant 0 : index
    %0 = vector.load %arg0[%c0, %c0_0] : memref<8x8xf32, #tpu.memory_space<vmem>>, vector<8x8xf32>
    %1 = tpu.iota {dimensions = array<i32: 1>} : vector<8x128xi32>
    %c64_i32 = arith.constant 64 : i32
    %2 = vector.broadcast %c64_i32 : i32 to vector<8x128xi32>
    %3 = arith.cmpi sge, %1, %2 : vector<8x128xi32>
    %c96_i32 = arith.constant 96 : i32
    %4 = vector.broadcast %c96_i32 : i32 to vector<8x128xi32>
    %5 = arith.cmpi slt, %1, %4 : vector<8x128xi32>
    %6 = arith.andi %3, %5 : vector<8x128xi1>
    %cst = arith.constant 2.000000e+00 : f32
    %cst_1 = arith.constant 1.000000e+00 : f32
    %7 = vector.broadcast %cst : f32 to vector<8x128xf32>
    %8 = vector.broadcast %cst_1 : f32 to vector<8x128xf32>
    %9 = arith.select %6, %7, %8 : vector<8x128xi1>, vector<8x128xf32>
    %cst_2 = arith.constant -1.000000e+00 : f32
    %cst_3 = arith.constant 0.000000e+00 : f32
    %10 = vector.broadcast %cst_2 : f32 to vector<8x128xf32>
    %11 = vector.broadcast %cst_3 : f32 to vector<8x128xf32>
    %12 = arith.select %6, %10, %11 : vector<8x128xi1>, vector<8x128xf32>
    %c0_4 = arith.constant 0 : index
    %c0_5 = arith.constant 0 : index
    %c0_6 = arith.constant 0 : index
    %13 = vector.load %arg1[%c0_4, %c0_5, %c0_6] : memref<2x72x128xf32, #tpu.memory_space<vmem>>, vector<1x72x128xf32>
    %14 = vector.shape_cast %13 : vector<1x72x128xf32> to vector<72x128xf32>
    %15 = vector.extract_strided_slice %14 {offsets = [32, 0], sizes = [32, 128], strides = [1, 1]} : vector<72x128xf32> to vector<32x128xf32>
    %16 = vector.extract_strided_slice %14 {offsets = [64, 0], sizes = [1, 128], strides = [1, 1]} : vector<72x128xf32> to vector<1x128xf32>
    %17 = vector.extract_strided_slice %14 {offsets = [0, 0], sizes = [1, 128], strides = [1, 1]} : vector<72x128xf32> to vector<1x128xf32>
    %18 = vector.shape_cast %0 : vector<8x8xf32> to vector<8x8x1xf32>
    %19 = vector.shape_cast %17 : vector<1x128xf32> to vector<1x1x128xf32>
    %20 = vector.broadcast %18 : vector<8x8x1xf32> to vector<8x8x128xf32>
    %21 = vector.broadcast %19 : vector<1x1x128xf32> to vector<8x8x128xf32>
    %22 = arith.mulf %20, %21 : vector<8x8x128xf32>
    %23 = vector.shape_cast %16 : vector<1x128xf32> to vector<1x1x128xf32>
    %24 = vector.broadcast %23 : vector<1x1x128xf32> to vector<8x8x128xf32>
    %25 = arith.addf %22, %24 : vector<8x8x128xf32>
    %26 = vector.shape_cast %25 : vector<8x8x128xf32> to vector<64x128xf32>
    %cst_7 = arith.constant 0.000000e+00 : f32
    %27 = vector.broadcast %cst_7 : f32 to vector<8x32xf32>
    %cst_8 = arith.constant 0.000000e+00 : f32
    %28 = vector.broadcast %cst_8 : f32 to vector<8x32xf32>
    %29 = vector.extract_strided_slice %26 {offsets = [0, 0], sizes = [8, 128], strides = [1, 1]} : vector<64x128xf32> to vector<8x128xf32>
    %cst_9 = arith.constant dense<0.000000e+00> : vector<8x128xf32>
    %30 = tpu.matmul %27, %15, %cst_9 {dimension_numbers = #tpu.dot_dimension_numbers<[1], [0], [0], [1], [0, 0, 1, 1], [], []>} : vector<8x32xf32>, vector<32x128xf32>, vector<8x128xf32> -> vector<8x128xf32>
    %31 = arith.addf %29, %30 : vector<8x128xf32>
    %32 = arith.mulf %31, %9 : vector<8x128xf32>
    %33 = arith.negf %32 : vector<8x128xf32>
    %34 = math.exp %33 : vector<8x128xf32>
    %cst_10 = arith.constant 1.000000e+00 : f32
    %35 = vector.broadcast %cst_10 : f32 to vector<8x128xf32>
    %36 = arith.addf %35, %34 : vector<8x128xf32>
    %37 = arith.divf %35, %36 : vector<8x128xf32>
    %38 = arith.mulf %37, %9 : vector<8x128xf32>
    %39 = arith.addf %38, %12 : vector<8x128xf32>
    %40 = vector.extract_strided_slice %39 {offsets = [0, 0], sizes = [8, 32], strides = [1, 1]} : vector<8x128xf32> to vector<8x32xf32>
    %41 = vector.extract_strided_slice %39 {offsets = [0, 32], sizes = [8, 32], strides = [1, 1]} : vector<8x128xf32> to vector<8x32xf32>
    %42 = vector.extract_strided_slice %39 {offsets = [0, 64], sizes = [8, 32], strides = [1, 1]} : vector<8x128xf32> to vector<8x32xf32>
    %43 = vector.extract_strided_slice %39 {offsets = [0, 96], sizes = [8, 32], strides = [1, 1]} : vector<8x128xf32> to vector<8x32xf32>
    %44 = arith.mulf %41, %28 : vector<8x32xf32>
    %45 = arith.mulf %40, %42 : vector<8x32xf32>
    %46 = arith.addf %44, %45 : vector<8x32xf32>
    %47 = math.tanh %46 : vector<8x32xf32>
    %48 = arith.mulf %43, %47 : vector<8x32xf32>
    %49 = vector.extract_strided_slice %26 {offsets = [8, 0], sizes = [8, 128], strides = [1, 1]} : vector<64x128xf32> to vector<8x128xf32>
    %cst_11 = arith.constant dense<0.000000e+00> : vector<8x128xf32>
    %50 = tpu.matmul %48, %15, %cst_11 {dimension_numbers = #tpu.dot_dimension_numbers<[1], [0], [0], [1], [0, 0, 1, 1], [], []>} : vector<8x32xf32>, vector<32x128xf32>, vector<8x128xf32> -> vector<8x128xf32>
    %51 = arith.addf %49, %50 : vector<8x128xf32>
    %52 = arith.mulf %51, %9 : vector<8x128xf32>
    %53 = arith.negf %52 : vector<8x128xf32>
    %54 = math.exp %53 : vector<8x128xf32>
    %cst_12 = arith.constant 1.000000e+00 : f32
    %55 = vector.broadcast %cst_12 : f32 to vector<8x128xf32>
    %56 = arith.addf %55, %54 : vector<8x128xf32>
    %57 = arith.divf %55, %56 : vector<8x128xf32>
    %58 = arith.mulf %57, %9 : vector<8x128xf32>
    %59 = arith.addf %58, %12 : vector<8x128xf32>
    %60 = vector.extract_strided_slice %59 {offsets = [0, 0], sizes = [8, 32], strides = [1, 1]} : vector<8x128xf32> to vector<8x32xf32>
    %61 = vector.extract_strided_slice %59 {offsets = [0, 32], sizes = [8, 32], strides = [1, 1]} : vector<8x128xf32> to vector<8x32xf32>
    %62 = vector.extract_strided_slice %59 {offsets = [0, 64], sizes = [8, 32], strides = [1, 1]} : vector<8x128xf32> to vector<8x32xf32>
    %63 = vector.extract_strided_slice %59 {offsets = [0, 96], sizes = [8, 32], strides = [1, 1]} : vector<8x128xf32> to vector<8x32xf32>
    %64 = arith.mulf %61, %46 : vector<8x32xf32>
    %65 = arith.mulf %60, %62 : vector<8x32xf32>
    %66 = arith.addf %64, %65 : vector<8x32xf32>
    %67 = math.tanh %66 : vector<8x32xf32>
    %68 = arith.mulf %63, %67 : vector<8x32xf32>
    %69 = vector.extract_strided_slice %26 {offsets = [16, 0], sizes = [8, 128], strides = [1, 1]} : vector<64x128xf32> to vector<8x128xf32>
    %cst_13 = arith.constant dense<0.000000e+00> : vector<8x128xf32>
    %70 = tpu.matmul %68, %15, %cst_13 {dimension_numbers = #tpu.dot_dimension_numbers<[1], [0], [0], [1], [0, 0, 1, 1], [], []>} : vector<8x32xf32>, vector<32x128xf32>, vector<8x128xf32> -> vector<8x128xf32>
    %71 = arith.addf %69, %70 : vector<8x128xf32>
    %72 = arith.mulf %71, %9 : vector<8x128xf32>
    %73 = arith.negf %72 : vector<8x128xf32>
    %74 = math.exp %73 : vector<8x128xf32>
    %cst_14 = arith.constant 1.000000e+00 : f32
    %75 = vector.broadcast %cst_14 : f32 to vector<8x128xf32>
    %76 = arith.addf %75, %74 : vector<8x128xf32>
    %77 = arith.divf %75, %76 : vector<8x128xf32>
    %78 = arith.mulf %77, %9 : vector<8x128xf32>
    %79 = arith.addf %78, %12 : vector<8x128xf32>
    %80 = vector.extract_strided_slice %79 {offsets = [0, 0], sizes = [8, 32], strides = [1, 1]} : vector<8x128xf32> to vector<8x32xf32>
    %81 = vector.extract_strided_slice %79 {offsets = [0, 32], sizes = [8, 32], strides = [1, 1]} : vector<8x128xf32> to vector<8x32xf32>
    %82 = vector.extract_strided_slice %79 {offsets = [0, 64], sizes = [8, 32], strides = [1, 1]} : vector<8x128xf32> to vector<8x32xf32>
    %83 = vector.extract_strided_slice %79 {offsets = [0, 96], sizes = [8, 32], strides = [1, 1]} : vector<8x128xf32> to vector<8x32xf32>
    %84 = arith.mulf %81, %66 : vector<8x32xf32>
    %85 = arith.mulf %80, %82 : vector<8x32xf32>
    %86 = arith.addf %84, %85 : vector<8x32xf32>
    %87 = math.tanh %86 : vector<8x32xf32>
    %88 = arith.mulf %83, %87 : vector<8x32xf32>
    %89 = vector.extract_strided_slice %26 {offsets = [24, 0], sizes = [8, 128], strides = [1, 1]} : vector<64x128xf32> to vector<8x128xf32>
    %cst_15 = arith.constant dense<0.000000e+00> : vector<8x128xf32>
    %90 = tpu.matmul %88, %15, %cst_15 {dimension_numbers = #tpu.dot_dimension_numbers<[1], [0], [0], [1], [0, 0, 1, 1], [], []>} : vector<8x32xf32>, vector<32x128xf32>, vector<8x128xf32> -> vector<8x128xf32>
    %91 = arith.addf %89, %90 : vector<8x128xf32>
    %92 = arith.mulf %91, %9 : vector<8x128xf32>
    %93 = arith.negf %92 : vector<8x128xf32>
    %94 = math.exp %93 : vector<8x128xf32>
    %cst_16 = arith.constant 1.000000e+00 : f32
    %95 = vector.broadcast %cst_16 : f32 to vector<8x128xf32>
    %96 = arith.addf %95, %94 : vector<8x128xf32>
    %97 = arith.divf %95, %96 : vector<8x128xf32>
    %98 = arith.mulf %97, %9 : vector<8x128xf32>
    %99 = arith.addf %98, %12 : vector<8x128xf32>
    %100 = vector.extract_strided_slice %99 {offsets = [0, 0], sizes = [8, 32], strides = [1, 1]} : vector<8x128xf32> to vector<8x32xf32>
    %101 = vector.extract_strided_slice %99 {offsets = [0, 32], sizes = [8, 32], strides = [1, 1]} : vector<8x128xf32> to vector<8x32xf32>
    %102 = vector.extract_strided_slice %99 {offsets = [0, 64], sizes = [8, 32], strides = [1, 1]} : vector<8x128xf32> to vector<8x32xf32>
    %103 = vector.extract_strided_slice %99 {offsets = [0, 96], sizes = [8, 32], strides = [1, 1]} : vector<8x128xf32> to vector<8x32xf32>
    %104 = arith.mulf %101, %86 : vector<8x32xf32>
    %105 = arith.mulf %100, %102 : vector<8x32xf32>
    %106 = arith.addf %104, %105 : vector<8x32xf32>
    %107 = math.tanh %106 : vector<8x32xf32>
    %108 = arith.mulf %103, %107 : vector<8x32xf32>
    %109 = vector.extract_strided_slice %26 {offsets = [32, 0], sizes = [8, 128], strides = [1, 1]} : vector<64x128xf32> to vector<8x128xf32>
    %cst_17 = arith.constant dense<0.000000e+00> : vector<8x128xf32>
    %110 = tpu.matmul %108, %15, %cst_17 {dimension_numbers = #tpu.dot_dimension_numbers<[1], [0], [0], [1], [0, 0, 1, 1], [], []>} : vector<8x32xf32>, vector<32x128xf32>, vector<8x128xf32> -> vector<8x128xf32>
    %111 = arith.addf %109, %110 : vector<8x128xf32>
    %112 = arith.mulf %111, %9 : vector<8x128xf32>
    %113 = arith.negf %112 : vector<8x128xf32>
    %114 = math.exp %113 : vector<8x128xf32>
    %cst_18 = arith.constant 1.000000e+00 : f32
    %115 = vector.broadcast %cst_18 : f32 to vector<8x128xf32>
    %116 = arith.addf %115, %114 : vector<8x128xf32>
    %117 = arith.divf %115, %116 : vector<8x128xf32>
    %118 = arith.mulf %117, %9 : vector<8x128xf32>
    %119 = arith.addf %118, %12 : vector<8x128xf32>
    %120 = vector.extract_strided_slice %119 {offsets = [0, 0], sizes = [8, 32], strides = [1, 1]} : vector<8x128xf32> to vector<8x32xf32>
    %121 = vector.extract_strided_slice %119 {offsets = [0, 32], sizes = [8, 32], strides = [1, 1]} : vector<8x128xf32> to vector<8x32xf32>
    %122 = vector.extract_strided_slice %119 {offsets = [0, 64], sizes = [8, 32], strides = [1, 1]} : vector<8x128xf32> to vector<8x32xf32>
    %123 = vector.extract_strided_slice %119 {offsets = [0, 96], sizes = [8, 32], strides = [1, 1]} : vector<8x128xf32> to vector<8x32xf32>
    %124 = arith.mulf %121, %106 : vector<8x32xf32>
    %125 = arith.mulf %120, %122 : vector<8x32xf32>
    %126 = arith.addf %124, %125 : vector<8x32xf32>
    %127 = math.tanh %126 : vector<8x32xf32>
    %128 = arith.mulf %123, %127 : vector<8x32xf32>
    %129 = vector.extract_strided_slice %26 {offsets = [40, 0], sizes = [8, 128], strides = [1, 1]} : vector<64x128xf32> to vector<8x128xf32>
    %cst_19 = arith.constant dense<0.000000e+00> : vector<8x128xf32>
    %130 = tpu.matmul %128, %15, %cst_19 {dimension_numbers = #tpu.dot_dimension_numbers<[1], [0], [0], [1], [0, 0, 1, 1], [], []>} : vector<8x32xf32>, vector<32x128xf32>, vector<8x128xf32> -> vector<8x128xf32>
    %131 = arith.addf %129, %130 : vector<8x128xf32>
    %132 = arith.mulf %131, %9 : vector<8x128xf32>
    %133 = arith.negf %132 : vector<8x128xf32>
    %134 = math.exp %133 : vector<8x128xf32>
    %cst_20 = arith.constant 1.000000e+00 : f32
    %135 = vector.broadcast %cst_20 : f32 to vector<8x128xf32>
    %136 = arith.addf %135, %134 : vector<8x128xf32>
    %137 = arith.divf %135, %136 : vector<8x128xf32>
    %138 = arith.mulf %137, %9 : vector<8x128xf32>
    %139 = arith.addf %138, %12 : vector<8x128xf32>
    %140 = vector.extract_strided_slice %139 {offsets = [0, 0], sizes = [8, 32], strides = [1, 1]} : vector<8x128xf32> to vector<8x32xf32>
    %141 = vector.extract_strided_slice %139 {offsets = [0, 32], sizes = [8, 32], strides = [1, 1]} : vector<8x128xf32> to vector<8x32xf32>
    %142 = vector.extract_strided_slice %139 {offsets = [0, 64], sizes = [8, 32], strides = [1, 1]} : vector<8x128xf32> to vector<8x32xf32>
    %143 = vector.extract_strided_slice %139 {offsets = [0, 96], sizes = [8, 32], strides = [1, 1]} : vector<8x128xf32> to vector<8x32xf32>
    %144 = arith.mulf %141, %126 : vector<8x32xf32>
    %145 = arith.mulf %140, %142 : vector<8x32xf32>
    %146 = arith.addf %144, %145 : vector<8x32xf32>
    %147 = math.tanh %146 : vector<8x32xf32>
    %148 = arith.mulf %143, %147 : vector<8x32xf32>
    %149 = vector.extract_strided_slice %26 {offsets = [48, 0], sizes = [8, 128], strides = [1, 1]} : vector<64x128xf32> to vector<8x128xf32>
    %cst_21 = arith.constant dense<0.000000e+00> : vector<8x128xf32>
    %150 = tpu.matmul %148, %15, %cst_21 {dimension_numbers = #tpu.dot_dimension_numbers<[1], [0], [0], [1], [0, 0, 1, 1], [], []>} : vector<8x32xf32>, vector<32x128xf32>, vector<8x128xf32> -> vector<8x128xf32>
    %151 = arith.addf %149, %150 : vector<8x128xf32>
    %152 = arith.mulf %151, %9 : vector<8x128xf32>
    %153 = arith.negf %152 : vector<8x128xf32>
    %154 = math.exp %153 : vector<8x128xf32>
    %cst_22 = arith.constant 1.000000e+00 : f32
    %155 = vector.broadcast %cst_22 : f32 to vector<8x128xf32>
    %156 = arith.addf %155, %154 : vector<8x128xf32>
    %157 = arith.divf %155, %156 : vector<8x128xf32>
    %158 = arith.mulf %157, %9 : vector<8x128xf32>
    %159 = arith.addf %158, %12 : vector<8x128xf32>
    %160 = vector.extract_strided_slice %159 {offsets = [0, 0], sizes = [8, 32], strides = [1, 1]} : vector<8x128xf32> to vector<8x32xf32>
    %161 = vector.extract_strided_slice %159 {offsets = [0, 32], sizes = [8, 32], strides = [1, 1]} : vector<8x128xf32> to vector<8x32xf32>
    %162 = vector.extract_strided_slice %159 {offsets = [0, 64], sizes = [8, 32], strides = [1, 1]} : vector<8x128xf32> to vector<8x32xf32>
    %163 = vector.extract_strided_slice %159 {offsets = [0, 96], sizes = [8, 32], strides = [1, 1]} : vector<8x128xf32> to vector<8x32xf32>
    %164 = arith.mulf %161, %146 : vector<8x32xf32>
    %165 = arith.mulf %160, %162 : vector<8x32xf32>
    %166 = arith.addf %164, %165 : vector<8x32xf32>
    %167 = math.tanh %166 : vector<8x32xf32>
    %168 = arith.mulf %163, %167 : vector<8x32xf32>
    %169 = vector.extract_strided_slice %26 {offsets = [56, 0], sizes = [8, 128], strides = [1, 1]} : vector<64x128xf32> to vector<8x128xf32>
    %cst_23 = arith.constant dense<0.000000e+00> : vector<8x128xf32>
    %170 = tpu.matmul %168, %15, %cst_23 {dimension_numbers = #tpu.dot_dimension_numbers<[1], [0], [0], [1], [0, 0, 1, 1], [], []>} : vector<8x32xf32>, vector<32x128xf32>, vector<8x128xf32> -> vector<8x128xf32>
    %171 = arith.addf %169, %170 : vector<8x128xf32>
    %172 = arith.mulf %171, %9 : vector<8x128xf32>
    %173 = arith.negf %172 : vector<8x128xf32>
    %174 = math.exp %173 : vector<8x128xf32>
    %cst_24 = arith.constant 1.000000e+00 : f32
    %175 = vector.broadcast %cst_24 : f32 to vector<8x128xf32>
    %176 = arith.addf %175, %174 : vector<8x128xf32>
    %177 = arith.divf %175, %176 : vector<8x128xf32>
    %178 = arith.mulf %177, %9 : vector<8x128xf32>
    %179 = arith.addf %178, %12 : vector<8x128xf32>
    %180 = vector.extract_strided_slice %179 {offsets = [0, 0], sizes = [8, 32], strides = [1, 1]} : vector<8x128xf32> to vector<8x32xf32>
    %181 = vector.extract_strided_slice %179 {offsets = [0, 32], sizes = [8, 32], strides = [1, 1]} : vector<8x128xf32> to vector<8x32xf32>
    %182 = vector.extract_strided_slice %179 {offsets = [0, 64], sizes = [8, 32], strides = [1, 1]} : vector<8x128xf32> to vector<8x32xf32>
    %183 = vector.extract_strided_slice %179 {offsets = [0, 96], sizes = [8, 32], strides = [1, 1]} : vector<8x128xf32> to vector<8x32xf32>
    %184 = arith.mulf %181, %166 : vector<8x32xf32>
    %185 = arith.mulf %180, %182 : vector<8x32xf32>
    %186 = arith.addf %184, %185 : vector<8x32xf32>
    %187 = math.tanh %186 : vector<8x32xf32>
    %188 = arith.mulf %183, %187 : vector<8x32xf32>
    %c1 = arith.constant 1 : index
    %c0_25 = arith.constant 0 : index
    %c0_26 = arith.constant 0 : index
    %189 = vector.load %arg1[%c1, %c0_25, %c0_26] : memref<2x72x128xf32, #tpu.memory_space<vmem>>, vector<1x72x128xf32>
    %190 = vector.shape_cast %189 : vector<1x72x128xf32> to vector<72x128xf32>
    %191 = vector.extract_strided_slice %190 {offsets = [32, 0], sizes = [32, 128], strides = [1, 1]} : vector<72x128xf32> to vector<32x128xf32>
    %192 = vector.extract_strided_slice %190 {offsets = [64, 0], sizes = [1, 128], strides = [1, 1]} : vector<72x128xf32> to vector<1x128xf32>
    %193 = tpu.concatenate %48, %68, %88, %108, %128, %148, %168, %188 in 0 : vector<8x32xf32>, vector<8x32xf32>, vector<8x32xf32>, vector<8x32xf32>, vector<8x32xf32>, vector<8x32xf32>, vector<8x32xf32>, vector<8x32xf32> -> vector<64x32xf32>
    %194 = vector.extract_strided_slice %190 {offsets = [0, 0], sizes = [32, 128], strides = [1, 1]} : vector<72x128xf32> to vector<32x128xf32>
    %cst_27 = arith.constant dense<0.000000e+00> : vector<64x128xf32>
    %195 = tpu.matmul %193, %194, %cst_27 {dimension_numbers = #tpu.dot_dimension_numbers<[1], [0], [0], [1], [0, 0, 1, 1], [], []>} : vector<64x32xf32>, vector<32x128xf32>, vector<64x128xf32> -> vector<64x128xf32>
    %196 = vector.broadcast %192 : vector<1x128xf32> to vector<64x128xf32>
    %197 = arith.addf %195, %196 : vector<64x128xf32>
    %cst_28 = arith.constant 0.000000e+00 : f32
    %198 = vector.broadcast %cst_28 : f32 to vector<8x32xf32>
    %cst_29 = arith.constant 0.000000e+00 : f32
    %199 = vector.broadcast %cst_29 : f32 to vector<8x32xf32>
    %200 = vector.extract_strided_slice %197 {offsets = [0, 0], sizes = [8, 128], strides = [1, 1]} : vector<64x128xf32> to vector<8x128xf32>
    %cst_30 = arith.constant dense<0.000000e+00> : vector<8x128xf32>
    %201 = tpu.matmul %198, %191, %cst_30 {dimension_numbers = #tpu.dot_dimension_numbers<[1], [0], [0], [1], [0, 0, 1, 1], [], []>} : vector<8x32xf32>, vector<32x128xf32>, vector<8x128xf32> -> vector<8x128xf32>
    %202 = arith.addf %200, %201 : vector<8x128xf32>
    %203 = arith.mulf %202, %9 : vector<8x128xf32>
    %204 = arith.negf %203 : vector<8x128xf32>
    %205 = math.exp %204 : vector<8x128xf32>
    %cst_31 = arith.constant 1.000000e+00 : f32
    %206 = vector.broadcast %cst_31 : f32 to vector<8x128xf32>
    %207 = arith.addf %206, %205 : vector<8x128xf32>
    %208 = arith.divf %206, %207 : vector<8x128xf32>
    %209 = arith.mulf %208, %9 : vector<8x128xf32>
    %210 = arith.addf %209, %12 : vector<8x128xf32>
    %211 = vector.extract_strided_slice %210 {offsets = [0, 0], sizes = [8, 32], strides = [1, 1]} : vector<8x128xf32> to vector<8x32xf32>
    %212 = vector.extract_strided_slice %210 {offsets = [0, 32], sizes = [8, 32], strides = [1, 1]} : vector<8x128xf32> to vector<8x32xf32>
    %213 = vector.extract_strided_slice %210 {offsets = [0, 64], sizes = [8, 32], strides = [1, 1]} : vector<8x128xf32> to vector<8x32xf32>
    %214 = vector.extract_strided_slice %210 {offsets = [0, 96], sizes = [8, 32], strides = [1, 1]} : vector<8x128xf32> to vector<8x32xf32>
    %215 = arith.mulf %212, %199 : vector<8x32xf32>
    %216 = arith.mulf %211, %213 : vector<8x32xf32>
    %217 = arith.addf %215, %216 : vector<8x32xf32>
    %218 = math.tanh %217 : vector<8x32xf32>
    %219 = arith.mulf %214, %218 : vector<8x32xf32>
    %220 = vector.extract_strided_slice %197 {offsets = [8, 0], sizes = [8, 128], strides = [1, 1]} : vector<64x128xf32> to vector<8x128xf32>
    %cst_32 = arith.constant dense<0.000000e+00> : vector<8x128xf32>
    %221 = tpu.matmul %219, %191, %cst_32 {dimension_numbers = #tpu.dot_dimension_numbers<[1], [0], [0], [1], [0, 0, 1, 1], [], []>} : vector<8x32xf32>, vector<32x128xf32>, vector<8x128xf32> -> vector<8x128xf32>
    %222 = arith.addf %220, %221 : vector<8x128xf32>
    %223 = arith.mulf %222, %9 : vector<8x128xf32>
    %224 = arith.negf %223 : vector<8x128xf32>
    %225 = math.exp %224 : vector<8x128xf32>
    %cst_33 = arith.constant 1.000000e+00 : f32
    %226 = vector.broadcast %cst_33 : f32 to vector<8x128xf32>
    %227 = arith.addf %226, %225 : vector<8x128xf32>
    %228 = arith.divf %226, %227 : vector<8x128xf32>
    %229 = arith.mulf %228, %9 : vector<8x128xf32>
    %230 = arith.addf %229, %12 : vector<8x128xf32>
    %231 = vector.extract_strided_slice %230 {offsets = [0, 0], sizes = [8, 32], strides = [1, 1]} : vector<8x128xf32> to vector<8x32xf32>
    %232 = vector.extract_strided_slice %230 {offsets = [0, 32], sizes = [8, 32], strides = [1, 1]} : vector<8x128xf32> to vector<8x32xf32>
    %233 = vector.extract_strided_slice %230 {offsets = [0, 64], sizes = [8, 32], strides = [1, 1]} : vector<8x128xf32> to vector<8x32xf32>
    %234 = vector.extract_strided_slice %230 {offsets = [0, 96], sizes = [8, 32], strides = [1, 1]} : vector<8x128xf32> to vector<8x32xf32>
    %235 = arith.mulf %232, %217 : vector<8x32xf32>
    %236 = arith.mulf %231, %233 : vector<8x32xf32>
    %237 = arith.addf %235, %236 : vector<8x32xf32>
    %238 = math.tanh %237 : vector<8x32xf32>
    %239 = arith.mulf %234, %238 : vector<8x32xf32>
    %240 = vector.extract_strided_slice %197 {offsets = [16, 0], sizes = [8, 128], strides = [1, 1]} : vector<64x128xf32> to vector<8x128xf32>
    %cst_34 = arith.constant dense<0.000000e+00> : vector<8x128xf32>
    %241 = tpu.matmul %239, %191, %cst_34 {dimension_numbers = #tpu.dot_dimension_numbers<[1], [0], [0], [1], [0, 0, 1, 1], [], []>} : vector<8x32xf32>, vector<32x128xf32>, vector<8x128xf32> -> vector<8x128xf32>
    %242 = arith.addf %240, %241 : vector<8x128xf32>
    %243 = arith.mulf %242, %9 : vector<8x128xf32>
    %244 = arith.negf %243 : vector<8x128xf32>
    %245 = math.exp %244 : vector<8x128xf32>
    %cst_35 = arith.constant 1.000000e+00 : f32
    %246 = vector.broadcast %cst_35 : f32 to vector<8x128xf32>
    %247 = arith.addf %246, %245 : vector<8x128xf32>
    %248 = arith.divf %246, %247 : vector<8x128xf32>
    %249 = arith.mulf %248, %9 : vector<8x128xf32>
    %250 = arith.addf %249, %12 : vector<8x128xf32>
    %251 = vector.extract_strided_slice %250 {offsets = [0, 0], sizes = [8, 32], strides = [1, 1]} : vector<8x128xf32> to vector<8x32xf32>
    %252 = vector.extract_strided_slice %250 {offsets = [0, 32], sizes = [8, 32], strides = [1, 1]} : vector<8x128xf32> to vector<8x32xf32>
    %253 = vector.extract_strided_slice %250 {offsets = [0, 64], sizes = [8, 32], strides = [1, 1]} : vector<8x128xf32> to vector<8x32xf32>
    %254 = vector.extract_strided_slice %250 {offsets = [0, 96], sizes = [8, 32], strides = [1, 1]} : vector<8x128xf32> to vector<8x32xf32>
    %255 = arith.mulf %252, %237 : vector<8x32xf32>
    %256 = arith.mulf %251, %253 : vector<8x32xf32>
    %257 = arith.addf %255, %256 : vector<8x32xf32>
    %258 = math.tanh %257 : vector<8x32xf32>
    %259 = arith.mulf %254, %258 : vector<8x32xf32>
    %260 = vector.extract_strided_slice %197 {offsets = [24, 0], sizes = [8, 128], strides = [1, 1]} : vector<64x128xf32> to vector<8x128xf32>
    %cst_36 = arith.constant dense<0.000000e+00> : vector<8x128xf32>
    %261 = tpu.matmul %259, %191, %cst_36 {dimension_numbers = #tpu.dot_dimension_numbers<[1], [0], [0], [1], [0, 0, 1, 1], [], []>} : vector<8x32xf32>, vector<32x128xf32>, vector<8x128xf32> -> vector<8x128xf32>
    %262 = arith.addf %260, %261 : vector<8x128xf32>
    %263 = arith.mulf %262, %9 : vector<8x128xf32>
    %264 = arith.negf %263 : vector<8x128xf32>
    %265 = math.exp %264 : vector<8x128xf32>
    %cst_37 = arith.constant 1.000000e+00 : f32
    %266 = vector.broadcast %cst_37 : f32 to vector<8x128xf32>
    %267 = arith.addf %266, %265 : vector<8x128xf32>
    %268 = arith.divf %266, %267 : vector<8x128xf32>
    %269 = arith.mulf %268, %9 : vector<8x128xf32>
    %270 = arith.addf %269, %12 : vector<8x128xf32>
    %271 = vector.extract_strided_slice %270 {offsets = [0, 0], sizes = [8, 32], strides = [1, 1]} : vector<8x128xf32> to vector<8x32xf32>
    %272 = vector.extract_strided_slice %270 {offsets = [0, 32], sizes = [8, 32], strides = [1, 1]} : vector<8x128xf32> to vector<8x32xf32>
    %273 = vector.extract_strided_slice %270 {offsets = [0, 64], sizes = [8, 32], strides = [1, 1]} : vector<8x128xf32> to vector<8x32xf32>
    %274 = vector.extract_strided_slice %270 {offsets = [0, 96], sizes = [8, 32], strides = [1, 1]} : vector<8x128xf32> to vector<8x32xf32>
    %275 = arith.mulf %272, %257 : vector<8x32xf32>
    %276 = arith.mulf %271, %273 : vector<8x32xf32>
    %277 = arith.addf %275, %276 : vector<8x32xf32>
    %278 = math.tanh %277 : vector<8x32xf32>
    %279 = arith.mulf %274, %278 : vector<8x32xf32>
    %280 = vector.extract_strided_slice %197 {offsets = [32, 0], sizes = [8, 128], strides = [1, 1]} : vector<64x128xf32> to vector<8x128xf32>
    %cst_38 = arith.constant dense<0.000000e+00> : vector<8x128xf32>
    %281 = tpu.matmul %279, %191, %cst_38 {dimension_numbers = #tpu.dot_dimension_numbers<[1], [0], [0], [1], [0, 0, 1, 1], [], []>} : vector<8x32xf32>, vector<32x128xf32>, vector<8x128xf32> -> vector<8x128xf32>
    %282 = arith.addf %280, %281 : vector<8x128xf32>
    %283 = arith.mulf %282, %9 : vector<8x128xf32>
    %284 = arith.negf %283 : vector<8x128xf32>
    %285 = math.exp %284 : vector<8x128xf32>
    %cst_39 = arith.constant 1.000000e+00 : f32
    %286 = vector.broadcast %cst_39 : f32 to vector<8x128xf32>
    %287 = arith.addf %286, %285 : vector<8x128xf32>
    %288 = arith.divf %286, %287 : vector<8x128xf32>
    %289 = arith.mulf %288, %9 : vector<8x128xf32>
    %290 = arith.addf %289, %12 : vector<8x128xf32>
    %291 = vector.extract_strided_slice %290 {offsets = [0, 0], sizes = [8, 32], strides = [1, 1]} : vector<8x128xf32> to vector<8x32xf32>
    %292 = vector.extract_strided_slice %290 {offsets = [0, 32], sizes = [8, 32], strides = [1, 1]} : vector<8x128xf32> to vector<8x32xf32>
    %293 = vector.extract_strided_slice %290 {offsets = [0, 64], sizes = [8, 32], strides = [1, 1]} : vector<8x128xf32> to vector<8x32xf32>
    %294 = vector.extract_strided_slice %290 {offsets = [0, 96], sizes = [8, 32], strides = [1, 1]} : vector<8x128xf32> to vector<8x32xf32>
    %295 = arith.mulf %292, %277 : vector<8x32xf32>
    %296 = arith.mulf %291, %293 : vector<8x32xf32>
    %297 = arith.addf %295, %296 : vector<8x32xf32>
    %298 = math.tanh %297 : vector<8x32xf32>
    %299 = arith.mulf %294, %298 : vector<8x32xf32>
    %300 = vector.extract_strided_slice %197 {offsets = [40, 0], sizes = [8, 128], strides = [1, 1]} : vector<64x128xf32> to vector<8x128xf32>
    %cst_40 = arith.constant dense<0.000000e+00> : vector<8x128xf32>
    %301 = tpu.matmul %299, %191, %cst_40 {dimension_numbers = #tpu.dot_dimension_numbers<[1], [0], [0], [1], [0, 0, 1, 1], [], []>} : vector<8x32xf32>, vector<32x128xf32>, vector<8x128xf32> -> vector<8x128xf32>
    %302 = arith.addf %300, %301 : vector<8x128xf32>
    %303 = arith.mulf %302, %9 : vector<8x128xf32>
    %304 = arith.negf %303 : vector<8x128xf32>
    %305 = math.exp %304 : vector<8x128xf32>
    %cst_41 = arith.constant 1.000000e+00 : f32
    %306 = vector.broadcast %cst_41 : f32 to vector<8x128xf32>
    %307 = arith.addf %306, %305 : vector<8x128xf32>
    %308 = arith.divf %306, %307 : vector<8x128xf32>
    %309 = arith.mulf %308, %9 : vector<8x128xf32>
    %310 = arith.addf %309, %12 : vector<8x128xf32>
    %311 = vector.extract_strided_slice %310 {offsets = [0, 0], sizes = [8, 32], strides = [1, 1]} : vector<8x128xf32> to vector<8x32xf32>
    %312 = vector.extract_strided_slice %310 {offsets = [0, 32], sizes = [8, 32], strides = [1, 1]} : vector<8x128xf32> to vector<8x32xf32>
    %313 = vector.extract_strided_slice %310 {offsets = [0, 64], sizes = [8, 32], strides = [1, 1]} : vector<8x128xf32> to vector<8x32xf32>
    %314 = vector.extract_strided_slice %310 {offsets = [0, 96], sizes = [8, 32], strides = [1, 1]} : vector<8x128xf32> to vector<8x32xf32>
    %315 = arith.mulf %312, %297 : vector<8x32xf32>
    %316 = arith.mulf %311, %313 : vector<8x32xf32>
    %317 = arith.addf %315, %316 : vector<8x32xf32>
    %318 = math.tanh %317 : vector<8x32xf32>
    %319 = arith.mulf %314, %318 : vector<8x32xf32>
    %320 = vector.extract_strided_slice %197 {offsets = [48, 0], sizes = [8, 128], strides = [1, 1]} : vector<64x128xf32> to vector<8x128xf32>
    %cst_42 = arith.constant dense<0.000000e+00> : vector<8x128xf32>
    %321 = tpu.matmul %319, %191, %cst_42 {dimension_numbers = #tpu.dot_dimension_numbers<[1], [0], [0], [1], [0, 0, 1, 1], [], []>} : vector<8x32xf32>, vector<32x128xf32>, vector<8x128xf32> -> vector<8x128xf32>
    %322 = arith.addf %320, %321 : vector<8x128xf32>
    %323 = arith.mulf %322, %9 : vector<8x128xf32>
    %324 = arith.negf %323 : vector<8x128xf32>
    %325 = math.exp %324 : vector<8x128xf32>
    %cst_43 = arith.constant 1.000000e+00 : f32
    %326 = vector.broadcast %cst_43 : f32 to vector<8x128xf32>
    %327 = arith.addf %326, %325 : vector<8x128xf32>
    %328 = arith.divf %326, %327 : vector<8x128xf32>
    %329 = arith.mulf %328, %9 : vector<8x128xf32>
    %330 = arith.addf %329, %12 : vector<8x128xf32>
    %331 = vector.extract_strided_slice %330 {offsets = [0, 0], sizes = [8, 32], strides = [1, 1]} : vector<8x128xf32> to vector<8x32xf32>
    %332 = vector.extract_strided_slice %330 {offsets = [0, 32], sizes = [8, 32], strides = [1, 1]} : vector<8x128xf32> to vector<8x32xf32>
    %333 = vector.extract_strided_slice %330 {offsets = [0, 64], sizes = [8, 32], strides = [1, 1]} : vector<8x128xf32> to vector<8x32xf32>
    %334 = vector.extract_strided_slice %330 {offsets = [0, 96], sizes = [8, 32], strides = [1, 1]} : vector<8x128xf32> to vector<8x32xf32>
    %335 = arith.mulf %332, %317 : vector<8x32xf32>
    %336 = arith.mulf %331, %333 : vector<8x32xf32>
    %337 = arith.addf %335, %336 : vector<8x32xf32>
    %338 = math.tanh %337 : vector<8x32xf32>
    %339 = arith.mulf %334, %338 : vector<8x32xf32>
    %340 = vector.extract_strided_slice %197 {offsets = [56, 0], sizes = [8, 128], strides = [1, 1]} : vector<64x128xf32> to vector<8x128xf32>
    %cst_44 = arith.constant dense<0.000000e+00> : vector<8x128xf32>
    %341 = tpu.matmul %339, %191, %cst_44 {dimension_numbers = #tpu.dot_dimension_numbers<[1], [0], [0], [1], [0, 0, 1, 1], [], []>} : vector<8x32xf32>, vector<32x128xf32>, vector<8x128xf32> -> vector<8x128xf32>
    %342 = arith.addf %340, %341 : vector<8x128xf32>
    %343 = arith.mulf %342, %9 : vector<8x128xf32>
    %344 = arith.negf %343 : vector<8x128xf32>
    %345 = math.exp %344 : vector<8x128xf32>
    %cst_45 = arith.constant 1.000000e+00 : f32
    %346 = vector.broadcast %cst_45 : f32 to vector<8x128xf32>
    %347 = arith.addf %346, %345 : vector<8x128xf32>
    %348 = arith.divf %346, %347 : vector<8x128xf32>
    %349 = arith.mulf %348, %9 : vector<8x128xf32>
    %350 = arith.addf %349, %12 : vector<8x128xf32>
    %351 = vector.extract_strided_slice %350 {offsets = [0, 0], sizes = [8, 32], strides = [1, 1]} : vector<8x128xf32> to vector<8x32xf32>
    %352 = vector.extract_strided_slice %350 {offsets = [0, 32], sizes = [8, 32], strides = [1, 1]} : vector<8x128xf32> to vector<8x32xf32>
    %353 = vector.extract_strided_slice %350 {offsets = [0, 64], sizes = [8, 32], strides = [1, 1]} : vector<8x128xf32> to vector<8x32xf32>
    %354 = vector.extract_strided_slice %350 {offsets = [0, 96], sizes = [8, 32], strides = [1, 1]} : vector<8x128xf32> to vector<8x32xf32>
    %355 = arith.mulf %352, %337 : vector<8x32xf32>
    %356 = arith.mulf %351, %353 : vector<8x32xf32>
    %357 = arith.addf %355, %356 : vector<8x32xf32>
    %358 = math.tanh %357 : vector<8x32xf32>
    %359 = arith.mulf %354, %358 : vector<8x32xf32>
    %360 = tpu.concatenate %188, %359 in 0 : vector<8x32xf32>, vector<8x32xf32> -> vector<16x32xf32>
    %c0_46 = arith.constant 0 : index
    %c0_47 = arith.constant 0 : index
    %c0_48 = arith.constant 0 : index
    %361 = vector.load %arg3[%c0_46, %c0_47, %c0_48] : memref<2x40x128xf32, #tpu.memory_space<vmem>>, vector<1x40x128xf32>
    %362 = vector.shape_cast %361 : vector<1x40x128xf32> to vector<40x128xf32>
    %363 = vector.extract_strided_slice %362 {offsets = [0, 0], sizes = [32, 128], strides = [1, 1]} : vector<40x128xf32> to vector<32x128xf32>
    %cst_49 = arith.constant dense<0.000000e+00> : vector<16x128xf32>
    %364 = tpu.matmul %360, %363, %cst_49 {dimension_numbers = #tpu.dot_dimension_numbers<[1], [0], [0], [1], [0, 0, 1, 1], [], []>} : vector<16x32xf32>, vector<32x128xf32>, vector<16x128xf32> -> vector<16x128xf32>
    %365 = vector.extract_strided_slice %362 {offsets = [32, 0], sizes = [1, 128], strides = [1, 1]} : vector<40x128xf32> to vector<1x128xf32>
    %366 = vector.broadcast %365 : vector<1x128xf32> to vector<16x128xf32>
    %367 = arith.addf %364, %366 : vector<16x128xf32>
    %368 = tpu.transpose %367, [1, 0] : vector<16x128xf32> -> vector<128x16xf32>
    %369 = vector.extract_strided_slice %368 {offsets = [0, 0], sizes = [10, 16], strides = [1, 1]} : vector<128x16xf32> to vector<10x16xf32>
    %370 = tpu.iota {dimensions = array<i32: 1>} : vector<16x128xi32>
    %c64_i32_50 = arith.constant 64 : i32
    %371 = vector.broadcast %c64_i32_50 : i32 to vector<16x128xi32>
    %372 = arith.cmpi sge, %370, %371 : vector<16x128xi32>
    %c96_i32_51 = arith.constant 96 : i32
    %373 = vector.broadcast %c96_i32_51 : i32 to vector<16x128xi32>
    %374 = arith.cmpi slt, %370, %373 : vector<16x128xi32>
    %375 = arith.andi %372, %374 : vector<16x128xi1>
    %cst_52 = arith.constant 2.000000e+00 : f32
    %cst_53 = arith.constant 1.000000e+00 : f32
    %376 = vector.broadcast %cst_52 : f32 to vector<16x128xf32>
    %377 = vector.broadcast %cst_53 : f32 to vector<16x128xf32>
    %378 = arith.select %375, %376, %377 : vector<16x128xi1>, vector<16x128xf32>
    %cst_54 = arith.constant -1.000000e+00 : f32
    %cst_55 = arith.constant 0.000000e+00 : f32
    %379 = vector.broadcast %cst_54 : f32 to vector<16x128xf32>
    %380 = vector.broadcast %cst_55 : f32 to vector<16x128xf32>
    %381 = arith.select %375, %379, %380 : vector<16x128xi1>, vector<16x128xf32>
    %c0_56 = arith.constant 0 : index
    %c0_57 = arith.constant 0 : index
    %c0_58 = arith.constant 0 : index
    %382 = vector.load %arg2[%c0_56, %c0_57, %c0_58] : memref<2x72x128xf32, #tpu.memory_space<vmem>>, vector<1x72x128xf32>
    %383 = vector.shape_cast %382 : vector<1x72x128xf32> to vector<72x128xf32>
    %384 = vector.extract_strided_slice %383 {offsets = [32, 0], sizes = [32, 128], strides = [1, 1]} : vector<72x128xf32> to vector<32x128xf32>
    %385 = vector.extract_strided_slice %383 {offsets = [64, 0], sizes = [1, 128], strides = [1, 1]} : vector<72x128xf32> to vector<1x128xf32>
    %386 = vector.extract_strided_slice %383 {offsets = [0, 0], sizes = [1, 128], strides = [1, 1]} : vector<72x128xf32> to vector<1x128xf32>
    %387 = vector.shape_cast %369 : vector<10x16xf32> to vector<10x16x1xf32>
    %388 = vector.shape_cast %386 : vector<1x128xf32> to vector<1x1x128xf32>
    %389 = vector.broadcast %387 : vector<10x16x1xf32> to vector<10x16x128xf32>
    %390 = vector.broadcast %388 : vector<1x1x128xf32> to vector<10x16x128xf32>
    %391 = arith.mulf %389, %390 : vector<10x16x128xf32>
    %392 = vector.shape_cast %385 : vector<1x128xf32> to vector<1x1x128xf32>
    %393 = vector.broadcast %392 : vector<1x1x128xf32> to vector<10x16x128xf32>
    %394 = arith.addf %391, %393 : vector<10x16x128xf32>
    %395 = vector.shape_cast %394 : vector<10x16x128xf32> to vector<160x128xf32>
    %cst_59 = arith.constant 0.000000e+00 : f32
    %396 = vector.broadcast %cst_59 : f32 to vector<16x32xf32>
    %cst_60 = arith.constant 0.000000e+00 : f32
    %397 = vector.broadcast %cst_60 : f32 to vector<16x32xf32>
    %398 = vector.extract_strided_slice %395 {offsets = [0, 0], sizes = [16, 128], strides = [1, 1]} : vector<160x128xf32> to vector<16x128xf32>
    %cst_61 = arith.constant dense<0.000000e+00> : vector<16x128xf32>
    %399 = tpu.matmul %396, %384, %cst_61 {dimension_numbers = #tpu.dot_dimension_numbers<[1], [0], [0], [1], [0, 0, 1, 1], [], []>} : vector<16x32xf32>, vector<32x128xf32>, vector<16x128xf32> -> vector<16x128xf32>
    %400 = arith.addf %398, %399 : vector<16x128xf32>
    %401 = arith.mulf %400, %378 : vector<16x128xf32>
    %402 = arith.negf %401 : vector<16x128xf32>
    %403 = math.exp %402 : vector<16x128xf32>
    %cst_62 = arith.constant 1.000000e+00 : f32
    %404 = vector.broadcast %cst_62 : f32 to vector<16x128xf32>
    %405 = arith.addf %404, %403 : vector<16x128xf32>
    %406 = arith.divf %404, %405 : vector<16x128xf32>
    %407 = arith.mulf %406, %378 : vector<16x128xf32>
    %408 = arith.addf %407, %381 : vector<16x128xf32>
    %409 = vector.extract_strided_slice %408 {offsets = [0, 0], sizes = [16, 32], strides = [1, 1]} : vector<16x128xf32> to vector<16x32xf32>
    %410 = vector.extract_strided_slice %408 {offsets = [0, 32], sizes = [16, 32], strides = [1, 1]} : vector<16x128xf32> to vector<16x32xf32>
    %411 = vector.extract_strided_slice %408 {offsets = [0, 64], sizes = [16, 32], strides = [1, 1]} : vector<16x128xf32> to vector<16x32xf32>
    %412 = vector.extract_strided_slice %408 {offsets = [0, 96], sizes = [16, 32], strides = [1, 1]} : vector<16x128xf32> to vector<16x32xf32>
    %413 = arith.mulf %410, %397 : vector<16x32xf32>
    %414 = arith.mulf %409, %411 : vector<16x32xf32>
    %415 = arith.addf %413, %414 : vector<16x32xf32>
    %416 = math.tanh %415 : vector<16x32xf32>
    %417 = arith.mulf %412, %416 : vector<16x32xf32>
    %418 = vector.extract_strided_slice %395 {offsets = [16, 0], sizes = [16, 128], strides = [1, 1]} : vector<160x128xf32> to vector<16x128xf32>
    %cst_63 = arith.constant dense<0.000000e+00> : vector<16x128xf32>
    %419 = tpu.matmul %417, %384, %cst_63 {dimension_numbers = #tpu.dot_dimension_numbers<[1], [0], [0], [1], [0, 0, 1, 1], [], []>} : vector<16x32xf32>, vector<32x128xf32>, vector<16x128xf32> -> vector<16x128xf32>
    %420 = arith.addf %418, %419 : vector<16x128xf32>
    %421 = arith.mulf %420, %378 : vector<16x128xf32>
    %422 = arith.negf %421 : vector<16x128xf32>
    %423 = math.exp %422 : vector<16x128xf32>
    %cst_64 = arith.constant 1.000000e+00 : f32
    %424 = vector.broadcast %cst_64 : f32 to vector<16x128xf32>
    %425 = arith.addf %424, %423 : vector<16x128xf32>
    %426 = arith.divf %424, %425 : vector<16x128xf32>
    %427 = arith.mulf %426, %378 : vector<16x128xf32>
    %428 = arith.addf %427, %381 : vector<16x128xf32>
    %429 = vector.extract_strided_slice %428 {offsets = [0, 0], sizes = [16, 32], strides = [1, 1]} : vector<16x128xf32> to vector<16x32xf32>
    %430 = vector.extract_strided_slice %428 {offsets = [0, 32], sizes = [16, 32], strides = [1, 1]} : vector<16x128xf32> to vector<16x32xf32>
    %431 = vector.extract_strided_slice %428 {offsets = [0, 64], sizes = [16, 32], strides = [1, 1]} : vector<16x128xf32> to vector<16x32xf32>
    %432 = vector.extract_strided_slice %428 {offsets = [0, 96], sizes = [16, 32], strides = [1, 1]} : vector<16x128xf32> to vector<16x32xf32>
    %433 = arith.mulf %430, %415 : vector<16x32xf32>
    %434 = arith.mulf %429, %431 : vector<16x32xf32>
    %435 = arith.addf %433, %434 : vector<16x32xf32>
    %436 = math.tanh %435 : vector<16x32xf32>
    %437 = arith.mulf %432, %436 : vector<16x32xf32>
    %438 = vector.extract_strided_slice %395 {offsets = [32, 0], sizes = [16, 128], strides = [1, 1]} : vector<160x128xf32> to vector<16x128xf32>
    %cst_65 = arith.constant dense<0.000000e+00> : vector<16x128xf32>
    %439 = tpu.matmul %437, %384, %cst_65 {dimension_numbers = #tpu.dot_dimension_numbers<[1], [0], [0], [1], [0, 0, 1, 1], [], []>} : vector<16x32xf32>, vector<32x128xf32>, vector<16x128xf32> -> vector<16x128xf32>
    %440 = arith.addf %438, %439 : vector<16x128xf32>
    %441 = arith.mulf %440, %378 : vector<16x128xf32>
    %442 = arith.negf %441 : vector<16x128xf32>
    %443 = math.exp %442 : vector<16x128xf32>
    %cst_66 = arith.constant 1.000000e+00 : f32
    %444 = vector.broadcast %cst_66 : f32 to vector<16x128xf32>
    %445 = arith.addf %444, %443 : vector<16x128xf32>
    %446 = arith.divf %444, %445 : vector<16x128xf32>
    %447 = arith.mulf %446, %378 : vector<16x128xf32>
    %448 = arith.addf %447, %381 : vector<16x128xf32>
    %449 = vector.extract_strided_slice %448 {offsets = [0, 0], sizes = [16, 32], strides = [1, 1]} : vector<16x128xf32> to vector<16x32xf32>
    %450 = vector.extract_strided_slice %448 {offsets = [0, 32], sizes = [16, 32], strides = [1, 1]} : vector<16x128xf32> to vector<16x32xf32>
    %451 = vector.extract_strided_slice %448 {offsets = [0, 64], sizes = [16, 32], strides = [1, 1]} : vector<16x128xf32> to vector<16x32xf32>
    %452 = vector.extract_strided_slice %448 {offsets = [0, 96], sizes = [16, 32], strides = [1, 1]} : vector<16x128xf32> to vector<16x32xf32>
    %453 = arith.mulf %450, %435 : vector<16x32xf32>
    %454 = arith.mulf %449, %451 : vector<16x32xf32>
    %455 = arith.addf %453, %454 : vector<16x32xf32>
    %456 = math.tanh %455 : vector<16x32xf32>
    %457 = arith.mulf %452, %456 : vector<16x32xf32>
    %458 = vector.extract_strided_slice %395 {offsets = [48, 0], sizes = [16, 128], strides = [1, 1]} : vector<160x128xf32> to vector<16x128xf32>
    %cst_67 = arith.constant dense<0.000000e+00> : vector<16x128xf32>
    %459 = tpu.matmul %457, %384, %cst_67 {dimension_numbers = #tpu.dot_dimension_numbers<[1], [0], [0], [1], [0, 0, 1, 1], [], []>} : vector<16x32xf32>, vector<32x128xf32>, vector<16x128xf32> -> vector<16x128xf32>
    %460 = arith.addf %458, %459 : vector<16x128xf32>
    %461 = arith.mulf %460, %378 : vector<16x128xf32>
    %462 = arith.negf %461 : vector<16x128xf32>
    %463 = math.exp %462 : vector<16x128xf32>
    %cst_68 = arith.constant 1.000000e+00 : f32
    %464 = vector.broadcast %cst_68 : f32 to vector<16x128xf32>
    %465 = arith.addf %464, %463 : vector<16x128xf32>
    %466 = arith.divf %464, %465 : vector<16x128xf32>
    %467 = arith.mulf %466, %378 : vector<16x128xf32>
    %468 = arith.addf %467, %381 : vector<16x128xf32>
    %469 = vector.extract_strided_slice %468 {offsets = [0, 0], sizes = [16, 32], strides = [1, 1]} : vector<16x128xf32> to vector<16x32xf32>
    %470 = vector.extract_strided_slice %468 {offsets = [0, 32], sizes = [16, 32], strides = [1, 1]} : vector<16x128xf32> to vector<16x32xf32>
    %471 = vector.extract_strided_slice %468 {offsets = [0, 64], sizes = [16, 32], strides = [1, 1]} : vector<16x128xf32> to vector<16x32xf32>
    %472 = vector.extract_strided_slice %468 {offsets = [0, 96], sizes = [16, 32], strides = [1, 1]} : vector<16x128xf32> to vector<16x32xf32>
    %473 = arith.mulf %470, %455 : vector<16x32xf32>
    %474 = arith.mulf %469, %471 : vector<16x32xf32>
    %475 = arith.addf %473, %474 : vector<16x32xf32>
    %476 = math.tanh %475 : vector<16x32xf32>
    %477 = arith.mulf %472, %476 : vector<16x32xf32>
    %478 = vector.extract_strided_slice %395 {offsets = [64, 0], sizes = [16, 128], strides = [1, 1]} : vector<160x128xf32> to vector<16x128xf32>
    %cst_69 = arith.constant dense<0.000000e+00> : vector<16x128xf32>
    %479 = tpu.matmul %477, %384, %cst_69 {dimension_numbers = #tpu.dot_dimension_numbers<[1], [0], [0], [1], [0, 0, 1, 1], [], []>} : vector<16x32xf32>, vector<32x128xf32>, vector<16x128xf32> -> vector<16x128xf32>
    %480 = arith.addf %478, %479 : vector<16x128xf32>
    %481 = arith.mulf %480, %378 : vector<16x128xf32>
    %482 = arith.negf %481 : vector<16x128xf32>
    %483 = math.exp %482 : vector<16x128xf32>
    %cst_70 = arith.constant 1.000000e+00 : f32
    %484 = vector.broadcast %cst_70 : f32 to vector<16x128xf32>
    %485 = arith.addf %484, %483 : vector<16x128xf32>
    %486 = arith.divf %484, %485 : vector<16x128xf32>
    %487 = arith.mulf %486, %378 : vector<16x128xf32>
    %488 = arith.addf %487, %381 : vector<16x128xf32>
    %489 = vector.extract_strided_slice %488 {offsets = [0, 0], sizes = [16, 32], strides = [1, 1]} : vector<16x128xf32> to vector<16x32xf32>
    %490 = vector.extract_strided_slice %488 {offsets = [0, 32], sizes = [16, 32], strides = [1, 1]} : vector<16x128xf32> to vector<16x32xf32>
    %491 = vector.extract_strided_slice %488 {offsets = [0, 64], sizes = [16, 32], strides = [1, 1]} : vector<16x128xf32> to vector<16x32xf32>
    %492 = vector.extract_strided_slice %488 {offsets = [0, 96], sizes = [16, 32], strides = [1, 1]} : vector<16x128xf32> to vector<16x32xf32>
    %493 = arith.mulf %490, %475 : vector<16x32xf32>
    %494 = arith.mulf %489, %491 : vector<16x32xf32>
    %495 = arith.addf %493, %494 : vector<16x32xf32>
    %496 = math.tanh %495 : vector<16x32xf32>
    %497 = arith.mulf %492, %496 : vector<16x32xf32>
    %498 = vector.extract_strided_slice %395 {offsets = [80, 0], sizes = [16, 128], strides = [1, 1]} : vector<160x128xf32> to vector<16x128xf32>
    %cst_71 = arith.constant dense<0.000000e+00> : vector<16x128xf32>
    %499 = tpu.matmul %497, %384, %cst_71 {dimension_numbers = #tpu.dot_dimension_numbers<[1], [0], [0], [1], [0, 0, 1, 1], [], []>} : vector<16x32xf32>, vector<32x128xf32>, vector<16x128xf32> -> vector<16x128xf32>
    %500 = arith.addf %498, %499 : vector<16x128xf32>
    %501 = arith.mulf %500, %378 : vector<16x128xf32>
    %502 = arith.negf %501 : vector<16x128xf32>
    %503 = math.exp %502 : vector<16x128xf32>
    %cst_72 = arith.constant 1.000000e+00 : f32
    %504 = vector.broadcast %cst_72 : f32 to vector<16x128xf32>
    %505 = arith.addf %504, %503 : vector<16x128xf32>
    %506 = arith.divf %504, %505 : vector<16x128xf32>
    %507 = arith.mulf %506, %378 : vector<16x128xf32>
    %508 = arith.addf %507, %381 : vector<16x128xf32>
    %509 = vector.extract_strided_slice %508 {offsets = [0, 0], sizes = [16, 32], strides = [1, 1]} : vector<16x128xf32> to vector<16x32xf32>
    %510 = vector.extract_strided_slice %508 {offsets = [0, 32], sizes = [16, 32], strides = [1, 1]} : vector<16x128xf32> to vector<16x32xf32>
    %511 = vector.extract_strided_slice %508 {offsets = [0, 64], sizes = [16, 32], strides = [1, 1]} : vector<16x128xf32> to vector<16x32xf32>
    %512 = vector.extract_strided_slice %508 {offsets = [0, 96], sizes = [16, 32], strides = [1, 1]} : vector<16x128xf32> to vector<16x32xf32>
    %513 = arith.mulf %510, %495 : vector<16x32xf32>
    %514 = arith.mulf %509, %511 : vector<16x32xf32>
    %515 = arith.addf %513, %514 : vector<16x32xf32>
    %516 = math.tanh %515 : vector<16x32xf32>
    %517 = arith.mulf %512, %516 : vector<16x32xf32>
    %518 = vector.extract_strided_slice %395 {offsets = [96, 0], sizes = [16, 128], strides = [1, 1]} : vector<160x128xf32> to vector<16x128xf32>
    %cst_73 = arith.constant dense<0.000000e+00> : vector<16x128xf32>
    %519 = tpu.matmul %517, %384, %cst_73 {dimension_numbers = #tpu.dot_dimension_numbers<[1], [0], [0], [1], [0, 0, 1, 1], [], []>} : vector<16x32xf32>, vector<32x128xf32>, vector<16x128xf32> -> vector<16x128xf32>
    %520 = arith.addf %518, %519 : vector<16x128xf32>
    %521 = arith.mulf %520, %378 : vector<16x128xf32>
    %522 = arith.negf %521 : vector<16x128xf32>
    %523 = math.exp %522 : vector<16x128xf32>
    %cst_74 = arith.constant 1.000000e+00 : f32
    %524 = vector.broadcast %cst_74 : f32 to vector<16x128xf32>
    %525 = arith.addf %524, %523 : vector<16x128xf32>
    %526 = arith.divf %524, %525 : vector<16x128xf32>
    %527 = arith.mulf %526, %378 : vector<16x128xf32>
    %528 = arith.addf %527, %381 : vector<16x128xf32>
    %529 = vector.extract_strided_slice %528 {offsets = [0, 0], sizes = [16, 32], strides = [1, 1]} : vector<16x128xf32> to vector<16x32xf32>
    %530 = vector.extract_strided_slice %528 {offsets = [0, 32], sizes = [16, 32], strides = [1, 1]} : vector<16x128xf32> to vector<16x32xf32>
    %531 = vector.extract_strided_slice %528 {offsets = [0, 64], sizes = [16, 32], strides = [1, 1]} : vector<16x128xf32> to vector<16x32xf32>
    %532 = vector.extract_strided_slice %528 {offsets = [0, 96], sizes = [16, 32], strides = [1, 1]} : vector<16x128xf32> to vector<16x32xf32>
    %533 = arith.mulf %530, %515 : vector<16x32xf32>
    %534 = arith.mulf %529, %531 : vector<16x32xf32>
    %535 = arith.addf %533, %534 : vector<16x32xf32>
    %536 = math.tanh %535 : vector<16x32xf32>
    %537 = arith.mulf %532, %536 : vector<16x32xf32>
    %538 = vector.extract_strided_slice %395 {offsets = [112, 0], sizes = [16, 128], strides = [1, 1]} : vector<160x128xf32> to vector<16x128xf32>
    %cst_75 = arith.constant dense<0.000000e+00> : vector<16x128xf32>
    %539 = tpu.matmul %537, %384, %cst_75 {dimension_numbers = #tpu.dot_dimension_numbers<[1], [0], [0], [1], [0, 0, 1, 1], [], []>} : vector<16x32xf32>, vector<32x128xf32>, vector<16x128xf32> -> vector<16x128xf32>
    %540 = arith.addf %538, %539 : vector<16x128xf32>
    %541 = arith.mulf %540, %378 : vector<16x128xf32>
    %542 = arith.negf %541 : vector<16x128xf32>
    %543 = math.exp %542 : vector<16x128xf32>
    %cst_76 = arith.constant 1.000000e+00 : f32
    %544 = vector.broadcast %cst_76 : f32 to vector<16x128xf32>
    %545 = arith.addf %544, %543 : vector<16x128xf32>
    %546 = arith.divf %544, %545 : vector<16x128xf32>
    %547 = arith.mulf %546, %378 : vector<16x128xf32>
    %548 = arith.addf %547, %381 : vector<16x128xf32>
    %549 = vector.extract_strided_slice %548 {offsets = [0, 0], sizes = [16, 32], strides = [1, 1]} : vector<16x128xf32> to vector<16x32xf32>
    %550 = vector.extract_strided_slice %548 {offsets = [0, 32], sizes = [16, 32], strides = [1, 1]} : vector<16x128xf32> to vector<16x32xf32>
    %551 = vector.extract_strided_slice %548 {offsets = [0, 64], sizes = [16, 32], strides = [1, 1]} : vector<16x128xf32> to vector<16x32xf32>
    %552 = vector.extract_strided_slice %548 {offsets = [0, 96], sizes = [16, 32], strides = [1, 1]} : vector<16x128xf32> to vector<16x32xf32>
    %553 = arith.mulf %550, %535 : vector<16x32xf32>
    %554 = arith.mulf %549, %551 : vector<16x32xf32>
    %555 = arith.addf %553, %554 : vector<16x32xf32>
    %556 = math.tanh %555 : vector<16x32xf32>
    %557 = arith.mulf %552, %556 : vector<16x32xf32>
    %558 = vector.extract_strided_slice %395 {offsets = [128, 0], sizes = [16, 128], strides = [1, 1]} : vector<160x128xf32> to vector<16x128xf32>
    %cst_77 = arith.constant dense<0.000000e+00> : vector<16x128xf32>
    %559 = tpu.matmul %557, %384, %cst_77 {dimension_numbers = #tpu.dot_dimension_numbers<[1], [0], [0], [1], [0, 0, 1, 1], [], []>} : vector<16x32xf32>, vector<32x128xf32>, vector<16x128xf32> -> vector<16x128xf32>
    %560 = arith.addf %558, %559 : vector<16x128xf32>
    %561 = arith.mulf %560, %378 : vector<16x128xf32>
    %562 = arith.negf %561 : vector<16x128xf32>
    %563 = math.exp %562 : vector<16x128xf32>
    %cst_78 = arith.constant 1.000000e+00 : f32
    %564 = vector.broadcast %cst_78 : f32 to vector<16x128xf32>
    %565 = arith.addf %564, %563 : vector<16x128xf32>
    %566 = arith.divf %564, %565 : vector<16x128xf32>
    %567 = arith.mulf %566, %378 : vector<16x128xf32>
    %568 = arith.addf %567, %381 : vector<16x128xf32>
    %569 = vector.extract_strided_slice %568 {offsets = [0, 0], sizes = [16, 32], strides = [1, 1]} : vector<16x128xf32> to vector<16x32xf32>
    %570 = vector.extract_strided_slice %568 {offsets = [0, 32], sizes = [16, 32], strides = [1, 1]} : vector<16x128xf32> to vector<16x32xf32>
    %571 = vector.extract_strided_slice %568 {offsets = [0, 64], sizes = [16, 32], strides = [1, 1]} : vector<16x128xf32> to vector<16x32xf32>
    %572 = vector.extract_strided_slice %568 {offsets = [0, 96], sizes = [16, 32], strides = [1, 1]} : vector<16x128xf32> to vector<16x32xf32>
    %573 = arith.mulf %570, %555 : vector<16x32xf32>
    %574 = arith.mulf %569, %571 : vector<16x32xf32>
    %575 = arith.addf %573, %574 : vector<16x32xf32>
    %576 = math.tanh %575 : vector<16x32xf32>
    %577 = arith.mulf %572, %576 : vector<16x32xf32>
    %578 = vector.extract_strided_slice %395 {offsets = [144, 0], sizes = [16, 128], strides = [1, 1]} : vector<160x128xf32> to vector<16x128xf32>
    %cst_79 = arith.constant dense<0.000000e+00> : vector<16x128xf32>
    %579 = tpu.matmul %577, %384, %cst_79 {dimension_numbers = #tpu.dot_dimension_numbers<[1], [0], [0], [1], [0, 0, 1, 1], [], []>} : vector<16x32xf32>, vector<32x128xf32>, vector<16x128xf32> -> vector<16x128xf32>
    %580 = arith.addf %578, %579 : vector<16x128xf32>
    %581 = arith.mulf %580, %378 : vector<16x128xf32>
    %582 = arith.negf %581 : vector<16x128xf32>
    %583 = math.exp %582 : vector<16x128xf32>
    %cst_80 = arith.constant 1.000000e+00 : f32
    %584 = vector.broadcast %cst_80 : f32 to vector<16x128xf32>
    %585 = arith.addf %584, %583 : vector<16x128xf32>
    %586 = arith.divf %584, %585 : vector<16x128xf32>
    %587 = arith.mulf %586, %378 : vector<16x128xf32>
    %588 = arith.addf %587, %381 : vector<16x128xf32>
    %589 = vector.extract_strided_slice %588 {offsets = [0, 0], sizes = [16, 32], strides = [1, 1]} : vector<16x128xf32> to vector<16x32xf32>
    %590 = vector.extract_strided_slice %588 {offsets = [0, 32], sizes = [16, 32], strides = [1, 1]} : vector<16x128xf32> to vector<16x32xf32>
    %591 = vector.extract_strided_slice %588 {offsets = [0, 64], sizes = [16, 32], strides = [1, 1]} : vector<16x128xf32> to vector<16x32xf32>
    %592 = vector.extract_strided_slice %588 {offsets = [0, 96], sizes = [16, 32], strides = [1, 1]} : vector<16x128xf32> to vector<16x32xf32>
    %593 = arith.mulf %590, %575 : vector<16x32xf32>
    %594 = arith.mulf %589, %591 : vector<16x32xf32>
    %595 = arith.addf %593, %594 : vector<16x32xf32>
    %596 = math.tanh %595 : vector<16x32xf32>
    %597 = arith.mulf %592, %596 : vector<16x32xf32>
    %c1_81 = arith.constant 1 : index
    %c0_82 = arith.constant 0 : index
    %c0_83 = arith.constant 0 : index
    %598 = vector.load %arg2[%c1_81, %c0_82, %c0_83] : memref<2x72x128xf32, #tpu.memory_space<vmem>>, vector<1x72x128xf32>
    %599 = vector.shape_cast %598 : vector<1x72x128xf32> to vector<72x128xf32>
    %600 = vector.extract_strided_slice %599 {offsets = [32, 0], sizes = [32, 128], strides = [1, 1]} : vector<72x128xf32> to vector<32x128xf32>
    %601 = vector.extract_strided_slice %599 {offsets = [64, 0], sizes = [1, 128], strides = [1, 1]} : vector<72x128xf32> to vector<1x128xf32>
    %602 = tpu.concatenate %417, %437, %457, %477, %497, %517, %537, %557, %577, %597 in 0 : vector<16x32xf32>, vector<16x32xf32>, vector<16x32xf32>, vector<16x32xf32>, vector<16x32xf32>, vector<16x32xf32>, vector<16x32xf32>, vector<16x32xf32>, vector<16x32xf32>, vector<16x32xf32> -> vector<160x32xf32>
    %603 = vector.extract_strided_slice %599 {offsets = [0, 0], sizes = [32, 128], strides = [1, 1]} : vector<72x128xf32> to vector<32x128xf32>
    %cst_84 = arith.constant dense<0.000000e+00> : vector<160x128xf32>
    %604 = tpu.matmul %602, %603, %cst_84 {dimension_numbers = #tpu.dot_dimension_numbers<[1], [0], [0], [1], [0, 0, 1, 1], [], []>} : vector<160x32xf32>, vector<32x128xf32>, vector<160x128xf32> -> vector<160x128xf32>
    %605 = vector.broadcast %601 : vector<1x128xf32> to vector<160x128xf32>
    %606 = arith.addf %604, %605 : vector<160x128xf32>
    %cst_85 = arith.constant 0.000000e+00 : f32
    %607 = vector.broadcast %cst_85 : f32 to vector<16x32xf32>
    %cst_86 = arith.constant 0.000000e+00 : f32
    %608 = vector.broadcast %cst_86 : f32 to vector<16x32xf32>
    %609 = vector.extract_strided_slice %606 {offsets = [0, 0], sizes = [16, 128], strides = [1, 1]} : vector<160x128xf32> to vector<16x128xf32>
    %cst_87 = arith.constant dense<0.000000e+00> : vector<16x128xf32>
    %610 = tpu.matmul %607, %600, %cst_87 {dimension_numbers = #tpu.dot_dimension_numbers<[1], [0], [0], [1], [0, 0, 1, 1], [], []>} : vector<16x32xf32>, vector<32x128xf32>, vector<16x128xf32> -> vector<16x128xf32>
    %611 = arith.addf %609, %610 : vector<16x128xf32>
    %612 = arith.mulf %611, %378 : vector<16x128xf32>
    %613 = arith.negf %612 : vector<16x128xf32>
    %614 = math.exp %613 : vector<16x128xf32>
    %cst_88 = arith.constant 1.000000e+00 : f32
    %615 = vector.broadcast %cst_88 : f32 to vector<16x128xf32>
    %616 = arith.addf %615, %614 : vector<16x128xf32>
    %617 = arith.divf %615, %616 : vector<16x128xf32>
    %618 = arith.mulf %617, %378 : vector<16x128xf32>
    %619 = arith.addf %618, %381 : vector<16x128xf32>
    %620 = vector.extract_strided_slice %619 {offsets = [0, 0], sizes = [16, 32], strides = [1, 1]} : vector<16x128xf32> to vector<16x32xf32>
    %621 = vector.extract_strided_slice %619 {offsets = [0, 32], sizes = [16, 32], strides = [1, 1]} : vector<16x128xf32> to vector<16x32xf32>
    %622 = vector.extract_strided_slice %619 {offsets = [0, 64], sizes = [16, 32], strides = [1, 1]} : vector<16x128xf32> to vector<16x32xf32>
    %623 = vector.extract_strided_slice %619 {offsets = [0, 96], sizes = [16, 32], strides = [1, 1]} : vector<16x128xf32> to vector<16x32xf32>
    %624 = arith.mulf %621, %608 : vector<16x32xf32>
    %625 = arith.mulf %620, %622 : vector<16x32xf32>
    %626 = arith.addf %624, %625 : vector<16x32xf32>
    %627 = math.tanh %626 : vector<16x32xf32>
    %628 = arith.mulf %623, %627 : vector<16x32xf32>
    %629 = vector.extract_strided_slice %606 {offsets = [16, 0], sizes = [16, 128], strides = [1, 1]} : vector<160x128xf32> to vector<16x128xf32>
    %cst_89 = arith.constant dense<0.000000e+00> : vector<16x128xf32>
    %630 = tpu.matmul %628, %600, %cst_89 {dimension_numbers = #tpu.dot_dimension_numbers<[1], [0], [0], [1], [0, 0, 1, 1], [], []>} : vector<16x32xf32>, vector<32x128xf32>, vector<16x128xf32> -> vector<16x128xf32>
    %631 = arith.addf %629, %630 : vector<16x128xf32>
    %632 = arith.mulf %631, %378 : vector<16x128xf32>
    %633 = arith.negf %632 : vector<16x128xf32>
    %634 = math.exp %633 : vector<16x128xf32>
    %cst_90 = arith.constant 1.000000e+00 : f32
    %635 = vector.broadcast %cst_90 : f32 to vector<16x128xf32>
    %636 = arith.addf %635, %634 : vector<16x128xf32>
    %637 = arith.divf %635, %636 : vector<16x128xf32>
    %638 = arith.mulf %637, %378 : vector<16x128xf32>
    %639 = arith.addf %638, %381 : vector<16x128xf32>
    %640 = vector.extract_strided_slice %639 {offsets = [0, 0], sizes = [16, 32], strides = [1, 1]} : vector<16x128xf32> to vector<16x32xf32>
    %641 = vector.extract_strided_slice %639 {offsets = [0, 32], sizes = [16, 32], strides = [1, 1]} : vector<16x128xf32> to vector<16x32xf32>
    %642 = vector.extract_strided_slice %639 {offsets = [0, 64], sizes = [16, 32], strides = [1, 1]} : vector<16x128xf32> to vector<16x32xf32>
    %643 = vector.extract_strided_slice %639 {offsets = [0, 96], sizes = [16, 32], strides = [1, 1]} : vector<16x128xf32> to vector<16x32xf32>
    %644 = arith.mulf %641, %626 : vector<16x32xf32>
    %645 = arith.mulf %640, %642 : vector<16x32xf32>
    %646 = arith.addf %644, %645 : vector<16x32xf32>
    %647 = math.tanh %646 : vector<16x32xf32>
    %648 = arith.mulf %643, %647 : vector<16x32xf32>
    %649 = vector.extract_strided_slice %606 {offsets = [32, 0], sizes = [16, 128], strides = [1, 1]} : vector<160x128xf32> to vector<16x128xf32>
    %cst_91 = arith.constant dense<0.000000e+00> : vector<16x128xf32>
    %650 = tpu.matmul %648, %600, %cst_91 {dimension_numbers = #tpu.dot_dimension_numbers<[1], [0], [0], [1], [0, 0, 1, 1], [], []>} : vector<16x32xf32>, vector<32x128xf32>, vector<16x128xf32> -> vector<16x128xf32>
    %651 = arith.addf %649, %650 : vector<16x128xf32>
    %652 = arith.mulf %651, %378 : vector<16x128xf32>
    %653 = arith.negf %652 : vector<16x128xf32>
    %654 = math.exp %653 : vector<16x128xf32>
    %cst_92 = arith.constant 1.000000e+00 : f32
    %655 = vector.broadcast %cst_92 : f32 to vector<16x128xf32>
    %656 = arith.addf %655, %654 : vector<16x128xf32>
    %657 = arith.divf %655, %656 : vector<16x128xf32>
    %658 = arith.mulf %657, %378 : vector<16x128xf32>
    %659 = arith.addf %658, %381 : vector<16x128xf32>
    %660 = vector.extract_strided_slice %659 {offsets = [0, 0], sizes = [16, 32], strides = [1, 1]} : vector<16x128xf32> to vector<16x32xf32>
    %661 = vector.extract_strided_slice %659 {offsets = [0, 32], sizes = [16, 32], strides = [1, 1]} : vector<16x128xf32> to vector<16x32xf32>
    %662 = vector.extract_strided_slice %659 {offsets = [0, 64], sizes = [16, 32], strides = [1, 1]} : vector<16x128xf32> to vector<16x32xf32>
    %663 = vector.extract_strided_slice %659 {offsets = [0, 96], sizes = [16, 32], strides = [1, 1]} : vector<16x128xf32> to vector<16x32xf32>
    %664 = arith.mulf %661, %646 : vector<16x32xf32>
    %665 = arith.mulf %660, %662 : vector<16x32xf32>
    %666 = arith.addf %664, %665 : vector<16x32xf32>
    %667 = math.tanh %666 : vector<16x32xf32>
    %668 = arith.mulf %663, %667 : vector<16x32xf32>
    %669 = vector.extract_strided_slice %606 {offsets = [48, 0], sizes = [16, 128], strides = [1, 1]} : vector<160x128xf32> to vector<16x128xf32>
    %cst_93 = arith.constant dense<0.000000e+00> : vector<16x128xf32>
    %670 = tpu.matmul %668, %600, %cst_93 {dimension_numbers = #tpu.dot_dimension_numbers<[1], [0], [0], [1], [0, 0, 1, 1], [], []>} : vector<16x32xf32>, vector<32x128xf32>, vector<16x128xf32> -> vector<16x128xf32>
    %671 = arith.addf %669, %670 : vector<16x128xf32>
    %672 = arith.mulf %671, %378 : vector<16x128xf32>
    %673 = arith.negf %672 : vector<16x128xf32>
    %674 = math.exp %673 : vector<16x128xf32>
    %cst_94 = arith.constant 1.000000e+00 : f32
    %675 = vector.broadcast %cst_94 : f32 to vector<16x128xf32>
    %676 = arith.addf %675, %674 : vector<16x128xf32>
    %677 = arith.divf %675, %676 : vector<16x128xf32>
    %678 = arith.mulf %677, %378 : vector<16x128xf32>
    %679 = arith.addf %678, %381 : vector<16x128xf32>
    %680 = vector.extract_strided_slice %679 {offsets = [0, 0], sizes = [16, 32], strides = [1, 1]} : vector<16x128xf32> to vector<16x32xf32>
    %681 = vector.extract_strided_slice %679 {offsets = [0, 32], sizes = [16, 32], strides = [1, 1]} : vector<16x128xf32> to vector<16x32xf32>
    %682 = vector.extract_strided_slice %679 {offsets = [0, 64], sizes = [16, 32], strides = [1, 1]} : vector<16x128xf32> to vector<16x32xf32>
    %683 = vector.extract_strided_slice %679 {offsets = [0, 96], sizes = [16, 32], strides = [1, 1]} : vector<16x128xf32> to vector<16x32xf32>
    %684 = arith.mulf %681, %666 : vector<16x32xf32>
    %685 = arith.mulf %680, %682 : vector<16x32xf32>
    %686 = arith.addf %684, %685 : vector<16x32xf32>
    %687 = math.tanh %686 : vector<16x32xf32>
    %688 = arith.mulf %683, %687 : vector<16x32xf32>
    %689 = vector.extract_strided_slice %606 {offsets = [64, 0], sizes = [16, 128], strides = [1, 1]} : vector<160x128xf32> to vector<16x128xf32>
    %cst_95 = arith.constant dense<0.000000e+00> : vector<16x128xf32>
    %690 = tpu.matmul %688, %600, %cst_95 {dimension_numbers = #tpu.dot_dimension_numbers<[1], [0], [0], [1], [0, 0, 1, 1], [], []>} : vector<16x32xf32>, vector<32x128xf32>, vector<16x128xf32> -> vector<16x128xf32>
    %691 = arith.addf %689, %690 : vector<16x128xf32>
    %692 = arith.mulf %691, %378 : vector<16x128xf32>
    %693 = arith.negf %692 : vector<16x128xf32>
    %694 = math.exp %693 : vector<16x128xf32>
    %cst_96 = arith.constant 1.000000e+00 : f32
    %695 = vector.broadcast %cst_96 : f32 to vector<16x128xf32>
    %696 = arith.addf %695, %694 : vector<16x128xf32>
    %697 = arith.divf %695, %696 : vector<16x128xf32>
    %698 = arith.mulf %697, %378 : vector<16x128xf32>
    %699 = arith.addf %698, %381 : vector<16x128xf32>
    %700 = vector.extract_strided_slice %699 {offsets = [0, 0], sizes = [16, 32], strides = [1, 1]} : vector<16x128xf32> to vector<16x32xf32>
    %701 = vector.extract_strided_slice %699 {offsets = [0, 32], sizes = [16, 32], strides = [1, 1]} : vector<16x128xf32> to vector<16x32xf32>
    %702 = vector.extract_strided_slice %699 {offsets = [0, 64], sizes = [16, 32], strides = [1, 1]} : vector<16x128xf32> to vector<16x32xf32>
    %703 = vector.extract_strided_slice %699 {offsets = [0, 96], sizes = [16, 32], strides = [1, 1]} : vector<16x128xf32> to vector<16x32xf32>
    %704 = arith.mulf %701, %686 : vector<16x32xf32>
    %705 = arith.mulf %700, %702 : vector<16x32xf32>
    %706 = arith.addf %704, %705 : vector<16x32xf32>
    %707 = math.tanh %706 : vector<16x32xf32>
    %708 = arith.mulf %703, %707 : vector<16x32xf32>
    %709 = vector.extract_strided_slice %606 {offsets = [80, 0], sizes = [16, 128], strides = [1, 1]} : vector<160x128xf32> to vector<16x128xf32>
    %cst_97 = arith.constant dense<0.000000e+00> : vector<16x128xf32>
    %710 = tpu.matmul %708, %600, %cst_97 {dimension_numbers = #tpu.dot_dimension_numbers<[1], [0], [0], [1], [0, 0, 1, 1], [], []>} : vector<16x32xf32>, vector<32x128xf32>, vector<16x128xf32> -> vector<16x128xf32>
    %711 = arith.addf %709, %710 : vector<16x128xf32>
    %712 = arith.mulf %711, %378 : vector<16x128xf32>
    %713 = arith.negf %712 : vector<16x128xf32>
    %714 = math.exp %713 : vector<16x128xf32>
    %cst_98 = arith.constant 1.000000e+00 : f32
    %715 = vector.broadcast %cst_98 : f32 to vector<16x128xf32>
    %716 = arith.addf %715, %714 : vector<16x128xf32>
    %717 = arith.divf %715, %716 : vector<16x128xf32>
    %718 = arith.mulf %717, %378 : vector<16x128xf32>
    %719 = arith.addf %718, %381 : vector<16x128xf32>
    %720 = vector.extract_strided_slice %719 {offsets = [0, 0], sizes = [16, 32], strides = [1, 1]} : vector<16x128xf32> to vector<16x32xf32>
    %721 = vector.extract_strided_slice %719 {offsets = [0, 32], sizes = [16, 32], strides = [1, 1]} : vector<16x128xf32> to vector<16x32xf32>
    %722 = vector.extract_strided_slice %719 {offsets = [0, 64], sizes = [16, 32], strides = [1, 1]} : vector<16x128xf32> to vector<16x32xf32>
    %723 = vector.extract_strided_slice %719 {offsets = [0, 96], sizes = [16, 32], strides = [1, 1]} : vector<16x128xf32> to vector<16x32xf32>
    %724 = arith.mulf %721, %706 : vector<16x32xf32>
    %725 = arith.mulf %720, %722 : vector<16x32xf32>
    %726 = arith.addf %724, %725 : vector<16x32xf32>
    %727 = math.tanh %726 : vector<16x32xf32>
    %728 = arith.mulf %723, %727 : vector<16x32xf32>
    %729 = vector.extract_strided_slice %606 {offsets = [96, 0], sizes = [16, 128], strides = [1, 1]} : vector<160x128xf32> to vector<16x128xf32>
    %cst_99 = arith.constant dense<0.000000e+00> : vector<16x128xf32>
    %730 = tpu.matmul %728, %600, %cst_99 {dimension_numbers = #tpu.dot_dimension_numbers<[1], [0], [0], [1], [0, 0, 1, 1], [], []>} : vector<16x32xf32>, vector<32x128xf32>, vector<16x128xf32> -> vector<16x128xf32>
    %731 = arith.addf %729, %730 : vector<16x128xf32>
    %732 = arith.mulf %731, %378 : vector<16x128xf32>
    %733 = arith.negf %732 : vector<16x128xf32>
    %734 = math.exp %733 : vector<16x128xf32>
    %cst_100 = arith.constant 1.000000e+00 : f32
    %735 = vector.broadcast %cst_100 : f32 to vector<16x128xf32>
    %736 = arith.addf %735, %734 : vector<16x128xf32>
    %737 = arith.divf %735, %736 : vector<16x128xf32>
    %738 = arith.mulf %737, %378 : vector<16x128xf32>
    %739 = arith.addf %738, %381 : vector<16x128xf32>
    %740 = vector.extract_strided_slice %739 {offsets = [0, 0], sizes = [16, 32], strides = [1, 1]} : vector<16x128xf32> to vector<16x32xf32>
    %741 = vector.extract_strided_slice %739 {offsets = [0, 32], sizes = [16, 32], strides = [1, 1]} : vector<16x128xf32> to vector<16x32xf32>
    %742 = vector.extract_strided_slice %739 {offsets = [0, 64], sizes = [16, 32], strides = [1, 1]} : vector<16x128xf32> to vector<16x32xf32>
    %743 = vector.extract_strided_slice %739 {offsets = [0, 96], sizes = [16, 32], strides = [1, 1]} : vector<16x128xf32> to vector<16x32xf32>
    %744 = arith.mulf %741, %726 : vector<16x32xf32>
    %745 = arith.mulf %740, %742 : vector<16x32xf32>
    %746 = arith.addf %744, %745 : vector<16x32xf32>
    %747 = math.tanh %746 : vector<16x32xf32>
    %748 = arith.mulf %743, %747 : vector<16x32xf32>
    %749 = vector.extract_strided_slice %606 {offsets = [112, 0], sizes = [16, 128], strides = [1, 1]} : vector<160x128xf32> to vector<16x128xf32>
    %cst_101 = arith.constant dense<0.000000e+00> : vector<16x128xf32>
    %750 = tpu.matmul %748, %600, %cst_101 {dimension_numbers = #tpu.dot_dimension_numbers<[1], [0], [0], [1], [0, 0, 1, 1], [], []>} : vector<16x32xf32>, vector<32x128xf32>, vector<16x128xf32> -> vector<16x128xf32>
    %751 = arith.addf %749, %750 : vector<16x128xf32>
    %752 = arith.mulf %751, %378 : vector<16x128xf32>
    %753 = arith.negf %752 : vector<16x128xf32>
    %754 = math.exp %753 : vector<16x128xf32>
    %cst_102 = arith.constant 1.000000e+00 : f32
    %755 = vector.broadcast %cst_102 : f32 to vector<16x128xf32>
    %756 = arith.addf %755, %754 : vector<16x128xf32>
    %757 = arith.divf %755, %756 : vector<16x128xf32>
    %758 = arith.mulf %757, %378 : vector<16x128xf32>
    %759 = arith.addf %758, %381 : vector<16x128xf32>
    %760 = vector.extract_strided_slice %759 {offsets = [0, 0], sizes = [16, 32], strides = [1, 1]} : vector<16x128xf32> to vector<16x32xf32>
    %761 = vector.extract_strided_slice %759 {offsets = [0, 32], sizes = [16, 32], strides = [1, 1]} : vector<16x128xf32> to vector<16x32xf32>
    %762 = vector.extract_strided_slice %759 {offsets = [0, 64], sizes = [16, 32], strides = [1, 1]} : vector<16x128xf32> to vector<16x32xf32>
    %763 = vector.extract_strided_slice %759 {offsets = [0, 96], sizes = [16, 32], strides = [1, 1]} : vector<16x128xf32> to vector<16x32xf32>
    %764 = arith.mulf %761, %746 : vector<16x32xf32>
    %765 = arith.mulf %760, %762 : vector<16x32xf32>
    %766 = arith.addf %764, %765 : vector<16x32xf32>
    %767 = math.tanh %766 : vector<16x32xf32>
    %768 = arith.mulf %763, %767 : vector<16x32xf32>
    %769 = vector.extract_strided_slice %606 {offsets = [128, 0], sizes = [16, 128], strides = [1, 1]} : vector<160x128xf32> to vector<16x128xf32>
    %cst_103 = arith.constant dense<0.000000e+00> : vector<16x128xf32>
    %770 = tpu.matmul %768, %600, %cst_103 {dimension_numbers = #tpu.dot_dimension_numbers<[1], [0], [0], [1], [0, 0, 1, 1], [], []>} : vector<16x32xf32>, vector<32x128xf32>, vector<16x128xf32> -> vector<16x128xf32>
    %771 = arith.addf %769, %770 : vector<16x128xf32>
    %772 = arith.mulf %771, %378 : vector<16x128xf32>
    %773 = arith.negf %772 : vector<16x128xf32>
    %774 = math.exp %773 : vector<16x128xf32>
    %cst_104 = arith.constant 1.000000e+00 : f32
    %775 = vector.broadcast %cst_104 : f32 to vector<16x128xf32>
    %776 = arith.addf %775, %774 : vector<16x128xf32>
    %777 = arith.divf %775, %776 : vector<16x128xf32>
    %778 = arith.mulf %777, %378 : vector<16x128xf32>
    %779 = arith.addf %778, %381 : vector<16x128xf32>
    %780 = vector.extract_strided_slice %779 {offsets = [0, 0], sizes = [16, 32], strides = [1, 1]} : vector<16x128xf32> to vector<16x32xf32>
    %781 = vector.extract_strided_slice %779 {offsets = [0, 32], sizes = [16, 32], strides = [1, 1]} : vector<16x128xf32> to vector<16x32xf32>
    %782 = vector.extract_strided_slice %779 {offsets = [0, 64], sizes = [16, 32], strides = [1, 1]} : vector<16x128xf32> to vector<16x32xf32>
    %783 = vector.extract_strided_slice %779 {offsets = [0, 96], sizes = [16, 32], strides = [1, 1]} : vector<16x128xf32> to vector<16x32xf32>
    %784 = arith.mulf %781, %766 : vector<16x32xf32>
    %785 = arith.mulf %780, %782 : vector<16x32xf32>
    %786 = arith.addf %784, %785 : vector<16x32xf32>
    %787 = math.tanh %786 : vector<16x32xf32>
    %788 = arith.mulf %783, %787 : vector<16x32xf32>
    %789 = vector.extract_strided_slice %606 {offsets = [144, 0], sizes = [16, 128], strides = [1, 1]} : vector<160x128xf32> to vector<16x128xf32>
    %cst_105 = arith.constant dense<0.000000e+00> : vector<16x128xf32>
    %790 = tpu.matmul %788, %600, %cst_105 {dimension_numbers = #tpu.dot_dimension_numbers<[1], [0], [0], [1], [0, 0, 1, 1], [], []>} : vector<16x32xf32>, vector<32x128xf32>, vector<16x128xf32> -> vector<16x128xf32>
    %791 = arith.addf %789, %790 : vector<16x128xf32>
    %792 = arith.mulf %791, %378 : vector<16x128xf32>
    %793 = arith.negf %792 : vector<16x128xf32>
    %794 = math.exp %793 : vector<16x128xf32>
    %cst_106 = arith.constant 1.000000e+00 : f32
    %795 = vector.broadcast %cst_106 : f32 to vector<16x128xf32>
    %796 = arith.addf %795, %794 : vector<16x128xf32>
    %797 = arith.divf %795, %796 : vector<16x128xf32>
    %798 = arith.mulf %797, %378 : vector<16x128xf32>
    %799 = arith.addf %798, %381 : vector<16x128xf32>
    %800 = vector.extract_strided_slice %799 {offsets = [0, 0], sizes = [16, 32], strides = [1, 1]} : vector<16x128xf32> to vector<16x32xf32>
    %801 = vector.extract_strided_slice %799 {offsets = [0, 32], sizes = [16, 32], strides = [1, 1]} : vector<16x128xf32> to vector<16x32xf32>
    %802 = vector.extract_strided_slice %799 {offsets = [0, 64], sizes = [16, 32], strides = [1, 1]} : vector<16x128xf32> to vector<16x32xf32>
    %803 = vector.extract_strided_slice %799 {offsets = [0, 96], sizes = [16, 32], strides = [1, 1]} : vector<16x128xf32> to vector<16x32xf32>
    %804 = arith.mulf %801, %786 : vector<16x32xf32>
    %805 = arith.mulf %800, %802 : vector<16x32xf32>
    %806 = arith.addf %804, %805 : vector<16x32xf32>
    %807 = math.tanh %806 : vector<16x32xf32>
    %808 = arith.mulf %803, %807 : vector<16x32xf32>
    %809 = tpu.concatenate %597, %808 in 0 : vector<16x32xf32>, vector<16x32xf32> -> vector<32x32xf32>
    %c1_107 = arith.constant 1 : index
    %c0_108 = arith.constant 0 : index
    %c0_109 = arith.constant 0 : index
    %810 = vector.load %arg3[%c1_107, %c0_108, %c0_109] : memref<2x40x128xf32, #tpu.memory_space<vmem>>, vector<1x40x128xf32>
    %811 = vector.shape_cast %810 : vector<1x40x128xf32> to vector<40x128xf32>
    %812 = vector.extract_strided_slice %811 {offsets = [0, 0], sizes = [32, 128], strides = [1, 1]} : vector<40x128xf32> to vector<32x128xf32>
    %cst_110 = arith.constant dense<0.000000e+00> : vector<32x128xf32>
    %813 = tpu.matmul %809, %812, %cst_110 {dimension_numbers = #tpu.dot_dimension_numbers<[1], [0], [0], [1], [0, 0, 1, 1], [], []>} : vector<32x32xf32>, vector<32x128xf32>, vector<32x128xf32> -> vector<32x128xf32>
    %814 = vector.extract_strided_slice %811 {offsets = [32, 0], sizes = [1, 128], strides = [1, 1]} : vector<40x128xf32> to vector<1x128xf32>
    %815 = vector.broadcast %814 : vector<1x128xf32> to vector<32x128xf32>
    %816 = arith.addf %813, %815 : vector<32x128xf32>
    %c0_111 = arith.constant 0 : index
    %c0_112 = arith.constant 0 : index
    %817 = vector.load %arg4[%c0_111, %c0_112] : memref<32x128xf32, #tpu.memory_space<vmem>>, vector<32x128xf32>
    tpu.vector_store %arg4[%c0_111, %c0_112], %816 {strides = array<i32>} : memref<32x128xf32, #tpu.memory_space<vmem>>, vector<32x128xf32>,
    return
  }
}

</mosaic_0001>

<bundles_post_ra>
// kernel: lstm_model_forward.1
= control target key start
LH: loop header
LB: loop body
LE: loop exit
PB: predicated region body
PF: predicated region fallthrough
CT: control target
= control target key end

     0   :  { %v18_v0 = vlaneseq  ;;  %v6770_v1 = vmov 0.0|0.0   ;;  %vm6771_vm0 = vmmov 0   ;;  %v6772_v5 = vmov 0.0   ;;  %s6774_s28 = smov 64   ;;  %s6775_s29 = smov 32   ;;  %s8012_s1 = inlined_call_operand.vmem [shape: f32[2,72,128], index: 1, kind: input, shape index: {}]   ;;  %s8013_s0 = inlined_call_operand.vmem [shape: f32[8,8], index: 0, kind: input, shape index: {}]   ;;  %s8014_s3 = inlined_call_operand.vmem [shape: f32[2,40,128], index: 3, kind: input, shape index: {}]   ;;  %s8015_s2 = inlined_call_operand.vmem [shape: f32[2,72,128], index: 2, kind: input, shape index: {}]   ;;  %s8016_s4 = inlined_call_operand.vmem [shape: f32[32,128], index: 4, kind: output, shape index: {}]  }
   0x1   :  { %6100 = vmatprep.subr.bf16.mxu0 %v6770_v1  ;;  %v26_v2 = vld [vmem:[%s8012_s1 + $0x20] sm:$0xff]  ;;  %v27_v3 = vld [vmem:[%s8012_s1 + $0x28] sm:$0xff]  ;;  %v28_v4 = vld [vmem:[%s8012_s1 + $0x30] sm:$0xff]  ;;  %5629 = vmatprep.mubr.msk.f32.mxu0 %vm6771_vm0, %v6772_v5  ;;  %v6773_v21 = vmov 1.0   ;;  %vm111_vm4 = vcmask 261120  }
   0x2   :  { %v6813_v6 = vpack.c.bf16 %v27_v3, %v26_v2  ;;  %v29_v7 = vld [vmem:[%s8012_s1 + $0x38] sm:$0xff]  ;;  %v6818_v8 = vshrl.u32 %v18_v0, 7  ;;  %6118 = vmatprep.subr.bf16.mxu1 %v6770_v1  ;;  %5662 = vmatprep.mubr.msk.f32.mxu1 %vm6771_vm0, %v6772_v5  ;;  %v6826_v9 = vld [vmem:[%s8013_s0] sm:$0xff]  ;;  %v19_v15 = vand.u32 127, %v18_v0 }
   0x3   :  { %v6829_v10 = vpack.c.bf16 %v29_v7, %v28_v4  ;;  %v25_v13 = vld [vmem:[%s8012_s1] sm:$0xff] }
   0x4   :  { %6102 = vmatpush3.bf16.msra.mxu0 %v6813_v6  ;;  %v6832_v11 = vsub.s32 0, %v6818_v8  ;;  %6120 = vmatpush3.bf16.msra.mxu1 %v6813_v6  ;;  %v30_v17 = vld [vmem:[%s8012_s1 + $0x40] sm:$0xff]  ;;  %vm20_vm1 = vcmp.ge.s32.totalorder %v19_v15, 64  ;;  %vm21_vm2 = vcmp.lt.s32.totalorder %v19_v15, 96  ;;  %v6876_v40 = vsub.s32 1, %v6818_v8 }
   0x5   :  { %6103 = vmatprep.subr.bf16.mxu0 %v6770_v1  ;;  %6121 = vmatprep.subr.bf16.mxu1 %v6770_v1  ;;  %vm22_vm3 = vmand %vm20_vm1, %vm21_vm2  ;;  %v47_v0 = vsub.s32 2, %v6818_v8 }
   0x6   :  { %v34_v12 = vrot.slane %v6826_v9, %v6832_v11  ;;  %v6854_v14 = vrot.slane %v25_v13, %v6832_v11  ;;  %v6861_v19 = vrot.slane %v30_v17, %v6832_v11  ;;  %v6864_v22 = vsel %vm22_vm3, 2.0, %v6773_v21 }
   0x7   :  { %v6868_v31 = vsel %vm22_vm3, -1.0, %v6772_v5  ;;  %v41_v41 = vrot.slane %v6826_v9, %v6876_v40  ;;  %v48_v2 = vrot.slane %v6826_v9, %v47_v0 }
   0x8   :  { %6105 = vmatpush3.bf16.msra.mxu0 %v6829_v10  ;;  %36 = vbcast.lane.b32.xlu0 %v34_v12, 256 }
   0x9   :  { %6106 = vmatprep.subr.bf16.mxu0 %v6770_v1  ;;  %6123 = vmatpush3.bf16.msra.mxu1 %v6829_v10 }
   0xa   :  { %6130 = vmatprep.subr.bf16.mxu1 %v6770_v1 }
   0xb   :  { %5630 = vmatmul.mubr.f32.vlgmr.msra.gmra.mrb[0].mxu0 %v6772_v5 }
   0xc   :  { %6108 = vmatpush3.bf16.msra.mxu0 %v6813_v6  ;;  %5640 = vmatprep.mubr.msk.f32.mxu0 %vm6771_vm0, %v6772_v5 }
   0xd   :  { %6109 = vmatprep.subr.bf16.mxu0 %v6770_v1 }
  0x10   :  { %6111 = vmatpush3.bf16.msra.mxu0 %v6829_v10 }
  0x11   :  { %6112 = vmatprep.subr.bf16.mxu0 %v6770_v1 }
  0x7a   :  { %v37_v16 = vpop.permute.xlu0 %36 }
  0x7b   :  { %v91_v18 = vmul.f32 %v6854_v14, %v37_v16 }
  0x7d   :  { %v103_v20 = vadd.f32 %v6861_v19, %v91_v18 }
  0xde   :  { %v181_v23 = vpop.f32.mrb[0].mxu0 }
  0xdf   :  { %v185_v24 = vadd.f32 %v181_v23, %v103_v20  ;;  %v5631_v25 = vpop.f32.mrb[1].mxu0 }
  0xe1   :  { %v186_v26 = vmul.f32 %v185_v24, %v6864_v22 }
  0xe3   :  { %v5208_v27 = vmul.f32 -1.442695, %v186_v26 }
  0xe5   :  { %6434 = vpow2.f32 %v5208_v27 }
  0xef   :  { %v6435_v28 = vpop.eup %6434 }
  0xf0   :  { %v190_v29 = vadd.f32 1.0, %v6435_v28 }
  0xf2   :  { %6436 = vrcp.f32 %v190_v29 }
  0xfc   :  { %v6437_v30 = vpop.eup %6436 }
  0xfd   :  { %v193_v32 = vmul.f32 %v6437_v30, %v6864_v22 }
  0xff   :  { %v194_v33 = vadd.f32 %v193_v32, %v6868_v31 }
 0x101   :  { %197 = vrot.lane.b32.xlu0 %v194_v33, %s6774_s28  ;;  %v195_v36 = vmul.f32 0.0, %v194_v33 }
 0x173   :  { %v198_v34 = vpop.permute.xlu0 %197 }
 0x174   :  { %v200_v35 = vmul.f32 %v198_v34, %v194_v33 }
 0x176   :  { %202 = vrot.lane.b32.xlu1 %v200_v35, %s6775_s29  ;;  %v54_v35 = vsub.s32 3, %v6818_v8 }
 0x1e8   :  { %v203_v37 = vpop.permute.xlu1 %202 }
 0x1e9   :  { %v205_v38 = vadd.f32 %v203_v37, %v195_v36  ;;  %v55_v36 = vrot.slane %v6826_v9, %v54_v35 }
 0x1eb   :  { %6438 = vtanh.f32 %v205_v38 }
 0x1f5   :  { %v6439_v39 = vpop.eup %6438 }
 0x1f6   :  { %208 = vrot.lane.b32.xlu1 %v6439_v39, %s6774_s28 }
 0x1fa   :  { %43 = vbcast.lane.b32.xlu1 %v41_v41, 256 }
 0x268   :  { %v209_v42 = vpop.permute.xlu1 %208 }
 0x269   :  { %v211_v43 = vmul.f32 %v209_v42, %v194_v33 }
 0x26b   :  { %213 = vrot.lane.b32.xlu0 %v211_v43, %s6775_s29 }
 0x26c   :  { %v44_v45 = vpop.permute.xlu1 %43 }
 0x26d   :  { %v92_v46 = vmul.f32 %v6854_v14, %v44_v45 }
 0x26f   :  { %v104_v47 = vadd.f32 %v6861_v19, %v92_v46 }
 0x2dd   :  { %v6881_v44 = vpop.permute.xlu0 %213 }
 0x2de   :  { %5641 = vmatmul.mubr.msk.f32.vlgmr.msra.gmra.mrb[2].mxu0 %vm111_vm4, %v6881_v44 }
 0x2df   :  { %6114 = vmatpush3.bf16.msra.mxu0 %v6813_v6  ;;  %5651 = vmatprep.mubr.msk.f32.mxu0 %vm6771_vm0, %v6772_v5 }
 0x2e0   :  { %6115 = vmatprep.subr.bf16.mxu0 %v6770_v1 }
 0x2e3   :  { %6117 = vmatpush3.bf16.msra.mxu0 %v6829_v10 }
 0x2e4   :  { %6124 = vmatprep.subr.bf16.mxu0 %v6770_v1 }
 0x3b1   :  { %v283_v48 = vpop.f32.mrb[2].mxu0 }
 0x3b2   :  { %v287_v49 = vadd.f32 %v283_v48, %v104_v47  ;;  %v5642_v50 = vpop.f32.mrb[3].mxu0 }
 0x3b4   :  { %v288_v51 = vmul.f32 %v287_v49, %v6864_v22 }
 0x3b6   :  { %v5210_v52 = vmul.f32 -1.442695, %v288_v51 }
 0x3b8   :  { %6440 = vpow2.f32 %v5210_v52 }
 0x3c2   :  { %v6441_v53 = vpop.eup %6440 }
 0x3c3   :  { %v292_v54 = vadd.f32 1.0, %v6441_v53 }
 0x3c5   :  { %6442 = vrcp.f32 %v292_v54 }
 0x3cf   :  { %v6443_v55 = vpop.eup %6442 }
 0x3d0   :  { %v295_v56 = vmul.f32 %v6443_v55, %v6864_v22 }
 0x3d2   :  { %v296_v57 = vadd.f32 %v295_v56, %v6868_v31 }
 0x3d4   :  { %299 = vrot.lane.b32.xlu0 %v296_v57, %s6774_s28  ;;  %v297_v60 = vmul.f32 %v296_v57, %v205_v38 }
 0x446   :  { %v300_v58 = vpop.permute.xlu0 %299 }
 0x447   :  { %v302_v59 = vmul.f32 %v300_v58, %v296_v57 }
 0x449   :  { %304 = vrot.lane.b32.xlu1 %v302_v59, %s6775_s29 }
 0x4bb   :  { %v305_v61 = vpop.permute.xlu1 %304 }
 0x4bc   :  { %v307_v62 = vadd.f32 %v305_v61, %v297_v60  ;;  %v61_v61 = vsub.s32 4, %v6818_v8 }
 0x4be   :  { %6444 = vtanh.f32 %v307_v62 }
 0x4c8   :  { %v6445_v63 = vpop.eup %6444 }
 0x4c9   :  { %310 = vrot.lane.b32.xlu0 %v6445_v63, %s6774_s28 }
 0x4cd   :  { %50 = vbcast.lane.b32.xlu0 %v48_v2, 256 }
 0x53b   :  { %v311_v3 = vpop.permute.xlu0 %310 }
 0x53c   :  { %v313_v4 = vmul.f32 %v311_v3, %v296_v57 }
 0x53e   :  { %315 = vrot.lane.b32.xlu1 %v313_v4, %s6775_s29 }
 0x53f   :  { %v51_v12 = vpop.permute.xlu0 %50 }
 0x540   :  { %v93_v13 = vmul.f32 %v6854_v14, %v51_v12 }
 0x542   :  { %v105_v15 = vadd.f32 %v6861_v19, %v93_v13 }
 0x5b0   :  { %v6904_v7 = vpop.permute.xlu1 %315 }
 0x5b1   :  { %5652 = vmatmul.mubr.msk.f32.vlgmr.msra.gmra.mrb[4].mxu0 %vm111_vm4, %v6904_v7 }
 0x5b2   :  { %6126 = vmatpush3.bf16.msra.mxu0 %v6813_v6  ;;  %5673 = vmatprep.mubr.msk.f32.mxu0 %vm6771_vm0, %v6772_v5 }
 0x5b3   :  { %6127 = vmatprep.subr.bf16.mxu0 %v6770_v1 }
 0x5b6   :  { %6129 = vmatpush3.bf16.msra.mxu0 %v6829_v10 }
 0x5b7   :  { %6136 = vmatprep.subr.bf16.mxu0 %v6770_v1 }
 0x684   :  { %v385_v16 = vpop.f32.mrb[4].mxu0 }
 0x685   :  { %v389_v17 = vadd.f32 %v385_v16, %v105_v15  ;;  %v5653_v18 = vpop.f32.mrb[5].mxu0 }
 0x687   :  { %v390_v20 = vmul.f32 %v389_v17, %v6864_v22 }
 0x689   :  { %v5212_v21 = vmul.f32 -1.442695, %v390_v20 }
 0x68b   :  { %6446 = vpow2.f32 %v5212_v21 }
 0x695   :  { %v6447_v23 = vpop.eup %6446 }
 0x696   :  { %v394_v24 = vadd.f32 1.0, %v6447_v23 }
 0x698   :  { %6448 = vrcp.f32 %v394_v24 }
 0x6a2   :  { %v6449_v25 = vpop.eup %6448 }
 0x6a3   :  { %v397_v26 = vmul.f32 %v6449_v25, %v6864_v22 }
 0x6a5   :  { %v398_v27 = vadd.f32 %v397_v26, %v6868_v31 }
 0x6a7   :  { %401 = vrot.lane.b32.xlu1 %v398_v27, %s6774_s28  ;;  %v399_v30 = vmul.f32 %v398_v27, %v307_v62  ;;  %v62_v62 = vrot.slane %v6826_v9, %v61_v61 }
 0x719   :  { %v402_v28 = vpop.permute.xlu1 %401 }
 0x71a   :  { %v404_v29 = vmul.f32 %v402_v28, %v398_v27 }
 0x71c   :  { %406 = vrot.lane.b32.xlu0 %v404_v29, %s6775_s29 }
 0x78e   :  { %v407_v32 = vpop.permute.xlu0 %406 }
 0x78f   :  { %v409_v33 = vadd.f32 %v407_v32, %v399_v30 }
 0x791   :  { %6450 = vtanh.f32 %v409_v33 }
 0x79b   :  { %v6451_v34 = vpop.eup %6450 }
 0x79c   :  { %412 = vrot.lane.b32.xlu1 %v6451_v34, %s6774_s28  ;;  %v68_v34 = vsub.s32 5, %v6818_v8 }
 0x7a0   :  { %57 = vbcast.lane.b32.xlu1 %v55_v36, 256  ;;  %v69_v36 = vrot.slane %v6826_v9, %v68_v34 }
 0x80e   :  { %v413_v37 = vpop.permute.xlu1 %412 }
 0x80f   :  { %v415_v38 = vmul.f32 %v413_v37, %v398_v27 }
 0x811   :  { %417 = vrot.lane.b32.xlu0 %v415_v38, %s6775_s29 }
 0x812   :  { %v58_v41 = vpop.permute.xlu1 %57 }
 0x813   :  { %v94_v42 = vmul.f32 %v6854_v14, %v58_v41 }
 0x815   :  { %v106_v43 = vadd.f32 %v6861_v19, %v94_v42 }
 0x883   :  { %v6927_v39 = vpop.permute.xlu0 %417 }
 0x884   :  { %5663 = vmatmul.mubr.msk.f32.vlgmr.msra.gmra.mrb[0].mxu1 %vm111_vm4, %v6927_v39 }
 0x885   :  { %6132 = vmatpush3.bf16.msra.mxu1 %v6813_v6  ;;  %5684 = vmatprep.mubr.msk.f32.mxu1 %vm6771_vm0, %v6772_v5 }
 0x886   :  { %6133 = vmatprep.subr.bf16.mxu1 %v6770_v1 }
 0x889   :  { %6135 = vmatpush3.bf16.msra.mxu1 %v6829_v10 }
 0x88a   :  { %6142 = vmatprep.subr.bf16.mxu1 %v6770_v1 }
 0x957   :  { %v487_v45 = vpop.f32.mrb[0].mxu1 }
 0x958   :  { %v491_v46 = vadd.f32 %v487_v45, %v106_v43  ;;  %v5664_v47 = vpop.f32.mrb[1].mxu1 }
 0x95a   :  { %v492_v48 = vmul.f32 %v491_v46, %v6864_v22 }
 0x95c   :  { %v5214_v49 = vmul.f32 -1.442695, %v492_v48 }
 0x95e   :  { %6452 = vpow2.f32 %v5214_v49 }
 0x968   :  { %v6453_v50 = vpop.eup %6452 }
 0x969   :  { %v496_v51 = vadd.f32 1.0, %v6453_v50 }
 0x96b   :  { %6454 = vrcp.f32 %v496_v51 }
 0x975   :  { %v6455_v52 = vpop.eup %6454 }
 0x976   :  { %v499_v53 = vmul.f32 %v6455_v52, %v6864_v22 }
 0x978   :  { %v500_v54 = vadd.f32 %v499_v53, %v6868_v31 }
 0x97a   :  { %503 = vrot.lane.b32.xlu0 %v500_v54, %s6774_s28  ;;  %v501_v57 = vmul.f32 %v500_v54, %v409_v33 }
 0x9ec   :  { %v504_v55 = vpop.permute.xlu0 %503 }
 0x9ed   :  { %v506_v56 = vmul.f32 %v504_v55, %v500_v54 }
 0x9ef   :  { %508 = vrot.lane.b32.xlu1 %v506_v56, %s6775_s29 }
 0xa61   :  { %v509_v58 = vpop.permute.xlu1 %508 }
 0xa62   :  { %v511_v59 = vadd.f32 %v509_v58, %v501_v57 }
 0xa64   :  { %6456 = vtanh.f32 %v511_v59 }
 0xa6e   :  { %v6457_v60 = vpop.eup %6456 }
 0xa6f   :  { %514 = vrot.lane.b32.xlu0 %v6457_v60, %s6774_s28  ;;  %v5224_v60 = vld [vmem:[%s8012_s1 + $0x50] sm:$0xff] }
 0xa73   :  { %64 = vbcast.lane.b32.xlu0 %v62_v62, 256 }
 0xae1   :  { %v515_v63 = vpop.permute.xlu0 %514 }
 0xae2   :  { %v517_v2 = vmul.f32 %v515_v63, %v500_v54 }
 0xae4   :  { %519 = vrot.lane.b32.xlu1 %v517_v2, %s6775_s29 }
 0xae5   :  { %v65_v4 = vpop.permute.xlu0 %64 }
 0xae6   :  { %v95_v12 = vmul.f32 %v6854_v14, %v65_v4 }
 0xae8   :  { %v107_v13 = vadd.f32 %v6861_v19, %v95_v12  ;;  %v75_v12 = vsub.s32 6, %v6818_v8 }
 0xb56   :  { %v6950_v3 = vpop.permute.xlu1 %519 }
 0xb57   :  { %5674 = vmatmul.mubr.msk.f32.vlgmr.msra.gmra.mrb[6].mxu0 %vm111_vm4, %v6950_v3 }
 0xb58   :  { %6138 = vmatpush3.bf16.msra.mxu0 %v6813_v6  ;;  %5695 = vmatprep.mubr.msk.f32.mxu0 %vm6771_vm0, %v6772_v5 }
 0xb59   :  { %6139 = vmatprep.subr.bf16.mxu0 %v6770_v1 }
 0xb5c   :  { %6141 = vmatpush3.bf16.msra.mxu0 %v6829_v10 }
 0xc2a   :  { %v589_v15 = vpop.f32.mrb[6].mxu0 }
 0xc2b   :  { %v593_v16 = vadd.f32 %v589_v15, %v107_v13  ;;  %v5675_v17 = vpop.f32.mrb[7].mxu0  ;;  %v76_v13 = vrot.slane %v6826_v9, %v75_v12  ;;  %v5225_v15 = vld [vmem:[%s8012_s1 + $0x58] sm:$0xff] }
 0xc2d   :  { %v594_v18 = vmul.f32 %v593_v16, %v6864_v22  ;;  %v5226_v16 = vld [vmem:[%s8012_s1 + $0x60] sm:$0xff] }
 0xc2e   :  { %v6152_v17 = vpack.c.bf16 %v5226_v16, %v5225_v15 }
 0xc2f   :  { %v5216_v20 = vmul.f32 -1.442695, %v594_v18 }
 0xc31   :  { %6458 = vpow2.f32 %v5216_v20 }
 0xc3b   :  { %v6459_v21 = vpop.eup %6458 }
 0xc3c   :  { %v598_v23 = vadd.f32 1.0, %v6459_v21 }
 0xc3e   :  { %6460 = vrcp.f32 %v598_v23 }
 0xc48   :  { %v6461_v24 = vpop.eup %6460 }
 0xc49   :  { %v601_v25 = vmul.f32 %v6461_v24, %v6864_v22 }
 0xc4b   :  { %v602_v26 = vadd.f32 %v601_v25, %v6868_v31 }
 0xc4d   :  { %605 = vrot.lane.b32.xlu1 %v602_v26, %s6774_s28  ;;  %v603_v29 = vmul.f32 %v602_v26, %v511_v59  ;;  %v5223_v59 = vld [vmem:[%s8012_s1 + $0x48] sm:$0xff] }
 0xc4e   :  { %v6148_v62 = vpack.c.bf16 %v5224_v60, %v5223_v59 }
 0xc50   :  { %6149 = vmatprep.subr.bf16.mxu0 %v6148_v62 }
 0xcbf   :  { %v606_v27 = vpop.permute.xlu1 %605 }
 0xcc0   :  { %v608_v28 = vmul.f32 %v606_v27, %v602_v26 }
 0xcc2   :  { %610 = vrot.lane.b32.xlu0 %v608_v28, %s6775_s29 }
 0xd34   :  { %v611_v30 = vpop.permute.xlu0 %610 }
 0xd35   :  { %v613_v32 = vadd.f32 %v611_v30, %v603_v29 }
 0xd37   :  { %6462 = vtanh.f32 %v613_v32 }
 0xd41   :  { %v6463_v33 = vpop.eup %6462 }
 0xd42   :  { %616 = vrot.lane.b32.xlu1 %v6463_v33, %s6774_s28 }
 0xd46   :  { %71 = vbcast.lane.b32.xlu1 %v69_v36, 256 }
 0xdb4   :  { %v617_v37 = vpop.permute.xlu1 %616 }
 0xdb5   :  { %v619_v38 = vmul.f32 %v617_v37, %v602_v26 }
 0xdb7   :  { %621 = vrot.lane.b32.xlu0 %v619_v38, %s6775_s29 }
 0xdb8   :  { %v72_v42 = vpop.permute.xlu1 %71 }
 0xdb9   :  { %v96_v43 = vmul.f32 %v6854_v14, %v72_v42 }
 0xdbb   :  { %v108_v45 = vadd.f32 %v6861_v19, %v96_v43 }
 0xe29   :  { %v622_v41 = vpop.permute.xlu0 %621 }
 0xe2a   :  { %5685 = vmatmul.mubr.msk.f32.vlgmr.msra.gmra.mrb[2].mxu1 %vm111_vm4, %v622_v41 }
 0xe2b   :  { %6144 = vmatpush3.bf16.msra.mxu1 %v6813_v6  ;;  %5706 = vmatprep.mubr.msk.f32.mxu1 %vm6771_vm0, %v6772_v5 }
 0xe2c   :  { %6145 = vmatprep.subr.bf16.mxu1 %v6770_v1 }
 0xe2f   :  { %6147 = vmatpush3.bf16.msra.mxu1 %v6829_v10 }
 0xe30   :  { %6156 = vmatprep.subr.bf16.mxu1 %v6770_v1 }
 0xefd   :  { %v691_v46 = vpop.f32.mrb[2].mxu1 }
 0xefe   :  { %v695_v47 = vadd.f32 %v691_v46, %v108_v45  ;;  %v5686_v48 = vpop.f32.mrb[3].mxu1 }
 0xeff   :  { %v5227_v48 = vld [vmem:[%s8012_s1 + $0x68] sm:$0xff] }
 0xf00   :  { %v696_v49 = vmul.f32 %v695_v47, %v6864_v22 }
 0xf02   :  { %v5218_v6 = vmul.f32 -1.442695, %v696_v49  ;;  %v5228_v49 = vld [vmem:[%s8012_s1 + $0x70] sm:$0xff] }
 0xf04   :  { %6464 = vpow2.f32 %v5218_v6  ;;  %v7043_v6 = vpack.c.bf16 %v5228_v49, %v5227_v48 }
 0xf0e   :  { %v6465_v50 = vpop.eup %6464 }
 0xf0f   :  { %v700_v51 = vadd.f32 1.0, %v6465_v50  ;;  %v5229_v50 = vld [vmem:[%s8012_s1 + $0x78] sm:$0xff] }
 0xf11   :  { %6466 = vrcp.f32 %v700_v51  ;;  %v5230_v51 = vld [vmem:[%s8012_s1 + $0x80] sm:$0xff] }
 0xf1b   :  { %v6467_v52 = vpop.eup %6466 }
 0xf1c   :  { %v703_v10 = vmul.f32 %v6467_v52, %v6864_v22  ;;  %v7053_v52 = vpack.c.bf16 %v5230_v51, %v5229_v50 }
 0xf1e   :  { %v704_v53 = vadd.f32 %v703_v10, %v6868_v31 }
 0xf20   :  { %707 = vrot.lane.b32.xlu0 %v704_v53, %s6774_s28  ;;  %v705_v56 = vmul.f32 %v704_v53, %v613_v32 }
 0xf92   :  { %v708_v54 = vpop.permute.xlu0 %707 }
 0xf93   :  { %v710_v55 = vmul.f32 %v708_v54, %v704_v53 }
 0xf95   :  { %712 = vrot.lane.b32.xlu1 %v710_v55, %s6775_s29  ;;  %v5231_v55 = vld [vmem:[%s8012_s1 + $0x88] sm:$0xff] }
0x1007   :  { %v713_v57 = vpop.permute.xlu1 %712 }
0x1008   :  { %v715_v58 = vadd.f32 %v713_v57, %v705_v56 }
0x100a   :  { %6468 = vtanh.f32 %v715_v58 }
0x1014   :  { %v6469_v63 = vpop.eup %6468 }
0x1015   :  { %718 = vrot.lane.b32.xlu0 %v6469_v63, %s6774_s28 }
0x1019   :  { %78 = vbcast.lane.b32.xlu0 %v76_v13, 256 }
0x1087   :  { %v719_v2 = vpop.permute.xlu0 %718 }
0x1088   :  { %v721_v4 = vmul.f32 %v719_v2, %v704_v53 }
0x108a   :  { %723 = vrot.lane.b32.xlu1 %v721_v4, %s6775_s29 }
0x108b   :  { %v79_v20 = vpop.permute.xlu0 %78 }
0x10fc   :  { %v724_v18 = vpop.permute.xlu1 %723 }
0x10fd   :  { %5696 = vmatmul.mubr.msk.f32.vlgmr.msra.gmra.mrb[8].mxu0 %vm111_vm4, %v724_v18 }
0x10fe   :  { %6151 = vmatpush3.bf16.msra.mxu0 %v6148_v62  ;;  %5717 = vmatprep.mubr.msk.f32.mxu0 %vm111_vm4, %v6881_v44  ;;  %v97_v44 = vmul.f32 %v6854_v14, %v79_v20 }
0x10ff   :  { %6153 = vmatprep.subr.bf16.mxu0 %v6152_v17 }
0x1100   :  { %v109_v21 = vadd.f32 %v6861_v19, %v97_v44 }
0x1102   :  { %6155 = vmatpush3.bf16.msra.mxu0 %v6152_v17 }
0x1103   :  { %6168 = vmatprep.subr.bf16.mxu0 %v6770_v1 }
0x1105   :  { %5718 = vmatmul.mubr.msk.f32.vlgmr.msra.gmra.mrb[10].mxu0 %vm111_vm4, %v6904_v7 }
0x1106   :  { %5720 = vmatprep.mubr.msk.f32.mxu0 %vm111_vm4, %v6927_v39  ;;  %6170 = vmatpush3.bf16.msra.mxu0 %v7043_v6 }
0x1107   :  { %6171 = vmatprep.subr.bf16.mxu0 %v6770_v1 }
0x1109   :  { %5721 = vmatmul.mubr.msk.f32.gmra.mrb[12].mxu0 %vm111_vm4, %v6950_v3 }
0x110a   :  { %5723 = vmatprep.mubr.msk.f32.mxu0 %vm111_vm4, %v622_v41  ;;  %6173 = vmatpush3.bf16.msra.mxu0 %v7053_v52 }
0x110b   :  { %6180 = vmatprep.subr.bf16.mxu0 %v6770_v1 }
0x110d   :  { %5724 = vmatmul.mubr.msk.f32.gmra.mrb[14].mxu0 %vm111_vm4, %v724_v18 }
0x11d0   :  { %v793_v23 = vpop.f32.mrb[8].mxu0 }
0x11d1   :  { %v797_v24 = vadd.f32 %v793_v23, %v109_v21  ;;  %v5697_v25 = vpop.f32.mrb[9].mxu0 }
0x11d2   :  { %v82_v25 = vsub.s32 7, %v6818_v8 }
0x11d3   :  { %v798_v7 = vmul.f32 %v797_v24, %v6864_v22 }
0x11d5   :  { %v5220_v26 = vmul.f32 -1.442695, %v798_v7 }
0x11d7   :  { %6470 = vpow2.f32 %v5220_v26  ;;  %v83_v26 = vrot.slane %v6826_v9, %v82_v25 }
0x11d8   :  { %v7019_v39 = vpop.f32.mrb[10].mxu0 }
0x11d9   :  { %v1011_v27 = vpop.f32.mrb[11].mxu0 }
0x11dc   :  { %v7021_v3 = vpop.f32.mrb[12].mxu0 }
0x11dd   :  { %v7023_v28 = vpop.f32.mrb[13].mxu0 }
0x11e0   :  { %v7025_v29 = vpop.f32.mrb[14].mxu0 }
0x11e1   :  { %v6471_v30 = vpop.eup %6470  ;;  %v7027_v32 = vpop.f32.mrb[15].mxu0 }
0x11e2   :  { %v802_v33 = vadd.f32 1.0, %v6471_v30 }
0x11e4   :  { %6472 = vrcp.f32 %v802_v33 }
0x11ee   :  { %v6473_v36 = vpop.eup %6472 }
0x11ef   :  { %v805_v37 = vmul.f32 %v6473_v36, %v6864_v22 }
0x11f1   :  { %v806_v38 = vadd.f32 %v805_v37, %v6868_v31 }
0x11f3   :  { %809 = vrot.lane.b32.xlu1 %v806_v38, %s6774_s28  ;;  %v807_v43 = vmul.f32 %v806_v38, %v715_v58  ;;  %v7077_v58 = vrot.slane %v5231_v55, %v6832_v11 }
0x11f5   :  { %v1012_v59 = vadd.f32 %v1011_v27, %v7077_v58 }
0x1265   :  { %v810_v41 = vpop.permute.xlu1 %809 }
0x1266   :  { %v812_v42 = vmul.f32 %v810_v41, %v806_v38 }
0x1268   :  { %814 = vrot.lane.b32.xlu0 %v812_v42, %s6775_s29 }
0x12da   :  { %v815_v45 = vpop.permute.xlu0 %814 }
0x12db   :  { %v7033_v46 = vadd.f32 %v815_v45, %v807_v43 }
0x12dd   :  { %6474 = vtanh.f32 %v7033_v46 }
0x12e7   :  { %v6475_v47 = vpop.eup %6474 }
0x12e8   :  { %820 = vrot.lane.b32.xlu1 %v6475_v47, %s6774_s28 }
0x135a   :  { %v821_v10 = vpop.permute.xlu1 %820 }
0x135b   :  { %v823_v53 = vmul.f32 %v821_v10, %v806_v38 }
0x135d   :  { %825 = vrot.lane.b32.xlu0 %v823_v53, %s6775_s29 }
0x13cf   :  { %v826_v54 = vpop.permute.xlu0 %825 }
0x13d0   :  { %5707 = vmatmul.mubr.msk.f32.vlgmr.msra.gmra.mrb[4].mxu1 %vm111_vm4, %v826_v54  ;;  %5726 = vmatprep.mubr.msk.f32.mxu0 %vm111_vm4, %v826_v54  ;;  %v1017_v54 = vadd.f32 %v7019_v39, %v7077_v58 }
0x13d1   :  { %6158 = vmatpush3.bf16.msra.mxu1 %v7043_v6  ;;  %5737 = vmatprep.mubr.msk.f32.mxu1 %vm6771_vm0, %v6772_v5 }
0x13d2   :  { %6159 = vmatprep.subr.bf16.mxu1 %v6770_v1 }
0x13d5   :  { %6161 = vmatpush3.bf16.msra.mxu1 %v7053_v52 }
0x13d6   :  { %6162 = vmatprep.subr.bf16.mxu1 %v6770_v1 }
0x13d8   :  { %5738 = vmatmul.mubr.f32.vlgmr.msra.gmra.mrb[6].mxu1 %v6772_v5 }
0x13d9   :  { %6164 = vmatpush3.bf16.msra.mxu1 %v7043_v6  ;;  %5748 = vmatprep.mubr.msk.f32.mxu1 %vm6771_vm0, %v6772_v5 }
0x13da   :  { %6165 = vmatprep.subr.bf16.mxu1 %v6770_v1 }
0x13dd   :  { %6167 = vmatpush3.bf16.msra.mxu1 %v7053_v52 }
0x13de   :  { %6174 = vmatprep.subr.bf16.mxu1 %v6770_v1 }
0x14a3   :  { %v895_v56 = vpop.f32.mrb[4].mxu1 }
0x14a4   :  { %v5708_v57 = vpop.f32.mrb[5].mxu1 }
0x14ab   :  { %v1116_v60 = vpop.f32.mrb[6].mxu1 }
0x14ac   :  { %v1120_v62 = vadd.f32 %v1116_v60, %v1012_v59  ;;  %v5739_v63 = vpop.f32.mrb[7].mxu1 }
0x14ae   :  { %v1121_v2 = vmul.f32 %v1120_v62, %v6864_v22 }
0x14b0   :  { %v5240_v4 = vmul.f32 -1.442695, %v1121_v2 }
0x14b2   :  { %6476 = vpow2.f32 %v5240_v4 }
0x14bc   :  { %v6477_v13 = vpop.eup %6476 }
0x14bd   :  { %v1125_v15 = vadd.f32 1.0, %v6477_v13 }
0x14bf   :  { %6478 = vrcp.f32 %v1125_v15 }
0x14c9   :  { %v6479_v16 = vpop.eup %6478 }
0x14ca   :  { %v1128_v17 = vmul.f32 %v6479_v16, %v6864_v22 }
0x14cc   :  { %v1129_v18 = vadd.f32 %v1128_v17, %v6868_v31 }
0x14ce   :  { %1132 = vrot.lane.b32.xlu1 %v1129_v18, %s6774_s28  ;;  %v1130_v21 = vmul.f32 0.0, %v1129_v18 }
0x1540   :  { %v1133_v20 = vpop.permute.xlu1 %1132 }
0x1541   :  { %v1135_v44 = vmul.f32 %v1133_v20, %v1129_v18 }
0x1543   :  { %1137 = vrot.lane.b32.xlu0 %v1135_v44, %s6775_s29 }
0x15b5   :  { %v1138_v23 = vpop.permute.xlu0 %1137 }
0x15b6   :  { %v7085_v24 = vadd.f32 %v1138_v23, %v1130_v21 }
0x15b8   :  { %6480 = vtanh.f32 %v7085_v24 }
0x15c2   :  { %v6481_v7 = vpop.eup %6480 }
0x15c3   :  { %1143 = vrot.lane.b32.xlu1 %v6481_v7, %s6774_s28 }
0x15c7   :  { %85 = vbcast.lane.b32.xlu1 %v83_v26, 256 }
0x1635   :  { %v1144_v27 = vpop.permute.xlu1 %1143 }
0x1636   :  { %v1146_v30 = vmul.f32 %v1144_v27, %v1129_v18 }
0x1638   :  { %1148 = vrot.lane.b32.xlu0 %v1146_v30, %s6775_s29 }
0x1639   :  { %v86_v33 = vpop.permute.xlu1 %85 }
0x163a   :  { %v98_v36 = vmul.f32 %v6854_v14, %v86_v33 }
0x163c   :  { %v110_v37 = vadd.f32 %v6861_v19, %v98_v36 }
0x163e   :  { %v899_v38 = vadd.f32 %v895_v56, %v110_v37 }
0x1640   :  { %v900_v41 = vmul.f32 %v899_v38, %v6864_v22 }
0x1642   :  { %v5222_v42 = vmul.f32 -1.442695, %v900_v41 }
0x1644   :  { %6482 = vpow2.f32 %v5222_v42 }
0x164e   :  { %v6483_v43 = vpop.eup %6482 }
0x164f   :  { %v904_v45 = vadd.f32 1.0, %v6483_v43 }
0x1651   :  { %6484 = vrcp.f32 %v904_v45 }
0x165b   :  { %v6485_v47 = vpop.eup %6484 }
0x165c   :  { %v907_v9 = vmul.f32 %v6485_v47, %v6864_v22 }
0x165e   :  { %v908_v48 = vadd.f32 %v907_v9, %v6868_v31 }
0x1660   :  { %911 = vrot.lane.b32.xlu0 %v908_v48, %s6774_s28  ;;  %v909_v50 = vmul.f32 %v908_v48, %v7033_v46 }
0x16aa   :  { %v1149_v49 = vpop.permute.xlu0 %1148 }
0x16ab   :  { %5749 = vmatmul.mubr.msk.f32.vlgmr.msra.gmra.mrb[8].mxu1 %vm111_vm4, %v1149_v49 }
0x16ac   :  { %6176 = vmatpush3.bf16.msra.mxu1 %v7043_v6  ;;  %5770 = vmatprep.mubr.msk.f32.mxu1 %vm6771_vm0, %v6772_v5 }
0x16ad   :  { %6177 = vmatprep.subr.bf16.mxu1 %v6770_v1 }
0x16b0   :  { %6179 = vmatpush3.bf16.msra.mxu1 %v7053_v52 }
0x16b1   :  { %6186 = vmatprep.subr.bf16.mxu1 %v6770_v1 }
0x16d2   :  { %v912_v14 = vpop.permute.xlu0 %911 }
0x16d3   :  { %v914_v19 = vmul.f32 %v912_v14, %v908_v48 }
0x16d5   :  { %916 = vrot.lane.b32.xlu0 %v914_v19, %s6775_s29 }
0x1747   :  { %v917_v51 = vpop.permute.xlu0 %916 }
0x1748   :  { %v919_v10 = vadd.f32 %v917_v51, %v909_v50 }
0x174a   :  { %6486 = vtanh.f32 %v919_v10 }
0x1754   :  { %v6487_v53 = vpop.eup %6486 }
0x1755   :  { %922 = vrot.lane.b32.xlu0 %v6487_v53, %s6774_s28 }
0x177e   :  { %v1218_v55 = vpop.f32.mrb[8].mxu1 }
0x177f   :  { %v1222_v56 = vadd.f32 %v1218_v55, %v1017_v54  ;;  %v5750_v57 = vpop.f32.mrb[9].mxu1  ;;  %v1027_v54 = vadd.f32 %v7021_v3, %v7077_v58 }
0x1781   :  { %v1223_v59 = vmul.f32 %v1222_v56, %v6864_v22 }
0x1783   :  { %v5242_v60 = vmul.f32 -1.442695, %v1223_v59 }
0x1785   :  { %6488 = vpow2.f32 %v5242_v60 }
0x178f   :  { %v6489_v62 = vpop.eup %6488 }
0x1790   :  { %v1227_v63 = vadd.f32 1.0, %v6489_v62 }
0x1792   :  { %6490 = vrcp.f32 %v1227_v63 }
0x179c   :  { %v6491_v46 = vpop.eup %6490 }
0x179d   :  { %v1230_v2 = vmul.f32 %v6491_v46, %v6864_v22 }
0x179f   :  { %v1231_v4 = vadd.f32 %v1230_v2, %v6868_v31 }
0x17a1   :  { %1234 = vrot.lane.b32.xlu1 %v1231_v4, %s6774_s28  ;;  %v1232_v18 = vmul.f32 %v1231_v4, %v7085_v24  ;;  %v1022_v24 = vadd.f32 %v7023_v28, %v7077_v58 }
0x17c7   :  { %v923_v13 = vpop.permute.xlu0 %922 }
0x17c8   :  { %v925_v15 = vmul.f32 %v923_v13, %v908_v48 }
0x17ca   :  { %941 = vrot.lane.b32.xlu0 %v925_v15, %s6775_s29 }
0x1813   :  { %v1235_v39 = vpop.permute.xlu1 %1234 }
0x1814   :  { %v1237_v16 = vmul.f32 %v1235_v39, %v1231_v4 }
0x1816   :  { %1239 = vrot.lane.b32.xlu1 %v1237_v16, %s6775_s29 }
0x183c   :  { %v7118_v17 = vpop.permute.xlu0 %941 }
0x183d   :  { %5727 = vmatmul.mubr.msk.f32.gmra.mrb[16].mxu0 %vm111_vm4, %v7118_v17 }
0x183e   :  { %5759 = vmatprep.mubr.msk.f32.mxu0 %vm6771_vm0, %v6772_v5 }
0x1888   :  { %v1240_v20 = vpop.permute.xlu1 %1239 }
0x1889   :  { %v1242_v44 = vadd.f32 %v1240_v20, %v1232_v18 }
0x188b   :  { %6492 = vtanh.f32 %v1242_v44 }
0x1895   :  { %v6493_v21 = vpop.eup %6492 }
0x1896   :  { %1245 = vrot.lane.b32.xlu1 %v6493_v21, %s6774_s28 }
0x1908   :  { %v1246_v23 = vpop.permute.xlu1 %1245 }
0x1909   :  { %v1248_v7 = vmul.f32 %v1246_v23, %v1231_v4  ;;  %v1032_v23 = vadd.f32 %v7027_v32, %v7077_v58 }
0x190b   :  { %1250 = vrot.lane.b32.xlu1 %v1248_v7, %s6775_s29 }
0x1910   :  { %v7127_v26 = vpop.f32.mrb[16].mxu0 }
0x1911   :  { %v7129_v27 = vpop.f32.mrb[17].mxu0 }
0x197d   :  { %v1251_v30 = vpop.permute.xlu1 %1250 }
0x197e   :  { %5760 = vmatmul.mubr.msk.f32.vlgmr.msra.gmra.mrb[18].mxu0 %vm111_vm4, %v1251_v30 }
0x197f   :  { %6182 = vmatpush3.bf16.msra.mxu0 %v7043_v6  ;;  %5781 = vmatprep.mubr.msk.f32.mxu0 %vm6771_vm0, %v6772_v5 }
0x1980   :  { %6183 = vmatprep.subr.bf16.mxu0 %v6770_v1 }
0x1983   :  { %6185 = vmatpush3.bf16.msra.mxu0 %v7053_v52 }
0x1984   :  { %6192 = vmatprep.subr.bf16.mxu0 %v6770_v1 }
0x1a51   :  { %v1320_v33 = vpop.f32.mrb[18].mxu0 }
0x1a52   :  { %v1324_v36 = vadd.f32 %v1320_v33, %v1022_v24  ;;  %v5761_v37 = vpop.f32.mrb[19].mxu0 }
0x1a54   :  { %v1325_v38 = vmul.f32 %v1324_v36, %v6864_v22 }
0x1a56   :  { %v5244_v41 = vmul.f32 -1.442695, %v1325_v38 }
0x1a58   :  { %6494 = vpow2.f32 %v5244_v41 }
0x1a62   :  { %v6495_v42 = vpop.eup %6494 }
0x1a63   :  { %v1329_v43 = vadd.f32 1.0, %v6495_v42 }
0x1a65   :  { %6496 = vrcp.f32 %v1329_v43 }
0x1a6f   :  { %v6497_v45 = vpop.eup %6496 }
0x1a70   :  { %v1332_v47 = vmul.f32 %v6497_v45, %v6864_v22 }
0x1a72   :  { %v1333_v9 = vadd.f32 %v1332_v47, %v6868_v31 }
0x1a74   :  { %1336 = vrot.lane.b32.xlu0 %v1333_v9, %s6774_s28  ;;  %v1334_v28 = vmul.f32 %v1333_v9, %v1242_v44 }
0x1ae6   :  { %v1337_v48 = vpop.permute.xlu0 %1336 }
0x1ae7   :  { %v1339_v49 = vmul.f32 %v1337_v48, %v1333_v9 }
0x1ae9   :  { %1341 = vrot.lane.b32.xlu1 %v1339_v49, %s6775_s29 }
0x1b5b   :  { %v1342_v14 = vpop.permute.xlu1 %1341 }
0x1b5c   :  { %v1344_v19 = vadd.f32 %v1342_v14, %v1334_v28 }
0x1b5e   :  { %6498 = vtanh.f32 %v1344_v19 }
0x1b68   :  { %v6499_v50 = vpop.eup %6498 }
0x1b69   :  { %1347 = vrot.lane.b32.xlu0 %v6499_v50, %s6774_s28  ;;  %v1037_v50 = vadd.f32 %v7025_v29, %v7077_v58 }
0x1bdb   :  { %v1348_v51 = vpop.permute.xlu0 %1347 }
0x1bdc   :  { %v1350_v10 = vmul.f32 %v1348_v51, %v1333_v9 }
0x1bde   :  { %1352 = vrot.lane.b32.xlu1 %v1350_v10, %s6775_s29 }
0x1c50   :  { %v1353_v53 = vpop.permute.xlu1 %1352 }
0x1c51   :  { %5771 = vmatmul.mubr.msk.f32.vlgmr.msra.gmra.mrb[10].mxu1 %vm111_vm4, %v1353_v53 }
0x1c52   :  { %6188 = vmatpush3.bf16.msra.mxu1 %v7043_v6  ;;  %5792 = vmatprep.mubr.msk.f32.mxu1 %vm6771_vm0, %v6772_v5 }
0x1c53   :  { %6189 = vmatprep.subr.bf16.mxu1 %v6770_v1 }
0x1c56   :  { %6191 = vmatpush3.bf16.msra.mxu1 %v7053_v52 }
0x1c57   :  { %6198 = vmatprep.subr.bf16.mxu1 %v6770_v1 }
0x1d24   :  { %v1422_v55 = vpop.f32.mrb[10].mxu1 }
0x1d25   :  { %v1426_v56 = vadd.f32 %v1422_v55, %v1027_v54  ;;  %v5772_v57 = vpop.f32.mrb[11].mxu1 }
0x1d27   :  { %v1427_v59 = vmul.f32 %v1426_v56, %v6864_v22 }
0x1d29   :  { %v5246_v60 = vmul.f32 -1.442695, %v1427_v59 }
0x1d2b   :  { %6500 = vpow2.f32 %v5246_v60 }
0x1d35   :  { %v6501_v62 = vpop.eup %6500 }
0x1d36   :  { %v1431_v63 = vadd.f32 1.0, %v6501_v62 }
0x1d38   :  { %6502 = vrcp.f32 %v1431_v63 }
0x1d42   :  { %v6503_v46 = vpop.eup %6502 }
0x1d43   :  { %v1434_v2 = vmul.f32 %v6503_v46, %v6864_v22 }
0x1d45   :  { %v1435_v4 = vadd.f32 %v1434_v2, %v6868_v31 }
0x1d47   :  { %1438 = vrot.lane.b32.xlu0 %v1435_v4, %s6774_s28  ;;  %v1436_v3 = vmul.f32 %v1435_v4, %v1344_v19 }
0x1db9   :  { %v1439_v13 = vpop.permute.xlu0 %1438 }
0x1dba   :  { %v1441_v15 = vmul.f32 %v1439_v13, %v1435_v4 }
0x1dbc   :  { %1443 = vrot.lane.b32.xlu1 %v1441_v15, %s6775_s29  ;;  %v1042_v15 = vadd.f32 %v7129_v27, %v7077_v58 }
0x1e2e   :  { %v1444_v39 = vpop.permute.xlu1 %1443 }
0x1e2f   :  { %v1446_v16 = vadd.f32 %v1444_v39, %v1436_v3 }
0x1e31   :  { %6504 = vtanh.f32 %v1446_v16 }
0x1e3b   :  { %v6505_v18 = vpop.eup %6504 }
0x1e3c   :  { %1449 = vrot.lane.b32.xlu0 %v6505_v18, %s6774_s28 }
0x1eae   :  { %v1450_v20 = vpop.permute.xlu0 %1449 }
0x1eaf   :  { %v1452_v44 = vmul.f32 %v1450_v20, %v1435_v4 }
0x1eb1   :  { %1454 = vrot.lane.b32.xlu1 %v1452_v44, %s6775_s29 }
0x1f23   :  { %v1455_v21 = vpop.permute.xlu1 %1454 }
0x1f24   :  { %5782 = vmatmul.mubr.msk.f32.vlgmr.msra.gmra.mrb[20].mxu0 %vm111_vm4, %v1455_v21 }
0x1f25   :  { %6194 = vmatpush3.bf16.msra.mxu0 %v7043_v6  ;;  %5803 = vmatprep.mubr.msk.f32.mxu0 %vm6771_vm0, %v6772_v5 }
0x1f26   :  { %6195 = vmatprep.subr.bf16.mxu0 %v6770_v1 }
0x1f29   :  { %6197 = vmatpush3.bf16.msra.mxu0 %v7053_v52 }
0x1ff7   :  { %v1524_v7 = vpop.f32.mrb[20].mxu0 }
0x1ff8   :  { %v1528_v30 = vadd.f32 %v1524_v7, %v1032_v23  ;;  %v5783_v24 = vpop.f32.mrb[21].mxu0 }
0x1ffa   :  { %v1529_v33 = vmul.f32 %v1528_v30, %v6864_v22 }
0x1ffc   :  { %v5248_v36 = vmul.f32 -1.442695, %v1529_v33 }
0x1ffe   :  { %6506 = vpow2.f32 %v5248_v36 }
0x2008   :  { %v6507_v37 = vpop.eup %6506 }
0x2009   :  { %v1533_v38 = vadd.f32 1.0, %v6507_v37 }
0x200b   :  { %6508 = vrcp.f32 %v1533_v38 }
0x2015   :  { %v6509_v41 = vpop.eup %6508 }
0x2016   :  { %v1536_v42 = vmul.f32 %v6509_v41, %v6864_v22 }
0x2018   :  { %v1537_v43 = vadd.f32 %v1536_v42, %v6868_v31 }
0x201a   :  { %1540 = vrot.lane.b32.xlu0 %v1537_v43, %s6774_s28  ;;  %v1538_v32 = vmul.f32 %v1537_v43, %v1446_v16 }
0x208c   :  { %v1541_v45 = vpop.permute.xlu0 %1540 }
0x208d   :  { %v1543_v47 = vmul.f32 %v1541_v45, %v1537_v43 }
0x208f   :  { %1545 = vrot.lane.b32.xlu1 %v1543_v47, %s6775_s29 }
0x2101   :  { %v1546_v9 = vpop.permute.xlu1 %1545 }
0x2102   :  { %v1548_v48 = vadd.f32 %v1546_v9, %v1538_v32 }
0x2104   :  { %6510 = vtanh.f32 %v1548_v48 }
0x210e   :  { %v6511_v49 = vpop.eup %6510 }
0x210f   :  { %1551 = vrot.lane.b32.xlu0 %v6511_v49, %s6774_s28 }
0x2181   :  { %v1552_v28 = vpop.permute.xlu0 %1551 }
0x2182   :  { %v1554_v14 = vmul.f32 %v1552_v28, %v1537_v43  ;;  %v1047_v43 = vadd.f32 %v7127_v26, %v7077_v58 }
0x2184   :  { %1556 = vrot.lane.b32.xlu1 %v1554_v14, %s6775_s29 }
0x21f6   :  { %v1557_v19 = vpop.permute.xlu1 %1556 }
0x21f7   :  { %5793 = vmatmul.mubr.msk.f32.vlgmr.msra.gmra.mrb[12].mxu1 %vm111_vm4, %v1557_v19 }
0x21f8   :  { %6200 = vmatpush3.bf16.msra.mxu1 %v7043_v6  ;;  %5814 = vmatprep.mubr.msk.f32.mxu1 %vm6771_vm0, %v6772_v5 }
0x21f9   :  { %6201 = vmatprep.subr.bf16.mxu1 %v6770_v1 }
0x21fc   :  { %6203 = vmatpush3.bf16.msra.mxu1 %v7053_v52 }
0x22ca   :  { %v1626_v51 = vpop.f32.mrb[12].mxu1 }
0x22cb   :  { %v1630_v10 = vadd.f32 %v1626_v51, %v1037_v50  ;;  %v5794_v53 = vpop.f32.mrb[13].mxu1 }
0x22cd   :  { %v1631_v54 = vmul.f32 %v1630_v10, %v6864_v22 }
0x22cf   :  { %v5250_v55 = vmul.f32 -1.442695, %v1631_v54  ;;  %v1861_v54 = vld [vmem:[%s8014_s3] sm:$0xff] }
0x22d1   :  { %6512 = vpow2.f32 %v5250_v55  ;;  %v1862_v55 = vld [vmem:[%s8014_s3 + $0x8] sm:$0xff] }
0x22db   :  { %v6513_v56 = vpop.eup %6512 }
0x22dc   :  { %v1635_v57 = vadd.f32 1.0, %v6513_v56  ;;  %v1863_v56 = vld [vmem:[%s8014_s3 + $0x10] sm:$0xff] }
0x22de   :  { %6514 = vrcp.f32 %v1635_v57  ;;  %v6204_v57 = vpack.c.bf16 %v1862_v55, %v1861_v54 }
0x22e0   :  { %6205 = vmatprep.subr.bf16.mxu0 %v6204_v57 }
0x22e8   :  { %v6515_v6 = vpop.eup %6514 }
0x22e9   :  { %v1638_v59 = vmul.f32 %v6515_v6, %v6864_v22  ;;  %v1864_v6 = vld [vmem:[%s8014_s3 + $0x18] sm:$0xff] }
0x22eb   :  { %v1639_v1 = vadd.f32 %v1638_v59, %v6868_v31  ;;  %v6208_v59 = vpack.c.bf16 %v1864_v6, %v1863_v56 }
0x22ed   :  { %1642 = vrot.lane.b32.xlu0 %v1639_v1, %s6774_s28  ;;  %v1640_v29 = vmul.f32 %v1639_v1, %v1548_v48 }
0x235f   :  { %v1643_v52 = vpop.permute.xlu0 %1642 }
0x2360   :  { %v1645_v60 = vmul.f32 %v1643_v52, %v1639_v1 }
0x2362   :  { %1647 = vrot.lane.b32.xlu1 %v1645_v60, %s6775_s29 }
0x23d4   :  { %v1648_v62 = vpop.permute.xlu1 %1647 }
0x23d5   :  { %v1650_v63 = vadd.f32 %v1648_v62, %v1640_v29  ;;  %v1983_v62 = vld [vmem:[%s8015_s2 + $0x20] sm:$0xff] }
0x23d7   :  { %6516 = vtanh.f32 %v1650_v63 }
0x23e1   :  { %v6517_v46 = vpop.eup %6516 }
0x23e2   :  { %1653 = vrot.lane.b32.xlu0 %v6517_v46, %s6774_s28  ;;  %v1985_v46 = vld [vmem:[%s8015_s2 + $0x30] sm:$0xff] }
0x2454   :  { %v1654_v2 = vpop.permute.xlu0 %1653 }
0x2455   :  { %v1656_v4 = vmul.f32 %v1654_v2, %v1639_v1 }
0x2457   :  { %1658 = vrot.lane.b32.xlu1 %v1656_v4, %s6775_s29  ;;  %v1986_v4 = vld [vmem:[%s8015_s2 + $0x38] sm:$0xff] }
0x24c9   :  { %v1659_v13 = vpop.permute.xlu1 %1658 }
0x24ca   :  { %5804 = vmatmul.mubr.msk.f32.vlgmr.msra.gmra.mrb[22].mxu0 %vm111_vm4, %v1659_v13  ;;  %v7243_v13 = vpack.c.bf16 %v1986_v4, %v1985_v46 }
0x24cb   :  { %5825 = vmatprep.mubr.msk.f32.mxu0 %vm111_vm4, %v7118_v17  ;;  %6207 = vmatpush3.bf16.msra.mxu0 %v6204_v57 }
0x24cc   :  { %6209 = vmatprep.subr.bf16.mxu0 %v6208_v59 }
0x24cf   :  { %6211 = vmatpush3.bf16.msra.mxu0 %v6208_v59 }
0x259d   :  { %v1728_v3 = vpop.f32.mrb[22].mxu0 }
0x259e   :  { %v1732_v39 = vadd.f32 %v1728_v3, %v1042_v15  ;;  %v5805_v16 = vpop.f32.mrb[23].mxu0  ;;  %v1865_v15 = vld [vmem:[%s8014_s3 + $0x20] sm:$0xff] }
0x259f   :  { %v1869_v3 = vrot.slane %v1865_v15, %v6832_v11 }
0x25a0   :  { %v1733_v18 = vmul.f32 %v1732_v39, %v6864_v22 }
0x25a2   :  { %v5252_v20 = vmul.f32 -1.442695, %v1733_v18 }
0x25a4   :  { %6518 = vpow2.f32 %v5252_v20 }
0x25ae   :  { %v6519_v44 = vpop.eup %6518 }
0x25af   :  { %v1737_v21 = vadd.f32 1.0, %v6519_v44 }
0x25b1   :  { %6520 = vrcp.f32 %v1737_v21 }
0x25bb   :  { %v6521_v23 = vpop.eup %6520 }
0x25bc   :  { %v1740_v7 = vmul.f32 %v6521_v23, %v6864_v22 }
0x25be   :  { %v1741_v30 = vadd.f32 %v1740_v7, %v6868_v31 }
0x25c0   :  { %1744 = vrot.lane.b32.xlu0 %v1741_v30, %s6774_s28  ;;  %v1742_v27 = vmul.f32 %v1741_v30, %v1650_v63  ;;  %v1984_v63 = vld [vmem:[%s8015_s2 + $0x28] sm:$0xff] }
0x25c1   :  { %v7238_v2 = vpack.c.bf16 %v1984_v63, %v1983_v62 }
0x25c3   :  { %6213 = vmatprep.subr.bf16.mxu1 %v7238_v2  ;;  %6221 = vmatprep.subr.bf16.mxu0 %v7238_v2 }
0x2632   :  { %v1745_v17 = vpop.permute.xlu0 %1744 }
0x2633   :  { %v1747_v24 = vmul.f32 %v1745_v17, %v1741_v30  ;;  %v1987_v17 = vld [vmem:[%s8015_s2 + $0x40] sm:$0xff] }
0x2635   :  { %1749 = vrot.lane.b32.xlu1 %v1747_v24, %s6775_s29 }
0x26a7   :  { %v1750_v33 = vpop.permute.xlu1 %1749 }
0x26a8   :  { %v1752_v36 = vadd.f32 %v1750_v33, %v1742_v27  ;;  %v7278_v27 = vrot.slane %v1987_v17, %v6832_v11 }
0x26aa   :  { %6522 = vtanh.f32 %v1752_v36 }
0x26b4   :  { %v6523_v37 = vpop.eup %6522 }
0x26b5   :  { %1755 = vrot.lane.b32.xlu0 %v6523_v37, %s6774_s28 }
0x2727   :  { %v1756_v38 = vpop.permute.xlu0 %1755 }
0x2728   :  { %v1758_v41 = vmul.f32 %v1756_v38, %v1741_v30  ;;  %v1982_v30 = vld [vmem:[%s8015_s2] sm:$0xff] }
0x2729   :  { %v7275_v24 = vrot.slane %v1982_v30, %v6832_v11 }
0x272a   :  { %1760 = vrot.lane.b32.xlu1 %v1758_v41, %s6775_s29 }
0x279c   :  { %v1761_v42 = vpop.permute.xlu1 %1760 }
0x279d   :  { %5815 = vmatmul.mubr.msk.f32.vlgmr.msra.gmra.mrb[14].mxu1 %vm111_vm4, %v1761_v42 }
0x279e   :  { %5836 = vmatprep.mubr.f32.mxu1 %v6772_v5  ;;  %6215 = vmatpush3.bf16.msra.mxu1 %v7238_v2 }
0x279f   :  { %6217 = vmatprep.subr.bf16.mxu1 %v7243_v13 }
0x27a2   :  { %6219 = vmatpush3.bf16.msra.mxu1 %v7243_v13 }
0x27a3   :  { %6229 = vmatprep.subr.bf16.mxu1 %v7238_v2 }
0x27a5   :  { %5837 = vmatmul.mubr.f32.vlgmr.msra.gmra.mrb[16].mxu1 %v6772_v5 }
0x27a6   :  { %6231 = vmatpush3.bf16.msra.mxu1 %v7238_v2 }
0x27a7   :  { %6233 = vmatprep.subr.bf16.mxu1 %v7243_v13 }
0x27aa   :  { %6235 = vmatpush3.bf16.msra.mxu1 %v7243_v13 }
0x27ab   :  { %6245 = vmatprep.subr.bf16.mxu1 %v7238_v2 }
0x2870   :  { %v1830_v45 = vpop.f32.mrb[14].mxu1 }
0x2871   :  { %v1834_v47 = vadd.f32 %v1830_v45, %v1047_v43  ;;  %v5816_v32 = vpop.f32.mrb[15].mxu1 }
0x2873   :  { %v1835_v9 = vmul.f32 %v1834_v47, %v6864_v22 }
0x2875   :  { %v5254_v48 = vmul.f32 -1.442695, %v1835_v9 }
0x2877   :  { %6524 = vpow2.f32 %v5254_v48 }
0x2878   :  { %v5838_v44 = vpop.f32.mrb[16].mxu1 }
0x2879   :  { %v2212_v21 = vpop.f32.mrb[17].mxu1 }
0x2881   :  { %v6525_v49 = vpop.eup %6524 }
0x2882   :  { %v1839_v28 = vadd.f32 1.0, %v6525_v49 }
0x2884   :  { %6526 = vrcp.f32 %v1839_v28 }
0x288e   :  { %v6527_v14 = vpop.eup %6526 }
0x288f   :  { %v1842_v19 = vmul.f32 %v6527_v14, %v6864_v22 }
0x2891   :  { %v1843_v50 = vadd.f32 %v1842_v19, %v6868_v31 }
0x2893   :  { %1846 = vrot.lane.b32.xlu0 %v1843_v50, %s6774_s28  ;;  %v1844_v58 = vmul.f32 %v1843_v50, %v1752_v36 }
0x2905   :  { %v1847_v51 = vpop.permute.xlu0 %1846 }
0x2906   :  { %v1849_v10 = vmul.f32 %v1847_v51, %v1843_v50 }
0x2908   :  { %1851 = vrot.lane.b32.xlu1 %v1849_v10, %s6775_s29 }
0x297a   :  { %v1852_v26 = vpop.permute.xlu1 %1851 }
0x297b   :  { %v1854_v53 = vadd.f32 %v1852_v26, %v1844_v58 }
0x297d   :  { %6528 = vtanh.f32 %v1854_v53 }
0x2987   :  { %v6529_v1 = vpop.eup %6528 }
0x2988   :  { %1857 = vrot.lane.b32.xlu0 %v6529_v1, %s6774_s28 }
0x29fa   :  { %v1858_v52 = vpop.permute.xlu0 %1857 }
0x29fb   :  { %v1860_v60 = vmul.f32 %v1858_v52, %v1843_v50 }
0x29fd   :  { %1871 = vrot.lane.b32.xlu1 %v1860_v60, %s6775_s29 }
0x2a6f   :  { %v1872_v29 = vpop.permute.xlu1 %1871 }
0x2a70   :  { %5826 = vmatmul.mubr.msk.f32.vlgmr.msra.gmra.mrb[24].mxu0 %vm111_vm4, %v1872_v29 }
0x2a71   :  { %6223 = vmatpush3.bf16.msra.mxu0 %v7238_v2 }
0x2a72   :  { %6225 = vmatprep.subr.bf16.mxu0 %v7243_v13 }
0x2a75   :  { %6227 = vmatpush3.bf16.msra.mxu0 %v7243_v13 }
0x2a76   :  { %6237 = vmatprep.subr.bf16.mxu0 %v7238_v2 }
0x2b43   :  { %v5827_v39 = vpop.f32.mrb[24].mxu0 }
0x2b44   :  { %v1941_v16 = vpop.f32.mrb[25].mxu0  ;;  %v1947_v20 = vadd.f32 %v5827_v39, %v1869_v3 }
0x2b45   :  { %v1942_v18 = vadd.f32 %v1941_v16, %v1869_v3 }
0x2b47   :  { %1950 = vxpose.xlu0.b32.start [1/2] (short) (narrow) %v1942_v18, 16 }
0x2b4b   :  { %1951 = vxpose.xlu0.b32.end [2/2] (short) (narrow) %v1947_v20, 16 }
0x2bc7   :  { %v7264_v23 = vpop.trf.xlu0 }
0x2bc8   :  { %v1991_v7 = vrot.slane %v7264_v23, %v6832_v11  ;;  %v2002_v39 = vrot.slane %v7264_v23, %v6876_v40  ;;  %v7309_v16 = vrot.slane %v7264_v23, %v47_v0 }
0x2bca   :  { %1993 = vbcast.lane.b32.xlu1 %v1991_v7, 256 }
0x2bcb   :  { %v7312_v18 = vpop.trf.xlu0 }
0x2bce   :  { %1997 = vbcast.lane.b32.xlu1 %v1991_v7, 264 }
0x2c3c   :  { %v1994_v33 = vpop.permute.xlu1 %1993 }
0x2c3d   :  { %v2102_v36 = vmul.f32 %v7275_v24, %v1994_v33 }
0x2c3f   :  { %v2126_v37 = vadd.f32 %v7278_v27, %v2102_v36 }
0x2c40   :  { %v1998_v38 = vpop.permute.xlu1 %1997 }
0x2c41   :  { %v2221_v41 = vadd.f32 %v2212_v21, %v2126_v37  ;;  %v2103_v42 = vmul.f32 %v7275_v24, %v1998_v38 }
0x2c43   :  { %v2223_v43 = vmul.f32 %v2221_v41, %v6864_v22  ;;  %v2127_v45 = vadd.f32 %v7278_v27, %v2103_v42 }
0x2c45   :  { %v5257_v47 = vmul.f32 -1.442695, %v2223_v43  ;;  %v2222_v32 = vadd.f32 %v5838_v44, %v2127_v45 }
0x2c47   :  { %6530 = vpow2.f32 %v5257_v47  ;;  %v2224_v9 = vmul.f32 %v2222_v32, %v6864_v22 }
0x2c49   :  { %v5258_v48 = vmul.f32 -1.442695, %v2224_v9 }
0x2c4b   :  { %6532 = vpow2.f32 %v5258_v48 }
0x2c51   :  { %v6531_v49 = vpop.eup %6530 }
0x2c52   :  { %v2231_v28 = vadd.f32 1.0, %v6531_v49 }
0x2c54   :  { %6534 = vrcp.f32 %v2231_v28 }
0x2c55   :  { %v6533_v14 = vpop.eup %6532 }
0x2c56   :  { %v2232_v19 = vadd.f32 1.0, %v6533_v14 }
0x2c58   :  { %6536 = vrcp.f32 %v2232_v19 }
0x2c5e   :  { %v6535_v50 = vpop.eup %6534 }
0x2c5f   :  { %v2237_v51 = vmul.f32 %v6535_v50, %v6864_v22 }
0x2c61   :  { %v2239_v10 = vadd.f32 %v2237_v51, %v6868_v31 }
0x2c62   :  { %v6537_v58 = vpop.eup %6536 }
0x2c63   :  { %2245 = vrot.lane.b32.xlu1 %v2239_v10, %s6774_s28  ;;  %v2238_v26 = vmul.f32 %v6537_v58, %v6864_v22  ;;  %v2241_v6 = vmul.f32 0.0, %v2239_v10 }
0x2c65   :  { %v2240_v53 = vadd.f32 %v2238_v26, %v6868_v31 }
0x2c67   :  { %2247 = vrot.lane.b32.xlu1 %v2240_v53, %s6774_s28  ;;  %v2242_v52 = vmul.f32 0.0, %v2240_v53 }
0x2cd5   :  { %v2246_v54 = vpop.permute.xlu1 %2245 }
0x2cd6   :  { %v2251_v55 = vmul.f32 %v2246_v54, %v2239_v10 }
0x2cd8   :  { %2255 = vrot.lane.b32.xlu1 %v2251_v55, %s6775_s29 }
0x2cd9   :  { %v2248_v56 = vpop.permute.xlu1 %2247 }
0x2cda   :  { %v2252_v57 = vmul.f32 %v2248_v56, %v2240_v53 }
0x2cdc   :  { %2257 = vrot.lane.b32.xlu1 %v2252_v57, %s6775_s29 }
0x2d4a   :  { %v2256_v59 = vpop.permute.xlu1 %2255 }
0x2d4b   :  { %v7294_v1 = vadd.f32 %v2256_v59, %v2241_v6 }
0x2d4d   :  { %6538 = vtanh.f32 %v7294_v1 }
0x2d4e   :  { %v2258_v60 = vpop.permute.xlu1 %2257 }
0x2d4f   :  { %v7297_v29 = vadd.f32 %v2258_v60, %v2242_v52 }
0x2d51   :  { %6540 = vtanh.f32 %v7297_v29 }
0x2d57   :  { %v6539_v62 = vpop.eup %6538 }
0x2d58   :  { %2267 = vrot.lane.b32.xlu1 %v6539_v62, %s6774_s28 }
0x2d5b   :  { %v6541_v63 = vpop.eup %6540 }
0x2d5c   :  { %2269 = vrot.lane.b32.xlu1 %v6541_v63, %s6774_s28 }
0x2dca   :  { %v2268_v46 = vpop.permute.xlu1 %2267 }
0x2dcb   :  { %v2273_v4 = vmul.f32 %v2268_v46, %v2239_v10 }
0x2dcd   :  { %2277 = vrot.lane.b32.xlu1 %v2273_v4, %s6775_s29 }
0x2dce   :  { %v2270_v15 = vpop.permute.xlu1 %2269 }
0x2dcf   :  { %v2274_v3 = vmul.f32 %v2270_v15, %v2240_v53 }
0x2dd1   :  { %2004 = vbcast.lane.b32.xlu1 %v2002_v39, 256  ;;  %2279 = vrot.lane.b32.xlu0 %v2274_v3, %s6775_s29 }
0x2dd5   :  { %2008 = vbcast.lane.b32.xlu1 %v2002_v39, 264  ;;  %2015 = vbcast.lane.b32.xlu0 %v7309_v16, 256 }
0x2e3f   :  { %v7314_v20 = vpop.permute.xlu1 %2277 }
0x2e40   :  { %5847 = vmatprep.mubr.msk.f32.mxu0 %vm111_vm4, %v7314_v20 }
0x2e43   :  { %v7318_v44 = vpop.permute.xlu0 %2279  ;;  %v2005_v0 = vpop.permute.xlu1 %2004 }
0x2e44   :  { %5848 = vmatmul.mubr.msk.f32.vlgmr.msra.gmra.mrb[26].mxu0 %vm111_vm4, %v7318_v44  ;;  %v2104_v30 = vmul.f32 %v7275_v24, %v2005_v0 }
0x2e45   :  { %6239 = vmatpush3.bf16.msra.mxu0 %v7238_v2 }
0x2e46   :  { %6241 = vmatprep.subr.bf16.mxu0 %v7243_v13  ;;  %v2128_v36 = vadd.f32 %v7278_v27, %v2104_v30 }
0x2e47   :  { %v2009_v21 = vpop.permute.xlu1 %2008  ;;  %v2016_v39 = vpop.permute.xlu0 %2015 }
0x2e48   :  { %v2105_v7 = vmul.f32 %v7275_v24, %v2009_v21  ;;  %v2106_v0 = vmul.f32 %v7275_v24, %v2016_v39 }
0x2e49   :  { %6243 = vmatpush3.bf16.msra.mxu0 %v7243_v13 }
0x2e4a   :  { %6253 = vmatprep.subr.bf16.mxu0 %v7238_v2  ;;  %v2129_v17 = vadd.f32 %v7278_v27, %v2105_v7  ;;  %v2130_v30 = vadd.f32 %v7278_v27, %v2106_v0 }
0x2f17   :  { %v5849_v33 = vpop.f32.mrb[26].mxu0 }
0x2f18   :  { %v2361_v37 = vadd.f32 %v5849_v33, %v2129_v17  ;;  %v2351_v38 = vpop.f32.mrb[27].mxu0 }
0x2f19   :  { %v2360_v41 = vadd.f32 %v2351_v38, %v2128_v36 }
0x2f1a   :  { %v2363_v42 = vmul.f32 %v2361_v37, %v6864_v22 }
0x2f1b   :  { %v2362_v43 = vmul.f32 %v2360_v41, %v6864_v22 }
0x2f1c   :  { %v5262_v45 = vmul.f32 -1.442695, %v2363_v42 }
0x2f1d   :  { %v5261_v47 = vmul.f32 -1.442695, %v2362_v43 }
0x2f1e   :  { %6542 = vpow2.f32 %v5262_v45 }
0x2f1f   :  { %6544 = vpow2.f32 %v5261_v47 }
0x2f28   :  { %v6543_v32 = vpop.eup %6542 }
0x2f29   :  { %v6545_v9 = vpop.eup %6544  ;;  %v2371_v48 = vadd.f32 1.0, %v6543_v32 }
0x2f2a   :  { %v2370_v49 = vadd.f32 1.0, %v6545_v9 }
0x2f2b   :  { %6546 = vrcp.f32 %v2371_v48 }
0x2f2c   :  { %6548 = vrcp.f32 %v2370_v49 }
0x2f35   :  { %v6547_v28 = vpop.eup %6546 }
0x2f36   :  { %v6549_v14 = vpop.eup %6548  ;;  %v2377_v51 = vmul.f32 %v6547_v28, %v6864_v22 }
0x2f37   :  { %v2376_v19 = vmul.f32 %v6549_v14, %v6864_v22 }
0x2f38   :  { %v2379_v10 = vadd.f32 %v2377_v51, %v6868_v31 }
0x2f39   :  { %v2378_v50 = vadd.f32 %v2376_v19, %v6868_v31 }
0x2f3a   :  { %v2381_v6 = vmul.f32 %v2379_v10, %v7297_v29 }
0x2f3b   :  { %2384 = vrot.lane.b32.xlu1 %v2378_v50, %s6774_s28  ;;  %v2380_v55 = vmul.f32 %v2378_v50, %v7294_v1 }
0x2f3f   :  { %2386 = vrot.lane.b32.xlu1 %v2379_v10, %s6774_s28 }
0x2fad   :  { %v2385_v58 = vpop.permute.xlu1 %2384 }
0x2fae   :  { %v2390_v26 = vmul.f32 %v2385_v58, %v2378_v50 }
0x2fb0   :  { %2394 = vrot.lane.b32.xlu1 %v2390_v26, %s6775_s29 }
0x2fb1   :  { %v2387_v53 = vpop.permute.xlu1 %2386 }
0x2fb2   :  { %v2391_v54 = vmul.f32 %v2387_v53, %v2379_v10 }
0x2fb4   :  { %2396 = vrot.lane.b32.xlu1 %v2391_v54, %s6775_s29 }
0x3022   :  { %v2395_v56 = vpop.permute.xlu1 %2394 }
0x3023   :  { %v7341_v57 = vadd.f32 %v2395_v56, %v2380_v55 }
0x3025   :  { %6550 = vtanh.f32 %v7341_v57 }
0x3026   :  { %v2397_v59 = vpop.permute.xlu1 %2396 }
0x3027   :  { %v2401_v52 = vadd.f32 %v2397_v59, %v2381_v6 }
0x3029   :  { %6552 = vtanh.f32 %v2401_v52 }
0x302f   :  { %v6551_v60 = vpop.eup %6550 }
0x3030   :  { %2406 = vrot.lane.b32.xlu1 %v6551_v60, %s6774_s28 }
0x3033   :  { %v6553_v62 = vpop.eup %6552 }
0x3034   :  { %2408 = vrot.lane.b32.xlu1 %v6553_v62, %s6774_s28 }
0x30a2   :  { %v2407_v63 = vpop.permute.xlu1 %2406 }
0x30a3   :  { %v2412_v46 = vmul.f32 %v2407_v63, %v2378_v50 }
0x30a5   :  { %2416 = vrot.lane.b32.xlu1 %v2412_v46, %s6775_s29 }
0x30a6   :  { %v2409_v1 = vpop.permute.xlu1 %2408 }
0x30a7   :  { %v2413_v4 = vmul.f32 %v2409_v1, %v2379_v10 }
0x30a9   :  { %2418 = vrot.lane.b32.xlu1 %v2413_v4, %s6775_s29 }
0x30ad   :  { %2019 = vbcast.lane.b32.xlu1 %v7309_v16, 264 }
0x3117   :  { %v7350_v29 = vpop.permute.xlu1 %2416 }
0x3118   :  { %5858 = vmatprep.mubr.msk.f32.mxu1 %vm111_vm4, %v7350_v29 }
0x311b   :  { %v7354_v15 = vpop.permute.xlu1 %2418 }
0x311c   :  { %5859 = vmatmul.mubr.msk.f32.vlgmr.msra.gmra.mrb[18].mxu1 %vm111_vm4, %v7354_v15 }
0x311d   :  { %6247 = vmatpush3.bf16.msra.mxu1 %v7238_v2 }
0x311e   :  { %6249 = vmatprep.subr.bf16.mxu1 %v7243_v13 }
0x311f   :  { %v2020_v3 = vpop.permute.xlu1 %2019 }
0x3120   :  { %v2107_v16 = vmul.f32 %v7275_v24, %v2020_v3 }
0x3121   :  { %6251 = vmatpush3.bf16.msra.mxu1 %v7243_v13 }
0x3122   :  { %6261 = vmatprep.subr.bf16.mxu1 %v7238_v2  ;;  %v2131_v21 = vadd.f32 %v7278_v27, %v2107_v16 }
0x31ef   :  { %v5860_v7 = vpop.f32.mrb[18].mxu1 }
0x31f0   :  { %v2500_v17 = vadd.f32 %v5860_v7, %v2131_v21  ;;  %v2490_v33 = vpop.f32.mrb[19].mxu1 }
0x31f1   :  { %v2499_v36 = vadd.f32 %v2490_v33, %v2130_v30 }
0x31f2   :  { %v2502_v37 = vmul.f32 %v2500_v17, %v6864_v22 }
0x31f3   :  { %v2501_v38 = vmul.f32 %v2499_v36, %v6864_v22 }
0x31f4   :  { %v5266_v41 = vmul.f32 -1.442695, %v2502_v37 }
0x31f5   :  { %v5265_v42 = vmul.f32 -1.442695, %v2501_v38 }
0x31f6   :  { %6554 = vpow2.f32 %v5266_v41 }
0x31f7   :  { %6556 = vpow2.f32 %v5265_v42 }
0x3200   :  { %v6555_v43 = vpop.eup %6554 }
0x3201   :  { %v6557_v45 = vpop.eup %6556  ;;  %v2510_v47 = vadd.f32 1.0, %v6555_v43 }
0x3202   :  { %v2509_v32 = vadd.f32 1.0, %v6557_v45 }
0x3203   :  { %6558 = vrcp.f32 %v2510_v47 }
0x3204   :  { %6560 = vrcp.f32 %v2509_v32 }
0x320d   :  { %v6559_v9 = vpop.eup %6558 }
0x320e   :  { %v6561_v48 = vpop.eup %6560  ;;  %v2516_v49 = vmul.f32 %v6559_v9, %v6864_v22 }
0x320f   :  { %v2515_v28 = vmul.f32 %v6561_v48, %v6864_v22 }
0x3210   :  { %v2518_v14 = vadd.f32 %v2516_v49, %v6868_v31 }
0x3211   :  { %v2517_v19 = vadd.f32 %v2515_v28, %v6868_v31 }
0x3212   :  { %2525 = vrot.lane.b32.xlu1 %v2518_v14, %s6774_s28  ;;  %v2520_v26 = vmul.f32 %v2518_v14, %v2401_v52 }
0x3213   :  { %2523 = vrot.lane.b32.xlu0 %v2517_v19, %s6774_s28  ;;  %v2519_v54 = vmul.f32 %v2517_v19, %v7341_v57  ;;  %v2024_v57 = vrot.slane %v7264_v23, %v54_v35 }
0x3284   :  { %v2526_v50 = vpop.permute.xlu1 %2525 }
0x3285   :  { %v2530_v51 = vmul.f32 %v2526_v50, %v2518_v14  ;;  %v2524_v10 = vpop.permute.xlu0 %2523 }
0x3286   :  { %v2529_v58 = vmul.f32 %v2524_v10, %v2517_v19 }
0x3287   :  { %2535 = vrot.lane.b32.xlu1 %v2530_v51, %s6775_s29 }
0x3288   :  { %2533 = vrot.lane.b32.xlu0 %v2529_v58, %s6775_s29 }
0x32f9   :  { %v2536_v53 = vpop.permute.xlu1 %2535 }
0x32fa   :  { %v2540_v55 = vadd.f32 %v2536_v53, %v2520_v26  ;;  %v2534_v56 = vpop.permute.xlu0 %2533 }
0x32fb   :  { %v2539_v6 = vadd.f32 %v2534_v56, %v2519_v54 }
0x32fc   :  { %6562 = vtanh.f32 %v2540_v55 }
0x32fd   :  { %6564 = vtanh.f32 %v2539_v6 }
0x3306   :  { %v6563_v59 = vpop.eup %6562 }
0x3307   :  { %v6565_v60 = vpop.eup %6564  ;;  %2547 = vrot.lane.b32.xlu1 %v6563_v59, %s6774_s28 }
0x3308   :  { %2545 = vrot.lane.b32.xlu0 %v6565_v60, %s6774_s28 }
0x3379   :  { %v2548_v62 = vpop.permute.xlu1 %2547 }
0x337a   :  { %v2552_v63 = vmul.f32 %v2548_v62, %v2518_v14  ;;  %v2546_v46 = vpop.permute.xlu0 %2545 }
0x337b   :  { %v2551_v1 = vmul.f32 %v2546_v46, %v2517_v19 }
0x337c   :  { %2557 = vrot.lane.b32.xlu1 %v2552_v63, %s6775_s29 }
0x337d   :  { %2555 = vrot.lane.b32.xlu0 %v2551_v1, %s6775_s29 }
0x3380   :  { %2030 = vbcast.lane.b32.xlu1 %v2024_v57, 264 }
0x3381   :  { %2026 = vbcast.lane.b32.xlu0 %v2024_v57, 256 }
0x33ee   :  { %v7386_v4 = vpop.permute.xlu1 %2557 }
0x33ef   :  { %v7384_v52 = vpop.permute.xlu0 %2555 }
0x33f0   :  { %5869 = vmatprep.mubr.msk.f32.mxu0 %vm111_vm4, %v7384_v52 }
0x33f1   :  { %5870 = vmatmul.mubr.msk.f32.vlgmr.msra.gmra.mrb[28].mxu0 %vm111_vm4, %v7386_v4 }
0x33f2   :  { %6255 = vmatpush3.bf16.msra.mxu0 %v7238_v2  ;;  %v2031_v35 = vpop.permute.xlu1 %2030 }
0x33f3   :  { %6257 = vmatprep.subr.bf16.mxu0 %v7243_v13  ;;  %v2027_v3 = vpop.permute.xlu0 %2026  ;;  %v2109_v39 = vmul.f32 %v7275_v24, %v2031_v35 }
0x33f4   :  { %v2108_v16 = vmul.f32 %v7275_v24, %v2027_v3 }
0x33f5   :  { %v2133_v0 = vadd.f32 %v7278_v27, %v2109_v39 }
0x33f6   :  { %6259 = vmatpush3.bf16.msra.mxu0 %v7243_v13  ;;  %v2132_v7 = vadd.f32 %v7278_v27, %v2108_v16 }
0x33f7   :  { %6269 = vmatprep.subr.bf16.mxu0 %v7238_v2 }
0x34c4   :  { %v5871_v21 = vpop.f32.mrb[28].mxu0 }
0x34c5   :  { %v2639_v30 = vadd.f32 %v5871_v21, %v2133_v0  ;;  %v2629_v17 = vpop.f32.mrb[29].mxu0 }
0x34c6   :  { %v2638_v33 = vadd.f32 %v2629_v17, %v2132_v7 }
0x34c7   :  { %v2641_v36 = vmul.f32 %v2639_v30, %v6864_v22 }
0x34c8   :  { %v2640_v37 = vmul.f32 %v2638_v33, %v6864_v22 }
0x34c9   :  { %v5270_v38 = vmul.f32 -1.442695, %v2641_v36 }
0x34ca   :  { %v5269_v41 = vmul.f32 -1.442695, %v2640_v37 }
0x34cb   :  { %6566 = vpow2.f32 %v5270_v38 }
0x34cc   :  { %6568 = vpow2.f32 %v5269_v41 }
0x34d5   :  { %v6567_v42 = vpop.eup %6566 }
0x34d6   :  { %v6569_v43 = vpop.eup %6568  ;;  %v2649_v45 = vadd.f32 1.0, %v6567_v42 }
0x34d7   :  { %v2648_v47 = vadd.f32 1.0, %v6569_v43 }
0x34d8   :  { %6570 = vrcp.f32 %v2649_v45 }
0x34d9   :  { %6572 = vrcp.f32 %v2648_v47 }
0x34e2   :  { %v6571_v32 = vpop.eup %6570 }
0x34e3   :  { %v6573_v9 = vpop.eup %6572  ;;  %v2655_v48 = vmul.f32 %v6571_v32, %v6864_v22 }
0x34e4   :  { %v2654_v49 = vmul.f32 %v6573_v9, %v6864_v22 }
0x34e5   :  { %v2657_v28 = vadd.f32 %v2655_v48, %v6868_v31 }
0x34e6   :  { %v2656_v14 = vadd.f32 %v2654_v49, %v6868_v31 }
0x34e7   :  { %2664 = vrot.lane.b32.xlu1 %v2657_v28, %s6774_s28  ;;  %v2659_v58 = vmul.f32 %v2657_v28, %v2540_v55  ;;  %v2035_v55 = vrot.slane %v7264_v23, %v61_v61 }
0x34e8   :  { %2662 = vrot.lane.b32.xlu0 %v2656_v14, %s6774_s28  ;;  %v2658_v53 = vmul.f32 %v2656_v14, %v2539_v6 }
0x3559   :  { %v2665_v19 = vpop.permute.xlu1 %2664 }
0x355a   :  { %v2669_v50 = vmul.f32 %v2665_v19, %v2657_v28  ;;  %v2663_v51 = vpop.permute.xlu0 %2662 }
0x355b   :  { %v2668_v10 = vmul.f32 %v2663_v51, %v2656_v14 }
0x355c   :  { %2674 = vrot.lane.b32.xlu1 %v2669_v50, %s6775_s29 }
0x355d   :  { %2672 = vrot.lane.b32.xlu0 %v2668_v10, %s6775_s29 }
0x35ce   :  { %v2675_v26 = vpop.permute.xlu1 %2674 }
0x35cf   :  { %v2679_v54 = vadd.f32 %v2675_v26, %v2659_v58  ;;  %v2673_v56 = vpop.permute.xlu0 %2672 }
0x35d0   :  { %v2678_v59 = vadd.f32 %v2673_v56, %v2658_v53 }
0x35d1   :  { %6574 = vtanh.f32 %v2679_v54 }
0x35d2   :  { %6576 = vtanh.f32 %v2678_v59 }
0x35db   :  { %v6575_v60 = vpop.eup %6574 }
0x35dc   :  { %v6577_v62 = vpop.eup %6576  ;;  %2686 = vrot.lane.b32.xlu1 %v6575_v60, %s6774_s28 }
0x35dd   :  { %2684 = vrot.lane.b32.xlu0 %v6577_v62, %s6774_s28 }
0x364e   :  { %v2687_v63 = vpop.permute.xlu1 %2686 }
0x364f   :  { %v2691_v46 = vmul.f32 %v2687_v63, %v2657_v28  ;;  %v2685_v1 = vpop.permute.xlu0 %2684 }
0x3650   :  { %v2690_v57 = vmul.f32 %v2685_v1, %v2656_v14 }
0x3651   :  { %2696 = vrot.lane.b32.xlu1 %v2691_v46, %s6775_s29 }
0x3652   :  { %2694 = vrot.lane.b32.xlu0 %v2690_v57, %s6775_s29 }
0x3655   :  { %2041 = vbcast.lane.b32.xlu1 %v2035_v55, 264 }
0x3656   :  { %2037 = vbcast.lane.b32.xlu0 %v2035_v55, 256 }
0x36c3   :  { %v7419_v35 = vpop.permute.xlu1 %2696 }
0x36c4   :  { %v7417_v6 = vpop.permute.xlu0 %2694 }
0x36c5   :  { %5880 = vmatprep.mubr.msk.f32.mxu1 %vm111_vm4, %v7417_v6 }
0x36c6   :  { %5881 = vmatmul.mubr.msk.f32.vlgmr.msra.gmra.mrb[20].mxu1 %vm111_vm4, %v7419_v35 }
0x36c7   :  { %6263 = vmatpush3.bf16.msra.mxu1 %v7238_v2  ;;  %v2042_v61 = vpop.permute.xlu1 %2041 }
0x36c8   :  { %6265 = vmatprep.subr.bf16.mxu1 %v7243_v13  ;;  %v2038_v3 = vpop.permute.xlu0 %2037  ;;  %v2111_v39 = vmul.f32 %v7275_v24, %v2042_v61 }
0x36c9   :  { %v2110_v16 = vmul.f32 %v7275_v24, %v2038_v3 }
0x36ca   :  { %v2135_v0 = vadd.f32 %v7278_v27, %v2111_v39 }
0x36cb   :  { %6267 = vmatpush3.bf16.msra.mxu1 %v7243_v13  ;;  %v2134_v7 = vadd.f32 %v7278_v27, %v2110_v16 }
0x36cc   :  { %6277 = vmatprep.subr.bf16.mxu1 %v7238_v2 }
0x3799   :  { %v5882_v21 = vpop.f32.mrb[20].mxu1 }
0x379a   :  { %v2778_v30 = vadd.f32 %v5882_v21, %v2135_v0  ;;  %v2768_v17 = vpop.f32.mrb[21].mxu1 }
0x379b   :  { %v2777_v33 = vadd.f32 %v2768_v17, %v2134_v7 }
0x379c   :  { %v2780_v36 = vmul.f32 %v2778_v30, %v6864_v22 }
0x379d   :  { %v2779_v37 = vmul.f32 %v2777_v33, %v6864_v22 }
0x379e   :  { %v5274_v38 = vmul.f32 -1.442695, %v2780_v36 }
0x379f   :  { %v5273_v41 = vmul.f32 -1.442695, %v2779_v37 }
0x37a0   :  { %6578 = vpow2.f32 %v5274_v38 }
0x37a1   :  { %6580 = vpow2.f32 %v5273_v41 }
0x37aa   :  { %v6579_v42 = vpop.eup %6578 }
0x37ab   :  { %v6581_v43 = vpop.eup %6580  ;;  %v2788_v45 = vadd.f32 1.0, %v6579_v42 }
0x37ac   :  { %v2787_v47 = vadd.f32 1.0, %v6581_v43 }
0x37ad   :  { %6582 = vrcp.f32 %v2788_v45 }
0x37ae   :  { %6584 = vrcp.f32 %v2787_v47 }
0x37b7   :  { %v6583_v32 = vpop.eup %6582 }
0x37b8   :  { %v6585_v9 = vpop.eup %6584  ;;  %v2794_v48 = vmul.f32 %v6583_v32, %v6864_v22 }
0x37b9   :  { %v2793_v49 = vmul.f32 %v6585_v9, %v6864_v22 }
0x37ba   :  { %v2796_v28 = vadd.f32 %v2794_v48, %v6868_v31 }
0x37bb   :  { %v2795_v14 = vadd.f32 %v2793_v49, %v6868_v31 }
0x37bc   :  { %2803 = vrot.lane.b32.xlu1 %v2796_v28, %s6774_s28  ;;  %v2798_v58 = vmul.f32 %v2796_v28, %v2679_v54  ;;  %v2046_v54 = vrot.slane %v7264_v23, %v68_v34 }
0x37bd   :  { %2801 = vrot.lane.b32.xlu0 %v2795_v14, %s6774_s28  ;;  %v2797_v53 = vmul.f32 %v2795_v14, %v2678_v59 }
0x382e   :  { %v2804_v19 = vpop.permute.xlu1 %2803 }
0x382f   :  { %v2808_v50 = vmul.f32 %v2804_v19, %v2796_v28  ;;  %v2802_v51 = vpop.permute.xlu0 %2801 }
0x3830   :  { %v2807_v10 = vmul.f32 %v2802_v51, %v2795_v14 }
0x3831   :  { %2813 = vrot.lane.b32.xlu1 %v2808_v50, %s6775_s29 }
0x3832   :  { %2811 = vrot.lane.b32.xlu0 %v2807_v10, %s6775_s29 }
0x38a3   :  { %v2814_v26 = vpop.permute.xlu1 %2813 }
0x38a4   :  { %v2818_v56 = vadd.f32 %v2814_v26, %v2798_v58  ;;  %v2812_v60 = vpop.permute.xlu0 %2811 }
0x38a5   :  { %v2817_v62 = vadd.f32 %v2812_v60, %v2797_v53 }
0x38a6   :  { %6586 = vtanh.f32 %v2818_v56 }
0x38a7   :  { %6588 = vtanh.f32 %v2817_v62 }
0x38b0   :  { %v6587_v63 = vpop.eup %6586 }
0x38b1   :  { %v6589_v46 = vpop.eup %6588  ;;  %2825 = vrot.lane.b32.xlu1 %v6587_v63, %s6774_s28 }
0x38b2   :  { %2823 = vrot.lane.b32.xlu0 %v6589_v46, %s6774_s28 }
0x3923   :  { %v2826_v1 = vpop.permute.xlu1 %2825 }
0x3924   :  { %v2830_v57 = vmul.f32 %v2826_v1, %v2796_v28  ;;  %v2824_v55 = vpop.permute.xlu0 %2823 }
0x3925   :  { %v2829_v61 = vmul.f32 %v2824_v55, %v2795_v14 }
0x3926   :  { %2835 = vrot.lane.b32.xlu1 %v2830_v57, %s6775_s29 }
0x3927   :  { %2833 = vrot.lane.b32.xlu0 %v2829_v61, %s6775_s29 }
0x392a   :  { %2052 = vbcast.lane.b32.xlu1 %v2046_v54, 264 }
0x392b   :  { %2048 = vbcast.lane.b32.xlu0 %v2046_v54, 256 }
0x3998   :  { %v7452_v3 = vpop.permute.xlu1 %2835 }
0x3999   :  { %v7450_v59 = vpop.permute.xlu0 %2833 }
0x399a   :  { %5891 = vmatprep.mubr.msk.f32.mxu0 %vm111_vm4, %v7450_v59 }
0x399b   :  { %5892 = vmatmul.mubr.msk.f32.vlgmr.msra.gmra.mrb[30].mxu0 %vm111_vm4, %v7452_v3 }
0x399c   :  { %6271 = vmatpush3.bf16.msra.mxu0 %v7238_v2  ;;  %v2053_v34 = vpop.permute.xlu1 %2052 }
0x399d   :  { %6273 = vmatprep.subr.bf16.mxu0 %v7243_v13  ;;  %v2049_v39 = vpop.permute.xlu0 %2048  ;;  %v2113_v16 = vmul.f32 %v7275_v24, %v2053_v34 }
0x399e   :  { %v2112_v0 = vmul.f32 %v7275_v24, %v2049_v39 }
0x399f   :  { %v2137_v21 = vadd.f32 %v7278_v27, %v2113_v16 }
0x39a0   :  { %6275 = vmatpush3.bf16.msra.mxu0 %v7243_v13  ;;  %v2136_v30 = vadd.f32 %v7278_v27, %v2112_v0 }
0x39a1   :  { %6285 = vmatprep.subr.bf16.mxu0 %v7238_v2 }
0x3a6e   :  { %v5893_v7 = vpop.f32.mrb[30].mxu0 }
0x3a6f   :  { %v2917_v17 = vadd.f32 %v5893_v7, %v2137_v21  ;;  %v2907_v33 = vpop.f32.mrb[31].mxu0 }
0x3a70   :  { %v2916_v36 = vadd.f32 %v2907_v33, %v2136_v30 }
0x3a71   :  { %v2919_v37 = vmul.f32 %v2917_v17, %v6864_v22 }
0x3a72   :  { %v2918_v38 = vmul.f32 %v2916_v36, %v6864_v22 }
0x3a73   :  { %v5278_v41 = vmul.f32 -1.442695, %v2919_v37 }
0x3a74   :  { %v5277_v42 = vmul.f32 -1.442695, %v2918_v38 }
0x3a75   :  { %6590 = vpow2.f32 %v5278_v41 }
0x3a76   :  { %6592 = vpow2.f32 %v5277_v42 }
0x3a7f   :  { %v6591_v43 = vpop.eup %6590 }
0x3a80   :  { %v6593_v45 = vpop.eup %6592  ;;  %v2927_v47 = vadd.f32 1.0, %v6591_v43 }
0x3a81   :  { %v2926_v32 = vadd.f32 1.0, %v6593_v45 }
0x3a82   :  { %6594 = vrcp.f32 %v2927_v47 }
0x3a83   :  { %6596 = vrcp.f32 %v2926_v32 }
0x3a8c   :  { %v6595_v9 = vpop.eup %6594 }
0x3a8d   :  { %v6597_v48 = vpop.eup %6596  ;;  %v2933_v49 = vmul.f32 %v6595_v9, %v6864_v22 }
0x3a8e   :  { %v2932_v28 = vmul.f32 %v6597_v48, %v6864_v22 }
0x3a8f   :  { %v2935_v14 = vadd.f32 %v2933_v49, %v6868_v31 }
0x3a90   :  { %v2934_v19 = vadd.f32 %v2932_v28, %v6868_v31 }
0x3a91   :  { %2942 = vrot.lane.b32.xlu1 %v2935_v14, %s6774_s28  ;;  %v2937_v26 = vmul.f32 %v2935_v14, %v2818_v56  ;;  %v2057_v56 = vrot.slane %v7264_v23, %v75_v12 }
0x3a92   :  { %2940 = vrot.lane.b32.xlu0 %v2934_v19, %s6774_s28  ;;  %v2936_v60 = vmul.f32 %v2934_v19, %v2817_v62 }
0x3b03   :  { %v2943_v50 = vpop.permute.xlu1 %2942 }
0x3b04   :  { %v2947_v51 = vmul.f32 %v2943_v50, %v2935_v14  ;;  %v2941_v10 = vpop.permute.xlu0 %2940 }
0x3b05   :  { %v2946_v58 = vmul.f32 %v2941_v10, %v2934_v19 }
0x3b06   :  { %2952 = vrot.lane.b32.xlu1 %v2947_v51, %s6775_s29 }
0x3b07   :  { %2950 = vrot.lane.b32.xlu0 %v2946_v58, %s6775_s29 }
0x3b78   :  { %v2953_v53 = vpop.permute.xlu1 %2952 }
0x3b79   :  { %v2957_v63 = vadd.f32 %v2953_v53, %v2937_v26  ;;  %v2951_v46 = vpop.permute.xlu0 %2950 }
0x3b7a   :  { %v2956_v1 = vadd.f32 %v2951_v46, %v2936_v60 }
0x3b7b   :  { %6598 = vtanh.f32 %v2957_v63 }
0x3b7c   :  { %6600 = vtanh.f32 %v2956_v1 }
0x3b85   :  { %v6599_v57 = vpop.eup %6598 }
0x3b86   :  { %v6601_v55 = vpop.eup %6600  ;;  %2964 = vrot.lane.b32.xlu1 %v6599_v57, %s6774_s28 }
0x3b87   :  { %2962 = vrot.lane.b32.xlu0 %v6601_v55, %s6774_s28 }
0x3bf8   :  { %v2965_v61 = vpop.permute.xlu1 %2964 }
0x3bf9   :  { %v2969_v54 = vmul.f32 %v2965_v61, %v2935_v14  ;;  %v2963_v34 = vpop.permute.xlu0 %2962 }
0x3bfa   :  { %v2968_v39 = vmul.f32 %v2963_v34, %v2934_v19 }
0x3bfb   :  { %2974 = vrot.lane.b32.xlu1 %v2969_v54, %s6775_s29 }
0x3bfc   :  { %2972 = vrot.lane.b32.xlu0 %v2968_v39, %s6775_s29 }
0x3bff   :  { %2063 = vbcast.lane.b32.xlu1 %v2057_v56, 264 }
0x3c00   :  { %2059 = vbcast.lane.b32.xlu0 %v2057_v56, 256 }
0x3c6d   :  { %v7485_v16 = vpop.permute.xlu1 %2974 }
0x3c6e   :  { %v7483_v62 = vpop.permute.xlu0 %2972 }
0x3c6f   :  { %5902 = vmatprep.mubr.msk.f32.mxu1 %vm111_vm4, %v7483_v62 }
0x3c70   :  { %5903 = vmatmul.mubr.msk.f32.vlgmr.msra.gmra.mrb[22].mxu1 %vm111_vm4, %v7485_v16 }
0x3c71   :  { %6279 = vmatpush3.bf16.msra.mxu1 %v7238_v2  ;;  %v2064_v0 = vpop.permute.xlu1 %2063 }
0x3c72   :  { %6281 = vmatprep.subr.bf16.mxu1 %v7243_v13  ;;  %v2060_v12 = vpop.permute.xlu0 %2059  ;;  %v2115_v21 = vmul.f32 %v7275_v24, %v2064_v0 }
0x3c73   :  { %v2114_v7 = vmul.f32 %v7275_v24, %v2060_v12 }
0x3c74   :  { %v2139_v30 = vadd.f32 %v7278_v27, %v2115_v21 }
0x3c75   :  { %6283 = vmatpush3.bf16.msra.mxu1 %v7243_v13  ;;  %v2138_v33 = vadd.f32 %v7278_v27, %v2114_v7 }
0x3d43   :  { %v5904_v17 = vpop.f32.mrb[22].mxu1 }
0x3d44   :  { %v3056_v36 = vadd.f32 %v5904_v17, %v2139_v30  ;;  %v3046_v37 = vpop.f32.mrb[23].mxu1 }
0x3d45   :  { %v3055_v38 = vadd.f32 %v3046_v37, %v2138_v33 }
0x3d46   :  { %v3058_v41 = vmul.f32 %v3056_v36, %v6864_v22 }
0x3d47   :  { %v3057_v42 = vmul.f32 %v3055_v38, %v6864_v22 }
0x3d48   :  { %v5282_v43 = vmul.f32 -1.442695, %v3058_v41 }
0x3d49   :  { %v5281_v45 = vmul.f32 -1.442695, %v3057_v42 }
0x3d4a   :  { %6602 = vpow2.f32 %v5282_v43 }
0x3d4b   :  { %6604 = vpow2.f32 %v5281_v45 }
0x3d54   :  { %v6603_v47 = vpop.eup %6602 }
0x3d55   :  { %v6605_v32 = vpop.eup %6604  ;;  %v3066_v9 = vadd.f32 1.0, %v6603_v47 }
0x3d56   :  { %v3065_v48 = vadd.f32 1.0, %v6605_v32 }
0x3d57   :  { %6606 = vrcp.f32 %v3066_v9 }
0x3d58   :  { %6608 = vrcp.f32 %v3065_v48 }
0x3d61   :  { %v6607_v49 = vpop.eup %6606 }
0x3d62   :  { %v6609_v28 = vpop.eup %6608  ;;  %v3072_v14 = vmul.f32 %v6607_v49, %v6864_v22 }
0x3d63   :  { %v3071_v19 = vmul.f32 %v6609_v28, %v6864_v22 }
0x3d64   :  { %v3074_v50 = vadd.f32 %v3072_v14, %v6868_v31 }
0x3d65   :  { %v3073_v51 = vadd.f32 %v3071_v19, %v6868_v31 }
0x3d66   :  { %3081 = vrot.lane.b32.xlu1 %v3074_v50, %s6774_s28  ;;  %v3076_v60 = vmul.f32 %v3074_v50, %v2957_v63  ;;  %v2068_v63 = vrot.slane %v7264_v23, %v82_v25 }
0x3d67   :  { %3079 = vrot.lane.b32.xlu0 %v3073_v51, %s6774_s28  ;;  %v3075_v57 = vmul.f32 %v3073_v51, %v2956_v1 }
0x3dd8   :  { %v3082_v10 = vpop.permute.xlu1 %3081 }
0x3dd9   :  { %v3086_v58 = vmul.f32 %v3082_v10, %v3074_v50  ;;  %v3080_v26 = vpop.permute.xlu0 %3079 }
0x3dda   :  { %v3085_v53 = vmul.f32 %v3080_v26, %v3073_v51 }
0x3ddb   :  { %3091 = vrot.lane.b32.xlu1 %v3086_v58, %s6775_s29 }
0x3ddc   :  { %3089 = vrot.lane.b32.xlu0 %v3085_v53, %s6775_s29 }
0x3e4d   :  { %v3092_v46 = vpop.permute.xlu1 %3091 }
0x3e4e   :  { %v3096_v55 = vadd.f32 %v3092_v46, %v3076_v60  ;;  %v3090_v61 = vpop.permute.xlu0 %3089 }
0x3e4f   :  { %v3095_v54 = vadd.f32 %v3090_v61, %v3075_v57 }
0x3e50   :  { %6610 = vtanh.f32 %v3096_v55 }
0x3e51   :  { %6612 = vtanh.f32 %v3095_v54 }
0x3e5a   :  { %v6611_v34 = vpop.eup %6610 }
0x3e5b   :  { %v6613_v39 = vpop.eup %6612  ;;  %3103 = vrot.lane.b32.xlu1 %v6611_v34, %s6774_s28 }
0x3e5c   :  { %3101 = vrot.lane.b32.xlu0 %v6613_v39, %s6774_s28 }
0x3ecd   :  { %v3104_v56 = vpop.permute.xlu1 %3103 }
0x3ece   :  { %v3108_v0 = vmul.f32 %v3104_v56, %v3074_v50  ;;  %v3102_v12 = vpop.permute.xlu0 %3101 }
0x3ecf   :  { %v3107_v21 = vmul.f32 %v3102_v12, %v3073_v51 }
0x3ed0   :  { %3113 = vrot.lane.b32.xlu1 %v3108_v0, %s6775_s29 }
0x3ed1   :  { %3111 = vrot.lane.b32.xlu0 %v3107_v21, %s6775_s29 }
0x3ed4   :  { %2074 = vbcast.lane.b32.xlu1 %v2068_v63, 264 }
0x3ed5   :  { %2070 = vbcast.lane.b32.xlu0 %v2068_v63, 256 }
0x3f42   :  { %v7517_v7 = vpop.permute.xlu1 %3113 }
0x3f43   :  { %v7515_v1 = vpop.permute.xlu0 %3111 }
0x3f44   :  { %5913 = vmatprep.mubr.msk.f32.mxu0 %vm111_vm4, %v7515_v1 }
0x3f45   :  { %5914 = vmatmul.mubr.msk.f32.vlgmr.msra.gmra.mrb[32].mxu0 %vm111_vm4, %v7517_v7 }
0x3f46   :  { %6287 = vmatpush3.bf16.msra.mxu0 %v7238_v2  ;;  %v2075_v8 = vpop.permute.xlu1 %2074 }
0x3f47   :  { %6289 = vmatprep.subr.bf16.mxu0 %v7243_v13  ;;  %v2071_v25 = vpop.permute.xlu0 %2070  ;;  %v2117_v23 = vmul.f32 %v7275_v24, %v2075_v8 }
0x3f48   :  { %v2116_v30 = vmul.f32 %v7275_v24, %v2071_v25 }
0x3f49   :  { %v2141_v17 = vadd.f32 %v7278_v27, %v2117_v23 }
0x3f4a   :  { %6291 = vmatpush3.bf16.msra.mxu0 %v7243_v13  ;;  %v2140_v36 = vadd.f32 %v7278_v27, %v2116_v30 }
0x4018   :  { %v5915_v33 = vpop.f32.mrb[32].mxu0 }
0x4019   :  { %v3195_v37 = vadd.f32 %v5915_v33, %v2141_v17  ;;  %v3185_v38 = vpop.f32.mrb[33].mxu0 }
0x401a   :  { %v3194_v41 = vadd.f32 %v3185_v38, %v2140_v36 }
0x401b   :  { %v3197_v2 = vmul.f32 %v3195_v37, %v6864_v22 }
0x401c   :  { %v3196_v42 = vmul.f32 %v3194_v41, %v6864_v22 }
0x401d   :  { %v5286_v43 = vmul.f32 -1.442695, %v3197_v2 }
0x401e   :  { %v5285_v13 = vmul.f32 -1.442695, %v3196_v42 }
0x401f   :  { %6614 = vpow2.f32 %v5286_v43 }
0x4020   :  { %6616 = vpow2.f32 %v5285_v13 }
0x4029   :  { %v6615_v45 = vpop.eup %6614 }
0x402a   :  { %v6617_v47 = vpop.eup %6616  ;;  %v3205_v32 = vadd.f32 1.0, %v6615_v45 }
0x402b   :  { %v3204_v9 = vadd.f32 1.0, %v6617_v47 }
0x402c   :  { %6618 = vrcp.f32 %v3205_v32 }
0x402d   :  { %6620 = vrcp.f32 %v3204_v9 }
0x4036   :  { %v6619_v48 = vpop.eup %6618 }
0x4037   :  { %v6621_v49 = vpop.eup %6620  ;;  %v3211_v28 = vmul.f32 %v6619_v48, %v6864_v22 }
0x4038   :  { %v3210_v14 = vmul.f32 %v6621_v49, %v6864_v22 }
0x4039   :  { %v3213_v19 = vadd.f32 %v3211_v28, %v6868_v31 }
0x403a   :  { %v3212_v50 = vadd.f32 %v3210_v14, %v6868_v31 }
0x403b   :  { %3220 = vrot.lane.b32.xlu1 %v3213_v19, %s6774_s28  ;;  %v3215_v53 = vmul.f32 %v3213_v19, %v3096_v55  ;;  %v2079_v55 = vrot.slane %v7312_v18, %v6832_v11 }
0x403c   :  { %3218 = vrot.lane.b32.xlu0 %v3212_v50, %s6774_s28  ;;  %v3214_v46 = vmul.f32 %v3212_v50, %v3095_v54 }
0x40ad   :  { %v3221_v51 = vpop.permute.xlu1 %3220 }
0x40ae   :  { %v3225_v10 = vmul.f32 %v3221_v51, %v3213_v19  ;;  %v3219_v58 = vpop.permute.xlu0 %3218 }
0x40af   :  { %v3224_v26 = vmul.f32 %v3219_v58, %v3212_v50 }
0x40b0   :  { %3230 = vrot.lane.b32.xlu1 %v3225_v10, %s6775_s29 }
0x40b1   :  { %3228 = vrot.lane.b32.xlu0 %v3224_v26, %s6775_s29 }
0x4122   :  { %v3231_v60 = vpop.permute.xlu1 %3230 }
0x4123   :  { %v3235_v57 = vadd.f32 %v3231_v60, %v3215_v53  ;;  %v3229_v61 = vpop.permute.xlu0 %3228 }
0x4124   :  { %v3234_v34 = vadd.f32 %v3229_v61, %v3214_v46 }
0x4125   :  { %6622 = vtanh.f32 %v3235_v57 }
0x4126   :  { %6624 = vtanh.f32 %v3234_v34 }
0x412f   :  { %v6623_v39 = vpop.eup %6622 }
0x4130   :  { %v6625_v56 = vpop.eup %6624  ;;  %3242 = vrot.lane.b32.xlu1 %v6623_v39, %s6774_s28 }
0x4131   :  { %3240 = vrot.lane.b32.xlu0 %v6625_v56, %s6774_s28 }
0x41a2   :  { %v3243_v0 = vpop.permute.xlu1 %3242 }
0x41a3   :  { %v3247_v12 = vmul.f32 %v3243_v0, %v3213_v19  ;;  %v3241_v21 = vpop.permute.xlu0 %3240 }
0x41a4   :  { %v3246_v63 = vmul.f32 %v3241_v21, %v3212_v50 }
0x41a5   :  { %3252 = vrot.lane.b32.xlu1 %v3247_v12, %s6775_s29 }
0x41a6   :  { %3250 = vrot.lane.b32.xlu0 %v3246_v63, %s6775_s29 }
0x41a9   :  { %2085 = vbcast.lane.b32.xlu1 %v2079_v55, 264 }
0x41aa   :  { %2081 = vbcast.lane.b32.xlu0 %v2079_v55, 256  ;;  %v5299_v55 = vld [vmem:[%s8015_s2 + $0x68] sm:$0xff] }
0x4217   :  { %v7548_v8 = vpop.permute.xlu1 %3252 }
0x4218   :  { %v7546_v54 = vpop.permute.xlu0 %3250 }
0x4219   :  { %5924 = vmatprep.mubr.msk.f32.mxu1 %vm111_vm4, %v7546_v54 }
0x421a   :  { %5925 = vmatmul.mubr.msk.f32.vlgmr.msra.gmra.mrb[24].mxu1 %vm111_vm4, %v7548_v8 }
0x421b   :  { %5984 = vmatprep.mubr.f32.mxu1 %v6772_v5  ;;  %v2086_v25 = vpop.permute.xlu1 %2085 }
0x421c   :  { %v2082_v23 = vpop.permute.xlu0 %2081  ;;  %v2119_v30 = vmul.f32 %v7275_v24, %v2086_v25  ;;  %v5300_v25 = vld [vmem:[%s8015_s2 + $0x70] sm:$0xff] }
0x421d   :  { %v2118_v17 = vmul.f32 %v7275_v24, %v2082_v23  ;;  %v7589_v23 = vpack.c.bf16 %v5300_v25, %v5299_v55 }
0x421e   :  { %v2143_v33 = vadd.f32 %v7278_v27, %v2119_v30  ;;  %v5301_v30 = vld [vmem:[%s8015_s2 + $0x78] sm:$0xff] }
0x421f   :  { %v2142_v37 = vadd.f32 %v7278_v27, %v2118_v17  ;;  %6301 = vmatprep.subr.bf16.mxu1 %v7589_v23  ;;  %v5302_v17 = vld [vmem:[%s8015_s2 + $0x80] sm:$0xff] }
0x4220   :  { %6303 = vmatpush3.bf16.msra.mxu1 %v7589_v23 }
0x42ed   :  { %v5926_v36 = vpop.f32.mrb[24].mxu1 }
0x42ee   :  { %v3334_v38 = vadd.f32 %v5926_v36, %v2143_v33  ;;  %v3324_v41 = vpop.f32.mrb[25].mxu1  ;;  %v7599_v33 = vpack.c.bf16 %v5302_v17, %v5301_v30 }
0x42ef   :  { %v3333_v2 = vadd.f32 %v3324_v41, %v2142_v37 }
0x42f0   :  { %v3336_v42 = vmul.f32 %v3334_v38, %v6864_v22  ;;  %6305 = vmatprep.subr.bf16.mxu1 %v7599_v33 }
0x42f1   :  { %v3335_v43 = vmul.f32 %v3333_v2, %v6864_v22  ;;  %6307 = vmatpush3.bf16.msra.mxu1 %v7599_v33  ;;  %v5297_v2 = vld [vmem:[%s8015_s2 + $0x58] sm:$0xff] }
0x42f2   :  { %v5290_v13 = vmul.f32 -1.442695, %v3336_v42  ;;  %6309 = vmatprep.subr.bf16.mxu1 %v7589_v23 }
0x42f3   :  { %v5289_v45 = vmul.f32 -1.442695, %v3335_v43 }
0x42f4   :  { %6626 = vpow2.f32 %v5290_v13  ;;  %5985 = vmatmul.mubr.f32.vlgmr.msra.gmra.mrb[26].mxu1 %v6772_v5  ;;  %v5298_v5 = vld [vmem:[%s8015_s2 + $0x60] sm:$0xff] }
0x42f5   :  { %6628 = vpow2.f32 %v5289_v45  ;;  %6311 = vmatpush3.bf16.msra.mxu1 %v7589_v23  ;;  %v6296_v43 = vpack.c.bf16 %v5298_v5, %v5297_v2 }
0x42f6   :  { %6313 = vmatprep.subr.bf16.mxu1 %v7599_v33 }
0x42f9   :  { %6315 = vmatpush3.bf16.msra.mxu1 %v7599_v33 }
0x42fa   :  { %6317 = vmatprep.subr.bf16.mxu1 %v7589_v23 }
0x42fe   :  { %v6627_v47 = vpop.eup %6626 }
0x42ff   :  { %v6629_v32 = vpop.eup %6628  ;;  %v3344_v9 = vadd.f32 1.0, %v6627_v47 }
0x4300   :  { %v3343_v48 = vadd.f32 1.0, %v6629_v32 }
0x4301   :  { %6630 = vrcp.f32 %v3344_v9 }
0x4302   :  { %6632 = vrcp.f32 %v3343_v48 }
0x430b   :  { %v6631_v49 = vpop.eup %6630 }
0x430c   :  { %v6633_v28 = vpop.eup %6632  ;;  %v3350_v14 = vmul.f32 %v6631_v49, %v6864_v22 }
0x430d   :  { %v3349_v19 = vmul.f32 %v6633_v28, %v6864_v22 }
0x430e   :  { %v3352_v50 = vadd.f32 %v3350_v14, %v6868_v31 }
0x430f   :  { %v3351_v51 = vadd.f32 %v3349_v19, %v6868_v31 }
0x4310   :  { %3359 = vrot.lane.b32.xlu1 %v3352_v50, %s6774_s28  ;;  %v3354_v60 = vmul.f32 %v3352_v50, %v3235_v57  ;;  %v5295_v57 = vld [vmem:[%s8015_s2 + $0x48] sm:$0xff] }
0x4311   :  { %3357 = vrot.lane.b32.xlu0 %v3351_v51, %s6774_s28  ;;  %v3353_v61 = vmul.f32 %v3351_v51, %v3234_v34  ;;  %v5296_v34 = vld [vmem:[%s8015_s2 + $0x50] sm:$0xff] }
0x4312   :  { %v6292_v63 = vpack.c.bf16 %v5296_v34, %v5295_v57 }
0x4314   :  { %6293 = vmatprep.subr.bf16.mxu0 %v6292_v63 }
0x4382   :  { %v3360_v10 = vpop.permute.xlu1 %3359 }
0x4383   :  { %v3364_v58 = vmul.f32 %v3360_v10, %v3352_v50  ;;  %v3358_v26 = vpop.permute.xlu0 %3357 }
0x4384   :  { %v3363_v53 = vmul.f32 %v3358_v26, %v3351_v51 }
0x4385   :  { %3369 = vrot.lane.b32.xlu1 %v3364_v58, %s6775_s29 }
0x4386   :  { %3367 = vrot.lane.b32.xlu0 %v3363_v53, %s6775_s29 }
0x43f7   :  { %v3370_v46 = vpop.permute.xlu1 %3369 }
0x43f8   :  { %v7569_v39 = vadd.f32 %v3370_v46, %v3354_v60  ;;  %v3368_v56 = vpop.permute.xlu0 %3367 }
0x43f9   :  { %v7571_v0 = vadd.f32 %v3368_v56, %v3353_v61 }
0x43fa   :  { %6634 = vtanh.f32 %v7569_v39 }
0x43fb   :  { %6636 = vtanh.f32 %v7571_v0 }
0x4404   :  { %v6635_v12 = vpop.eup %6634 }
0x4405   :  { %v6637_v21 = vpop.eup %6636  ;;  %3381 = vrot.lane.b32.xlu1 %v6635_v12, %s6774_s28 }
0x4406   :  { %3379 = vrot.lane.b32.xlu0 %v6637_v21, %s6774_s28 }
0x4477   :  { %v3382_v36 = vpop.permute.xlu1 %3381 }
0x4478   :  { %v3386_v37 = vmul.f32 %v3382_v36, %v3352_v50  ;;  %v3380_v38 = vpop.permute.xlu0 %3379 }
0x4479   :  { %v3385_v41 = vmul.f32 %v3380_v38, %v3351_v51 }
0x447a   :  { %3391 = vrot.lane.b32.xlu1 %v3386_v37, %s6775_s29 }
0x447b   :  { %3389 = vrot.lane.b32.xlu0 %v3385_v41, %s6775_s29 }
0x44ec   :  { %v3392_v13 = vpop.permute.xlu1 %3391 }
0x44ed   :  { %v3390_v42 = vpop.permute.xlu0 %3389 }
0x44ee   :  { %5935 = vmatprep.mubr.msk.f32.mxu0 %vm111_vm4, %v3390_v42 }
0x44ef   :  { %5936 = vmatmul.mubr.msk.f32.vlgmr.msra.gmra.mrb[34].mxu0 %vm111_vm4, %v3392_v13 }
0x44f0   :  { %6295 = vmatpush3.bf16.msra.mxu0 %v6292_v63  ;;  %5946 = vmatprep.mubr.msk.f32.mxu0 %vm111_vm4, %v7314_v20  ;;  %v5986_v20 = vpop.f32.mrb[26].mxu1 }
0x44f1   :  { %6297 = vmatprep.subr.bf16.mxu0 %v6296_v43 }
0x44f4   :  { %6299 = vmatpush3.bf16.msra.mxu0 %v6296_v43 }
0x44f7   :  { %5947 = vmatmul.mubr.msk.f32.vlgmr.msra.gmra.mrb[36].mxu0 %vm111_vm4, %v7318_v44  ;;  %v3781_v44 = vpop.f32.mrb[27].mxu1 }
0x44f8   :  { %5949 = vmatprep.mubr.msk.f32.mxu0 %vm111_vm4, %v7350_v29 }
0x44fb   :  { %5950 = vmatmul.mubr.msk.f32.gmra.mrb[38].mxu0 %vm111_vm4, %v7354_v15 }
0x44fc   :  { %5952 = vmatprep.mubr.msk.f32.mxu0 %vm111_vm4, %v7384_v52  ;;  %v5303_v52 = vld [vmem:[%s8015_s2 + $0x88] sm:$0xff] }
0x44ff   :  { %5953 = vmatmul.mubr.msk.f32.gmra.mrb[40].mxu0 %vm111_vm4, %v7386_v4  ;;  %v7661_v4 = vrot.slane %v5303_v52, %v6832_v11 }
0x4500   :  { %5955 = vmatprep.mubr.msk.f32.mxu0 %vm111_vm4, %v7417_v6 }
0x4503   :  { %5956 = vmatmul.mubr.msk.f32.gmra.mrb[42].mxu0 %vm111_vm4, %v7419_v35 }
0x4504   :  { %5958 = vmatprep.mubr.msk.f32.mxu0 %vm111_vm4, %v7450_v59 }
0x4507   :  { %5959 = vmatmul.mubr.msk.f32.gmra.mrb[44].mxu0 %vm111_vm4, %v7452_v3 }
0x4508   :  { %5961 = vmatprep.mubr.msk.f32.mxu0 %vm111_vm4, %v7483_v62 }
0x450b   :  { %5962 = vmatmul.mubr.msk.f32.gmra.mrb[46].mxu0 %vm111_vm4, %v7485_v16 }
0x450c   :  { %5964 = vmatprep.mubr.msk.f32.mxu0 %vm111_vm4, %v7515_v1 }
0x450f   :  { %5965 = vmatmul.mubr.msk.f32.gmra.mrb[48].mxu0 %vm111_vm4, %v7517_v7 }
0x4510   :  { %5967 = vmatprep.mubr.msk.f32.mxu0 %vm111_vm4, %v7546_v54 }
0x4513   :  { %5968 = vmatmul.mubr.msk.f32.gmra.mrb[50].mxu0 %vm111_vm4, %v7548_v8 }
0x4514   :  { %5970 = vmatprep.mubr.msk.f32.mxu0 %vm111_vm4, %v3390_v42 }
0x4517   :  { %5971 = vmatmul.mubr.msk.f32.gmra.mrb[52].mxu0 %vm111_vm4, %v3392_v13 }
0x45c2   :  { %v7653_v29 = vpop.f32.mrb[34].mxu0 }
0x45c3   :  { %v7655_v15 = vpop.f32.mrb[35].mxu0 }
0x45ca   :  { %v5948_v6 = vpop.f32.mrb[36].mxu0 }
0x45cb   :  { %v3622_v35 = vadd.f32 %v5948_v6, %v7661_v4  ;;  %v3616_v59 = vpop.f32.mrb[37].mxu0 }
0x45cc   :  { %v3617_v3 = vadd.f32 %v3616_v59, %v7661_v4 }
0x45cd   :  { %v3791_v62 = vadd.f32 %v5986_v20, %v3622_v35 }
0x45ce   :  { %v3790_v16 = vadd.f32 %v3781_v44, %v3617_v3  ;;  %v7665_v1 = vpop.f32.mrb[38].mxu0 }
0x45cf   :  { %v3793_v7 = vmul.f32 %v3791_v62, %v6864_v22  ;;  %v7668_v54 = vpop.f32.mrb[39].mxu0  ;;  %v3632_v62 = vadd.f32 %v7665_v1, %v7661_v4 }
0x45d0   :  { %v3792_v8 = vmul.f32 %v3790_v16, %v6864_v22  ;;  %v3627_v16 = vadd.f32 %v7668_v54, %v7661_v4 }
0x45d1   :  { %v5325_v45 = vmul.f32 -1.442695, %v3793_v7 }
0x45d2   :  { %v5324_v47 = vmul.f32 -1.442695, %v3792_v8  ;;  %v7671_v32 = vpop.f32.mrb[40].mxu0 }
0x45d3   :  { %6638 = vpow2.f32 %v5325_v45  ;;  %v7673_v9 = vpop.f32.mrb[41].mxu0 }
0x45d4   :  { %6640 = vpow2.f32 %v5324_v47 }
0x45d6   :  { %v7675_v48 = vpop.f32.mrb[42].mxu0 }
0x45d7   :  { %v7677_v49 = vpop.f32.mrb[43].mxu0 }
0x45da   :  { %v7679_v28 = vpop.f32.mrb[44].mxu0 }
0x45db   :  { %v7681_v14 = vpop.f32.mrb[45].mxu0 }
0x45dd   :  { %v6639_v19 = vpop.eup %6638 }
0x45de   :  { %v6641_v50 = vpop.eup %6640  ;;  %v3801_v51 = vadd.f32 1.0, %v6639_v19  ;;  %v7683_v10 = vpop.f32.mrb[46].mxu0 }
0x45df   :  { %v3800_v58 = vadd.f32 1.0, %v6641_v50  ;;  %v7685_v26 = vpop.f32.mrb[47].mxu0 }
0x45e0   :  { %6642 = vrcp.f32 %v3801_v51 }
0x45e1   :  { %6644 = vrcp.f32 %v3800_v58 }
0x45e2   :  { %v7687_v53 = vpop.f32.mrb[48].mxu0 }
0x45e3   :  { %v7689_v60 = vpop.f32.mrb[49].mxu0 }
0x45e6   :  { %v7691_v46 = vpop.f32.mrb[50].mxu0 }
0x45e7   :  { %v7693_v61 = vpop.f32.mrb[51].mxu0 }
0x45ea   :  { %v6643_v56 = vpop.eup %6642  ;;  %v7695_v12 = vpop.f32.mrb[52].mxu0 }
0x45eb   :  { %v6645_v21 = vpop.eup %6644  ;;  %v7697_v57 = vpop.f32.mrb[53].mxu0  ;;  %v3807_v34 = vmul.f32 %v6643_v56, %v6864_v22 }
0x45ec   :  { %v3806_v63 = vmul.f32 %v6645_v21, %v6864_v22 }
0x45ed   :  { %v3809_v55 = vadd.f32 %v3807_v34, %v6868_v31 }
0x45ee   :  { %v3808_v25 = vadd.f32 %v3806_v63, %v6868_v31 }
0x45ef   :  { %3816 = vrot.lane.b32.xlu1 %v3809_v55, %s6774_s28  ;;  %v3811_v38 = vmul.f32 0.0, %v3809_v55 }
0x45f0   :  { %3814 = vrot.lane.b32.xlu0 %v3808_v25, %s6774_s28  ;;  %v3810_v2 = vmul.f32 0.0, %v3808_v25 }
0x4661   :  { %v3817_v30 = vpop.permute.xlu1 %3816 }
0x4662   :  { %v3821_v17 = vmul.f32 %v3817_v30, %v3809_v55  ;;  %v3815_v36 = vpop.permute.xlu0 %3814 }
0x4663   :  { %v3820_v37 = vmul.f32 %v3815_v36, %v3808_v25 }
0x4664   :  { %3826 = vrot.lane.b32.xlu1 %v3821_v17, %s6775_s29 }
0x4665   :  { %3824 = vrot.lane.b32.xlu0 %v3820_v37, %s6775_s29 }
0x46d6   :  { %v3827_v41 = vpop.permute.xlu1 %3826 }
0x46d7   :  { %v3831_v5 = vadd.f32 %v3827_v41, %v3811_v38  ;;  %v3825_v42 = vpop.permute.xlu0 %3824 }
0x46d8   :  { %v3830_v43 = vadd.f32 %v3825_v42, %v3810_v2 }
0x46d9   :  { %6646 = vtanh.f32 %v3831_v5 }
0x46da   :  { %6648 = vtanh.f32 %v3830_v43 }
0x46e3   :  { %v6647_v13 = vpop.eup %6646 }
0x46e4   :  { %v6649_v20 = vpop.eup %6648  ;;  %3838 = vrot.lane.b32.xlu1 %v6647_v13, %s6774_s28 }
0x46e5   :  { %3836 = vrot.lane.b32.xlu0 %v6649_v20, %s6774_s28 }
0x4756   :  { %v3839_v44 = vpop.permute.xlu1 %3838 }
0x4757   :  { %v3843_v52 = vmul.f32 %v3839_v44, %v3809_v55  ;;  %v3837_v6 = vpop.permute.xlu0 %3836 }
0x4758   :  { %v3842_v35 = vmul.f32 %v3837_v6, %v3808_v25 }
0x4759   :  { %3848 = vrot.lane.b32.xlu1 %v3843_v52, %s6775_s29 }
0x475a   :  { %3846 = vrot.lane.b32.xlu0 %v3842_v35, %s6775_s29 }
0x47cb   :  { %v3849_v3 = vpop.permute.xlu1 %3848 }
0x47cc   :  { %v3847_v59 = vpop.permute.xlu0 %3846 }
0x47cd   :  { %5995 = vmatprep.mubr.msk.f32.mxu1 %vm111_vm4, %v3847_v59 }
0x47ce   :  { %5996 = vmatmul.mubr.msk.f32.vlgmr.msra.gmra.mrb[28].mxu1 %vm111_vm4, %v3849_v3 }
0x47cf   :  { %6319 = vmatpush3.bf16.msra.mxu1 %v7589_v23 }
0x47d0   :  { %6321 = vmatprep.subr.bf16.mxu1 %v7599_v33 }
0x47d3   :  { %6323 = vmatpush3.bf16.msra.mxu1 %v7599_v33 }
0x47d4   :  { %6325 = vmatprep.subr.bf16.mxu1 %v7589_v23 }
0x48a1   :  { %v5997_v7 = vpop.f32.mrb[28].mxu1 }
0x48a2   :  { %v3930_v8 = vadd.f32 %v5997_v7, %v3632_v62  ;;  %v3920_v45 = vpop.f32.mrb[29].mxu1  ;;  %v3642_v7 = vadd.f32 %v7671_v32, %v7661_v4 }
0x48a3   :  { %v3929_v47 = vadd.f32 %v3920_v45, %v3627_v16 }
0x48a4   :  { %v3932_v19 = vmul.f32 %v3930_v8, %v6864_v22  ;;  %v3637_v8 = vadd.f32 %v7673_v9, %v7661_v4 }
0x48a5   :  { %v3931_v50 = vmul.f32 %v3929_v47, %v6864_v22 }
0x48a6   :  { %v5329_v51 = vmul.f32 -1.442695, %v3932_v19 }
0x48a7   :  { %v5328_v58 = vmul.f32 -1.442695, %v3931_v50 }
0x48a8   :  { %6650 = vpow2.f32 %v5329_v51 }
0x48a9   :  { %6652 = vpow2.f32 %v5328_v58 }
0x48b2   :  { %v6651_v56 = vpop.eup %6650 }
0x48b3   :  { %v6653_v21 = vpop.eup %6652  ;;  %v3940_v34 = vadd.f32 1.0, %v6651_v56 }
0x48b4   :  { %v3939_v63 = vadd.f32 1.0, %v6653_v21 }
0x48b5   :  { %6654 = vrcp.f32 %v3940_v34 }
0x48b6   :  { %6656 = vrcp.f32 %v3939_v63 }
0x48bf   :  { %v6655_v1 = vpop.eup %6654 }
0x48c0   :  { %v6657_v54 = vpop.eup %6656  ;;  %v3946_v55 = vmul.f32 %v6655_v1, %v6864_v22 }
0x48c1   :  { %v3945_v25 = vmul.f32 %v6657_v54, %v6864_v22 }
0x48c2   :  { %v3948_v30 = vadd.f32 %v3946_v55, %v6868_v31 }
0x48c3   :  { %v3947_v17 = vadd.f32 %v3945_v25, %v6868_v31 }
0x48c4   :  { %3955 = vrot.lane.b32.xlu1 %v3948_v30, %s6774_s28  ;;  %v3950_v2 = vmul.f32 %v3948_v30, %v3831_v5 }
0x48c5   :  { %3953 = vrot.lane.b32.xlu0 %v3947_v17, %s6774_s28  ;;  %v3949_v13 = vmul.f32 %v3947_v17, %v3830_v43 }
0x4936   :  { %v3956_v36 = vpop.permute.xlu1 %3955 }
0x4937   :  { %v3960_v37 = vmul.f32 %v3956_v36, %v3948_v30  ;;  %v3954_v38 = vpop.permute.xlu0 %3953 }
0x4938   :  { %v3959_v41 = vmul.f32 %v3954_v38, %v3947_v17 }
0x4939   :  { %3965 = vrot.lane.b32.xlu1 %v3960_v37, %s6775_s29 }
0x493a   :  { %3963 = vrot.lane.b32.xlu0 %v3959_v41, %s6775_s29 }
0x49ab   :  { %v3966_v42 = vpop.permute.xlu1 %3965 }
0x49ac   :  { %v3970_v20 = vadd.f32 %v3966_v42, %v3950_v2  ;;  %v3964_v44 = vpop.permute.xlu0 %3963 }
0x49ad   :  { %v3969_v52 = vadd.f32 %v3964_v44, %v3949_v13 }
0x49ae   :  { %6658 = vtanh.f32 %v3970_v20 }
0x49af   :  { %6660 = vtanh.f32 %v3969_v52 }
0x49b8   :  { %v6659_v6 = vpop.eup %6658 }
0x49b9   :  { %v6661_v35 = vpop.eup %6660  ;;  %3977 = vrot.lane.b32.xlu1 %v6659_v6, %s6774_s28 }
0x49ba   :  { %3975 = vrot.lane.b32.xlu0 %v6661_v35, %s6774_s28 }
0x4a2b   :  { %v3978_v59 = vpop.permute.xlu1 %3977 }
0x4a2c   :  { %v3982_v3 = vmul.f32 %v3978_v59, %v3948_v30  ;;  %v3976_v62 = vpop.permute.xlu0 %3975 }
0x4a2d   :  { %v3981_v16 = vmul.f32 %v3976_v62, %v3947_v17 }
0x4a2e   :  { %3987 = vrot.lane.b32.xlu1 %v3982_v3, %s6775_s29 }
0x4a2f   :  { %3985 = vrot.lane.b32.xlu0 %v3981_v16, %s6775_s29 }
0x4aa0   :  { %v3988_v43 = vpop.permute.xlu1 %3987 }
0x4aa1   :  { %v3986_v5 = vpop.permute.xlu0 %3985 }
0x4aa2   :  { %6006 = vmatprep.mubr.msk.f32.mxu1 %vm111_vm4, %v3986_v5 }
0x4aa3   :  { %6007 = vmatmul.mubr.msk.f32.vlgmr.msra.gmra.mrb[30].mxu1 %vm111_vm4, %v3988_v43 }
0x4aa4   :  { %6327 = vmatpush3.bf16.msra.mxu1 %v7589_v23 }
0x4aa5   :  { %6329 = vmatprep.subr.bf16.mxu1 %v7599_v33 }
0x4aa8   :  { %6331 = vmatpush3.bf16.msra.mxu1 %v7599_v33 }
0x4aa9   :  { %6333 = vmatprep.subr.bf16.mxu1 %v7589_v23 }
0x4b76   :  { %v6008_v45 = vpop.f32.mrb[30].mxu1 }
0x4b77   :  { %v4069_v47 = vadd.f32 %v6008_v45, %v3642_v7  ;;  %v4059_v19 = vpop.f32.mrb[31].mxu1  ;;  %v3652_v7 = vadd.f32 %v7675_v48, %v7661_v4 }
0x4b78   :  { %v4068_v50 = vadd.f32 %v4059_v19, %v3637_v8  ;;  %v3647_v8 = vadd.f32 %v7677_v49, %v7661_v4 }
0x4b79   :  { %v4071_v51 = vmul.f32 %v4069_v47, %v6864_v22 }
0x4b7a   :  { %v4070_v58 = vmul.f32 %v4068_v50, %v6864_v22 }
0x4b7b   :  { %v5333_v56 = vmul.f32 -1.442695, %v4071_v51 }
0x4b7c   :  { %v5332_v21 = vmul.f32 -1.442695, %v4070_v58 }
0x4b7d   :  { %6662 = vpow2.f32 %v5333_v56 }
0x4b7e   :  { %6664 = vpow2.f32 %v5332_v21 }
0x4b87   :  { %v6663_v34 = vpop.eup %6662 }
0x4b88   :  { %v6665_v63 = vpop.eup %6664  ;;  %v4079_v1 = vadd.f32 1.0, %v6663_v34 }
0x4b89   :  { %v4078_v54 = vadd.f32 1.0, %v6665_v63 }
0x4b8a   :  { %6666 = vrcp.f32 %v4079_v1 }
0x4b8b   :  { %6668 = vrcp.f32 %v4078_v54 }
0x4b94   :  { %v6667_v32 = vpop.eup %6666 }
0x4b95   :  { %v6669_v9 = vpop.eup %6668  ;;  %v4085_v55 = vmul.f32 %v6667_v32, %v6864_v22 }
0x4b96   :  { %v4084_v25 = vmul.f32 %v6669_v9, %v6864_v22 }
0x4b97   :  { %v4087_v30 = vadd.f32 %v4085_v55, %v6868_v31 }
0x4b98   :  { %v4086_v17 = vadd.f32 %v4084_v25, %v6868_v31 }
0x4b99   :  { %4094 = vrot.lane.b32.xlu1 %v4087_v30, %s6774_s28  ;;  %v4089_v2 = vmul.f32 %v4087_v30, %v3970_v20 }
0x4b9a   :  { %4092 = vrot.lane.b32.xlu0 %v4086_v17, %s6774_s28  ;;  %v4088_v13 = vmul.f32 %v4086_v17, %v3969_v52 }
0x4c0b   :  { %v4095_v36 = vpop.permute.xlu1 %4094 }
0x4c0c   :  { %v4099_v37 = vmul.f32 %v4095_v36, %v4087_v30  ;;  %v4093_v38 = vpop.permute.xlu0 %4092 }
0x4c0d   :  { %v4098_v41 = vmul.f32 %v4093_v38, %v4086_v17 }
0x4c0e   :  { %4104 = vrot.lane.b32.xlu1 %v4099_v37, %s6775_s29 }
0x4c0f   :  { %4102 = vrot.lane.b32.xlu0 %v4098_v41, %s6775_s29 }
0x4c80   :  { %v4105_v42 = vpop.permute.xlu1 %4104 }
0x4c81   :  { %v4109_v44 = vadd.f32 %v4105_v42, %v4089_v2  ;;  %v4103_v6 = vpop.permute.xlu0 %4102 }
0x4c82   :  { %v4108_v35 = vadd.f32 %v4103_v6, %v4088_v13 }
0x4c83   :  { %6670 = vtanh.f32 %v4109_v44 }
0x4c84   :  { %6672 = vtanh.f32 %v4108_v35 }
0x4c8d   :  { %v6671_v59 = vpop.eup %6670 }
0x4c8e   :  { %v6673_v3 = vpop.eup %6672  ;;  %4116 = vrot.lane.b32.xlu1 %v6671_v59, %s6774_s28 }
0x4c8f   :  { %4114 = vrot.lane.b32.xlu0 %v6673_v3, %s6774_s28 }
0x4d00   :  { %v4117_v62 = vpop.permute.xlu1 %4116 }
0x4d01   :  { %v4121_v16 = vmul.f32 %v4117_v62, %v4087_v30  ;;  %v4115_v5 = vpop.permute.xlu0 %4114 }
0x4d02   :  { %v4120_v43 = vmul.f32 %v4115_v5, %v4086_v17 }
0x4d03   :  { %4126 = vrot.lane.b32.xlu1 %v4121_v16, %s6775_s29 }
0x4d04   :  { %4124 = vrot.lane.b32.xlu0 %v4120_v43, %s6775_s29 }
0x4d75   :  { %v4127_v52 = vpop.permute.xlu1 %4126 }
0x4d76   :  { %v4125_v20 = vpop.permute.xlu0 %4124 }
0x4d77   :  { %6017 = vmatprep.mubr.msk.f32.mxu1 %vm111_vm4, %v4125_v20  ;;  %v3662_v20 = vadd.f32 %v7679_v28, %v7661_v4 }
0x4d78   :  { %6018 = vmatmul.mubr.msk.f32.vlgmr.msra.gmra.mrb[32].mxu1 %vm111_vm4, %v4127_v52  ;;  %v3657_v52 = vadd.f32 %v7681_v14, %v7661_v4 }
0x4d79   :  { %6335 = vmatpush3.bf16.msra.mxu1 %v7589_v23 }
0x4d7a   :  { %6337 = vmatprep.subr.bf16.mxu1 %v7599_v33 }
0x4d7d   :  { %6339 = vmatpush3.bf16.msra.mxu1 %v7599_v33 }
0x4d7e   :  { %6341 = vmatprep.subr.bf16.mxu1 %v7589_v23 }
0x4e4b   :  { %v6019_v45 = vpop.f32.mrb[32].mxu1 }
0x4e4c   :  { %v4208_v47 = vadd.f32 %v6019_v45, %v3652_v7  ;;  %v4198_v19 = vpop.f32.mrb[33].mxu1 }
0x4e4d   :  { %v4207_v50 = vadd.f32 %v4198_v19, %v3647_v8 }
0x4e4e   :  { %v4210_v51 = vmul.f32 %v4208_v47, %v6864_v22 }
0x4e4f   :  { %v4209_v58 = vmul.f32 %v4207_v50, %v6864_v22 }
0x4e50   :  { %v5337_v56 = vmul.f32 -1.442695, %v4210_v51 }
0x4e51   :  { %v5336_v21 = vmul.f32 -1.442695, %v4209_v58 }
0x4e52   :  { %6674 = vpow2.f32 %v5337_v56 }
0x4e53   :  { %6676 = vpow2.f32 %v5336_v21 }
0x4e5c   :  { %v6675_v34 = vpop.eup %6674 }
0x4e5d   :  { %v6677_v63 = vpop.eup %6676  ;;  %v4218_v1 = vadd.f32 1.0, %v6675_v34 }
0x4e5e   :  { %v4217_v54 = vadd.f32 1.0, %v6677_v63 }
0x4e5f   :  { %6678 = vrcp.f32 %v4218_v1 }
0x4e60   :  { %6680 = vrcp.f32 %v4217_v54 }
0x4e69   :  { %v6679_v48 = vpop.eup %6678 }
0x4e6a   :  { %v6681_v49 = vpop.eup %6680  ;;  %v4224_v32 = vmul.f32 %v6679_v48, %v6864_v22 }
0x4e6b   :  { %v4223_v9 = vmul.f32 %v6681_v49, %v6864_v22 }
0x4e6c   :  { %v4226_v55 = vadd.f32 %v4224_v32, %v6868_v31 }
0x4e6d   :  { %v4225_v25 = vadd.f32 %v4223_v9, %v6868_v31 }
0x4e6e   :  { %4233 = vrot.lane.b32.xlu1 %v4226_v55, %s6774_s28  ;;  %v4228_v38 = vmul.f32 %v4226_v55, %v4109_v44 }
0x4e6f   :  { %4231 = vrot.lane.b32.xlu0 %v4225_v25, %s6774_s28  ;;  %v4227_v2 = vmul.f32 %v4225_v25, %v4108_v35 }
0x4ee0   :  { %v4234_v30 = vpop.permute.xlu1 %4233 }
0x4ee1   :  { %v4238_v17 = vmul.f32 %v4234_v30, %v4226_v55  ;;  %v4232_v36 = vpop.permute.xlu0 %4231 }
0x4ee2   :  { %v4237_v37 = vmul.f32 %v4232_v36, %v4225_v25 }
0x4ee3   :  { %4243 = vrot.lane.b32.xlu1 %v4238_v17, %s6775_s29 }
0x4ee4   :  { %4241 = vrot.lane.b32.xlu0 %v4237_v37, %s6775_s29 }
0x4f55   :  { %v4244_v41 = vpop.permute.xlu1 %4243 }
0x4f56   :  { %v4248_v42 = vadd.f32 %v4244_v41, %v4228_v38  ;;  %v4242_v13 = vpop.permute.xlu0 %4241 }
0x4f57   :  { %v4247_v6 = vadd.f32 %v4242_v13, %v4227_v2 }
0x4f58   :  { %6682 = vtanh.f32 %v4248_v42 }
0x4f59   :  { %6684 = vtanh.f32 %v4247_v6 }
0x4f62   :  { %v6683_v59 = vpop.eup %6682 }
0x4f63   :  { %v6685_v3 = vpop.eup %6684  ;;  %4255 = vrot.lane.b32.xlu1 %v6683_v59, %s6774_s28 }
0x4f64   :  { %4253 = vrot.lane.b32.xlu0 %v6685_v3, %s6774_s28 }
0x4fd5   :  { %v4256_v62 = vpop.permute.xlu1 %4255 }
0x4fd6   :  { %v4260_v16 = vmul.f32 %v4256_v62, %v4226_v55  ;;  %v4254_v5 = vpop.permute.xlu0 %4253 }
0x4fd7   :  { %v4259_v43 = vmul.f32 %v4254_v5, %v4225_v25  ;;  %v3672_v5 = vadd.f32 %v7683_v10, %v7661_v4 }
0x4fd8   :  { %4265 = vrot.lane.b32.xlu1 %v4260_v16, %s6775_s29 }
0x4fd9   :  { %4263 = vrot.lane.b32.xlu0 %v4259_v43, %s6775_s29  ;;  %v3667_v43 = vadd.f32 %v7685_v26, %v7661_v4 }
0x504a   :  { %v4266_v35 = vpop.permute.xlu1 %4265 }
0x504b   :  { %v4264_v44 = vpop.permute.xlu0 %4263 }
0x504c   :  { %6028 = vmatprep.mubr.msk.f32.mxu1 %vm111_vm4, %v4264_v44 }
0x504d   :  { %6029 = vmatmul.mubr.msk.f32.vlgmr.msra.gmra.mrb[34].mxu1 %vm111_vm4, %v4266_v35 }
0x504e   :  { %6343 = vmatpush3.bf16.msra.mxu1 %v7589_v23 }
0x504f   :  { %6345 = vmatprep.subr.bf16.mxu1 %v7599_v33 }
0x5052   :  { %6347 = vmatpush3.bf16.msra.mxu1 %v7599_v33 }
0x5053   :  { %6349 = vmatprep.subr.bf16.mxu1 %v7589_v23 }
0x5120   :  { %v6030_v7 = vpop.f32.mrb[34].mxu1 }
0x5121   :  { %v4347_v8 = vadd.f32 %v6030_v7, %v3662_v20  ;;  %v4337_v45 = vpop.f32.mrb[35].mxu1 }
0x5122   :  { %v4346_v47 = vadd.f32 %v4337_v45, %v3657_v52 }
0x5123   :  { %v4349_v19 = vmul.f32 %v4347_v8, %v6864_v22 }
0x5124   :  { %v4348_v50 = vmul.f32 %v4346_v47, %v6864_v22 }
0x5125   :  { %v5341_v51 = vmul.f32 -1.442695, %v4349_v19 }
0x5126   :  { %v5340_v58 = vmul.f32 -1.442695, %v4348_v50 }
0x5127   :  { %6686 = vpow2.f32 %v5341_v51 }
0x5128   :  { %6688 = vpow2.f32 %v5340_v58 }
0x5131   :  { %v6687_v56 = vpop.eup %6686 }
0x5132   :  { %v6689_v21 = vpop.eup %6688  ;;  %v4357_v34 = vadd.f32 1.0, %v6687_v56 }
0x5133   :  { %v4356_v63 = vadd.f32 1.0, %v6689_v21 }
0x5134   :  { %6690 = vrcp.f32 %v4357_v34 }
0x5135   :  { %6692 = vrcp.f32 %v4356_v63 }
0x513e   :  { %v6691_v28 = vpop.eup %6690 }
0x513f   :  { %v6693_v14 = vpop.eup %6692  ;;  %v4363_v1 = vmul.f32 %v6691_v28, %v6864_v22 }
0x5140   :  { %v4362_v54 = vmul.f32 %v6693_v14, %v6864_v22 }
0x5141   :  { %v4365_v48 = vadd.f32 %v4363_v1, %v6868_v31 }
0x5142   :  { %v4364_v49 = vadd.f32 %v4362_v54, %v6868_v31 }
0x5143   :  { %4372 = vrot.lane.b32.xlu1 %v4365_v48, %s6774_s28  ;;  %v4367_v30 = vmul.f32 %v4365_v48, %v4248_v42 }
0x5144   :  { %4370 = vrot.lane.b32.xlu0 %v4364_v49, %s6774_s28  ;;  %v4366_v36 = vmul.f32 %v4364_v49, %v4247_v6 }
0x51b5   :  { %v4373_v32 = vpop.permute.xlu1 %4372 }
0x51b6   :  { %v4377_v9 = vmul.f32 %v4373_v32, %v4365_v48  ;;  %v4371_v55 = vpop.permute.xlu0 %4370 }
0x51b7   :  { %v4376_v25 = vmul.f32 %v4371_v55, %v4364_v49 }
0x51b8   :  { %4382 = vrot.lane.b32.xlu1 %v4377_v9, %s6775_s29 }
0x51b9   :  { %4380 = vrot.lane.b32.xlu0 %v4376_v25, %s6775_s29 }
0x522a   :  { %v4383_v17 = vpop.permute.xlu1 %4382 }
0x522b   :  { %v4387_v37 = vadd.f32 %v4383_v17, %v4367_v30  ;;  %v4381_v38 = vpop.permute.xlu0 %4380 }
0x522c   :  { %v4386_v41 = vadd.f32 %v4381_v38, %v4366_v36 }
0x522d   :  { %6694 = vtanh.f32 %v4387_v37 }
0x522e   :  { %6696 = vtanh.f32 %v4386_v41 }
0x5237   :  { %v6695_v2 = vpop.eup %6694 }
0x5238   :  { %v6697_v13 = vpop.eup %6696  ;;  %4394 = vrot.lane.b32.xlu1 %v6695_v2, %s6774_s28 }
0x5239   :  { %4392 = vrot.lane.b32.xlu0 %v6697_v13, %s6774_s28 }
0x52aa   :  { %v4395_v59 = vpop.permute.xlu1 %4394 }
0x52ab   :  { %v4399_v3 = vmul.f32 %v4395_v59, %v4365_v48  ;;  %v4393_v62 = vpop.permute.xlu0 %4392  ;;  %v3682_v59 = vadd.f32 %v7687_v53, %v7661_v4 }
0x52ac   :  { %v4398_v16 = vmul.f32 %v4393_v62, %v4364_v49 }
0x52ad   :  { %4404 = vrot.lane.b32.xlu1 %v4399_v3, %s6775_s29  ;;  %v3677_v3 = vadd.f32 %v7689_v60, %v7661_v4 }
0x52ae   :  { %4402 = vrot.lane.b32.xlu0 %v4398_v16, %s6775_s29 }
0x531f   :  { %v4405_v6 = vpop.permute.xlu1 %4404 }
0x5320   :  { %v4403_v42 = vpop.permute.xlu0 %4402 }
0x5321   :  { %6039 = vmatprep.mubr.msk.f32.mxu1 %vm111_vm4, %v4403_v42 }
0x5322   :  { %6040 = vmatmul.mubr.msk.f32.vlgmr.msra.gmra.mrb[36].mxu1 %vm111_vm4, %v4405_v6 }
0x5323   :  { %6351 = vmatpush3.bf16.msra.mxu1 %v7589_v23 }
0x5324   :  { %6353 = vmatprep.subr.bf16.mxu1 %v7599_v33 }
0x5327   :  { %6355 = vmatpush3.bf16.msra.mxu1 %v7599_v33 }
0x5328   :  { %6357 = vmatprep.subr.bf16.mxu1 %v7589_v23 }
0x53f5   :  { %v6041_v44 = vpop.f32.mrb[36].mxu1 }
0x53f6   :  { %v4486_v35 = vadd.f32 %v6041_v44, %v3672_v5  ;;  %v4476_v20 = vpop.f32.mrb[37].mxu1 }
0x53f7   :  { %v4485_v52 = vadd.f32 %v4476_v20, %v3667_v43 }
0x53f8   :  { %v4488_v7 = vmul.f32 %v4486_v35, %v6864_v22 }
0x53f9   :  { %v4487_v8 = vmul.f32 %v4485_v52, %v6864_v22 }
0x53fa   :  { %v5345_v45 = vmul.f32 -1.442695, %v4488_v7 }
0x53fb   :  { %v5344_v47 = vmul.f32 -1.442695, %v4487_v8 }
0x53fc   :  { %6698 = vpow2.f32 %v5345_v45 }
0x53fd   :  { %6700 = vpow2.f32 %v5344_v47 }
0x5406   :  { %v6699_v19 = vpop.eup %6698 }
0x5407   :  { %v6701_v50 = vpop.eup %6700  ;;  %v4496_v51 = vadd.f32 1.0, %v6699_v19 }
0x5408   :  { %v4495_v58 = vadd.f32 1.0, %v6701_v50 }
0x5409   :  { %6702 = vrcp.f32 %v4496_v51 }
0x540a   :  { %6704 = vrcp.f32 %v4495_v58 }
0x5413   :  { %v6703_v10 = vpop.eup %6702 }
0x5414   :  { %v6705_v26 = vpop.eup %6704  ;;  %v4502_v56 = vmul.f32 %v6703_v10, %v6864_v22 }
0x5415   :  { %v4501_v21 = vmul.f32 %v6705_v26, %v6864_v22 }
0x5416   :  { %v4504_v34 = vadd.f32 %v4502_v56, %v6868_v31 }
0x5417   :  { %v4503_v63 = vadd.f32 %v4501_v21, %v6868_v31 }
0x5418   :  { %4511 = vrot.lane.b32.xlu1 %v4504_v34, %s6774_s28  ;;  %v4506_v48 = vmul.f32 %v4504_v34, %v4387_v37 }
0x5419   :  { %4509 = vrot.lane.b32.xlu0 %v4503_v63, %s6774_s28  ;;  %v4505_v32 = vmul.f32 %v4503_v63, %v4386_v41 }
0x548a   :  { %v4512_v28 = vpop.permute.xlu1 %4511 }
0x548b   :  { %v4516_v14 = vmul.f32 %v4512_v28, %v4504_v34  ;;  %v4510_v1 = vpop.permute.xlu0 %4509 }
0x548c   :  { %v4515_v54 = vmul.f32 %v4510_v1, %v4503_v63 }
0x548d   :  { %4521 = vrot.lane.b32.xlu1 %v4516_v14, %s6775_s29 }
0x548e   :  { %4519 = vrot.lane.b32.xlu0 %v4515_v54, %s6775_s29 }
0x54ff   :  { %v4522_v49 = vpop.permute.xlu1 %4521 }
0x5500   :  { %v4526_v9 = vadd.f32 %v4522_v49, %v4506_v48  ;;  %v4520_v55 = vpop.permute.xlu0 %4519 }
0x5501   :  { %v4525_v25 = vadd.f32 %v4520_v55, %v4505_v32 }
0x5502   :  { %6706 = vtanh.f32 %v4526_v9 }
0x5503   :  { %6708 = vtanh.f32 %v4525_v25 }
0x550c   :  { %v6707_v30 = vpop.eup %6706 }
0x550d   :  { %v6709_v17 = vpop.eup %6708  ;;  %4533 = vrot.lane.b32.xlu1 %v6707_v30, %s6774_s28  ;;  %v3692_v30 = vadd.f32 %v7691_v46, %v7661_v4 }
0x550e   :  { %4531 = vrot.lane.b32.xlu0 %v6709_v17, %s6774_s28  ;;  %v3687_v17 = vadd.f32 %v7693_v61, %v7661_v4 }
0x557f   :  { %v4534_v36 = vpop.permute.xlu1 %4533 }
0x5580   :  { %v4538_v38 = vmul.f32 %v4534_v36, %v4504_v34  ;;  %v4532_v2 = vpop.permute.xlu0 %4531 }
0x5581   :  { %v4537_v13 = vmul.f32 %v4532_v2, %v4503_v63 }
0x5582   :  { %4543 = vrot.lane.b32.xlu1 %v4538_v38, %s6775_s29 }
0x5583   :  { %4541 = vrot.lane.b32.xlu0 %v4537_v13, %s6775_s29 }
0x55f4   :  { %v4544_v41 = vpop.permute.xlu1 %4543 }
0x55f5   :  { %v4542_v37 = vpop.permute.xlu0 %4541 }
0x55f6   :  { %6050 = vmatprep.mubr.msk.f32.mxu1 %vm111_vm4, %v4542_v37 }
0x55f7   :  { %6051 = vmatmul.mubr.msk.f32.vlgmr.msra.gmra.mrb[38].mxu1 %vm111_vm4, %v4544_v41 }
0x55f8   :  { %6359 = vmatpush3.bf16.msra.mxu1 %v7589_v23 }
0x55f9   :  { %6361 = vmatprep.subr.bf16.mxu1 %v7599_v33 }
0x55fc   :  { %6363 = vmatpush3.bf16.msra.mxu1 %v7599_v33 }
0x55fd   :  { %6365 = vmatprep.subr.bf16.mxu1 %v7589_v23 }
0x56ca   :  { %v6052_v62 = vpop.f32.mrb[38].mxu1 }
0x56cb   :  { %v4625_v16 = vadd.f32 %v6052_v62, %v3682_v59  ;;  %v4615_v42 = vpop.f32.mrb[39].mxu1 }
0x56cc   :  { %v4624_v6 = vadd.f32 %v4615_v42, %v3677_v3 }
0x56cd   :  { %v4627_v5 = vmul.f32 %v4625_v16, %v6864_v22 }
0x56ce   :  { %v4626_v43 = vmul.f32 %v4624_v6, %v6864_v22 }
0x56cf   :  { %v5349_v44 = vmul.f32 -1.442695, %v4627_v5 }
0x56d0   :  { %v5348_v35 = vmul.f32 -1.442695, %v4626_v43 }
0x56d1   :  { %6710 = vpow2.f32 %v5349_v44 }
0x56d2   :  { %6712 = vpow2.f32 %v5348_v35 }
0x56db   :  { %v6711_v20 = vpop.eup %6710 }
0x56dc   :  { %v6713_v52 = vpop.eup %6712  ;;  %v4635_v7 = vadd.f32 1.0, %v6711_v20 }
0x56dd   :  { %v4634_v8 = vadd.f32 1.0, %v6713_v52 }
0x56de   :  { %6714 = vrcp.f32 %v4635_v7 }
0x56df   :  { %6716 = vrcp.f32 %v4634_v8 }
0x56e8   :  { %v6715_v53 = vpop.eup %6714 }
0x56e9   :  { %v6717_v60 = vpop.eup %6716  ;;  %v4641_v45 = vmul.f32 %v6715_v53, %v6864_v22 }
0x56ea   :  { %v4640_v47 = vmul.f32 %v6717_v60, %v6864_v22 }
0x56eb   :  { %v4643_v19 = vadd.f32 %v4641_v45, %v6868_v31 }
0x56ec   :  { %v4642_v50 = vadd.f32 %v4640_v47, %v6868_v31 }
0x56ed   :  { %4650 = vrot.lane.b32.xlu1 %v4643_v19, %s6774_s28  ;;  %v4645_v56 = vmul.f32 %v4643_v19, %v4526_v9 }
0x56ee   :  { %4648 = vrot.lane.b32.xlu0 %v4642_v50, %s6774_s28  ;;  %v4644_v34 = vmul.f32 %v4642_v50, %v4525_v25 }
0x575f   :  { %v4651_v51 = vpop.permute.xlu1 %4650 }
0x5760   :  { %v4655_v58 = vmul.f32 %v4651_v51, %v4643_v19  ;;  %v4649_v10 = vpop.permute.xlu0 %4648 }
0x5761   :  { %v4654_v26 = vmul.f32 %v4649_v10, %v4642_v50 }
0x5762   :  { %4660 = vrot.lane.b32.xlu1 %v4655_v58, %s6775_s29 }
0x5763   :  { %4658 = vrot.lane.b32.xlu0 %v4654_v26, %s6775_s29 }
0x57d4   :  { %v4661_v21 = vpop.permute.xlu1 %4660 }
0x57d5   :  { %v4665_v63 = vadd.f32 %v4661_v21, %v4645_v56  ;;  %v4659_v28 = vpop.permute.xlu0 %4658 }
0x57d6   :  { %v4664_v14 = vadd.f32 %v4659_v28, %v4644_v34  ;;  %v2090_v34 = vrot.slane %v7312_v18, %v6876_v40 }
0x57d7   :  { %6718 = vtanh.f32 %v4665_v63 }
0x57d8   :  { %6720 = vtanh.f32 %v4664_v14 }
0x57e1   :  { %v6719_v1 = vpop.eup %6718 }
0x57e2   :  { %v6721_v54 = vpop.eup %6720  ;;  %4672 = vrot.lane.b32.xlu1 %v6719_v1, %s6774_s28 }
0x57e3   :  { %4670 = vrot.lane.b32.xlu0 %v6721_v54, %s6774_s28 }
0x5854   :  { %v4673_v48 = vpop.permute.xlu1 %4672 }
0x5855   :  { %v4677_v49 = vmul.f32 %v4673_v48, %v4643_v19  ;;  %v4671_v32 = vpop.permute.xlu0 %4670 }
0x5856   :  { %v4676_v55 = vmul.f32 %v4671_v32, %v4642_v50 }
0x5857   :  { %4682 = vrot.lane.b32.xlu1 %v4677_v49, %s6775_s29 }
0x5858   :  { %4680 = vrot.lane.b32.xlu0 %v4676_v55, %s6775_s29 }
0x58c9   :  { %v4683_v25 = vpop.permute.xlu1 %4682 }
0x58ca   :  { %v4681_v9 = vpop.permute.xlu0 %4680 }
0x58cb   :  { %6061 = vmatprep.mubr.msk.f32.mxu1 %vm111_vm4, %v4681_v9 }
0x58cc   :  { %6062 = vmatmul.mubr.msk.f32.vlgmr.msra.gmra.mrb[40].mxu1 %vm111_vm4, %v4683_v25 }
0x58cd   :  { %6367 = vmatpush3.bf16.msra.mxu1 %v7589_v23 }
0x58ce   :  { %6369 = vmatprep.subr.bf16.mxu1 %v7599_v33 }
0x58d1   :  { %6371 = vmatpush3.bf16.msra.mxu1 %v7599_v33 }
0x58d2   :  { %6373 = vmatprep.subr.bf16.mxu1 %v7589_v23 }
0x599f   :  { %v6063_v36 = vpop.f32.mrb[40].mxu1 }
0x59a0   :  { %v4764_v38 = vadd.f32 %v6063_v36, %v3692_v30  ;;  %v4754_v2 = vpop.f32.mrb[41].mxu1 }
0x59a1   :  { %v4763_v13 = vadd.f32 %v4754_v2, %v3687_v17 }
0x59a2   :  { %v4766_v37 = vmul.f32 %v4764_v38, %v6864_v22 }
0x59a3   :  { %v4765_v41 = vmul.f32 %v4763_v13, %v6864_v22  ;;  %v3702_v13 = vadd.f32 %v7695_v12, %v7661_v4 }
0x59a4   :  { %v5353_v59 = vmul.f32 -1.442695, %v4766_v37  ;;  %v3697_v37 = vadd.f32 %v7697_v57, %v7661_v4 }
0x59a5   :  { %v5352_v3 = vmul.f32 -1.442695, %v4765_v41 }
0x59a6   :  { %6722 = vpow2.f32 %v5353_v59 }
0x59a7   :  { %6724 = vpow2.f32 %v5352_v3 }
0x59b0   :  { %v6723_v62 = vpop.eup %6722 }
0x59b1   :  { %v6725_v16 = vpop.eup %6724  ;;  %v4774_v42 = vadd.f32 1.0, %v6723_v62 }
0x59b2   :  { %v4773_v6 = vadd.f32 1.0, %v6725_v16 }
0x59b3   :  { %6726 = vrcp.f32 %v4774_v42 }
0x59b4   :  { %6728 = vrcp.f32 %v4773_v6 }
0x59bd   :  { %v6727_v46 = vpop.eup %6726 }
0x59be   :  { %v6729_v61 = vpop.eup %6728  ;;  %v4780_v5 = vmul.f32 %v6727_v46, %v6864_v22 }
0x59bf   :  { %v4779_v43 = vmul.f32 %v6729_v61, %v6864_v22 }
0x59c0   :  { %v4782_v44 = vadd.f32 %v4780_v5, %v6868_v31 }
0x59c1   :  { %v4781_v35 = vadd.f32 %v4779_v43, %v6868_v31 }
0x59c2   :  { %4789 = vrot.lane.b32.xlu1 %v4782_v44, %s6774_s28  ;;  %v4784_v53 = vmul.f32 %v4782_v44, %v4665_v63 }
0x59c3   :  { %4787 = vrot.lane.b32.xlu0 %v4781_v35, %s6774_s28  ;;  %v4783_v45 = vmul.f32 %v4781_v35, %v4664_v14 }
0x5a34   :  { %v4790_v20 = vpop.permute.xlu1 %4789 }
0x5a35   :  { %v4794_v52 = vmul.f32 %v4790_v20, %v4782_v44  ;;  %v4788_v7 = vpop.permute.xlu0 %4787 }
0x5a36   :  { %v4793_v8 = vmul.f32 %v4788_v7, %v4781_v35 }
0x5a37   :  { %4799 = vrot.lane.b32.xlu1 %v4794_v52, %s6775_s29 }
0x5a38   :  { %4797 = vrot.lane.b32.xlu0 %v4793_v8, %s6775_s29 }
0x5aa9   :  { %v4800_v60 = vpop.permute.xlu1 %4799 }
0x5aaa   :  { %v7875_v47 = vadd.f32 %v4800_v60, %v4784_v53  ;;  %v4798_v19 = vpop.permute.xlu0 %4797 }
0x5aab   :  { %v7877_v50 = vadd.f32 %v4798_v19, %v4783_v45 }
0x5aac   :  { %6730 = vtanh.f32 %v7875_v47 }
0x5aad   :  { %6732 = vtanh.f32 %v7877_v50 }
0x5ab6   :  { %v6731_v51 = vpop.eup %6730 }
0x5ab7   :  { %v6733_v58 = vpop.eup %6732  ;;  %4811 = vrot.lane.b32.xlu1 %v6731_v51, %s6774_s28 }
0x5ab8   :  { %4809 = vrot.lane.b32.xlu0 %v6733_v58, %s6774_s28 }
0x5b29   :  { %v4812_v10 = vpop.permute.xlu1 %4811 }
0x5b2a   :  { %v4816_v26 = vmul.f32 %v4812_v10, %v4782_v44  ;;  %v4810_v56 = vpop.permute.xlu0 %4809 }
0x5b2b   :  { %v4815_v21 = vmul.f32 %v4810_v56, %v4781_v35 }
0x5b2c   :  { %4821 = vrot.lane.b32.xlu1 %v4816_v26, %s6775_s29 }
0x5b2d   :  { %4819 = vrot.lane.b32.xlu0 %v4815_v21, %s6775_s29 }
0x5b30   :  { %2096 = vbcast.lane.b32.xlu1 %v2090_v34, 264 }
0x5b31   :  { %2092 = vbcast.lane.b32.xlu0 %v2090_v34, 256 }
0x5b9e   :  { %v4822_v63 = vpop.permute.xlu1 %4821 }
0x5b9f   :  { %v4820_v28 = vpop.permute.xlu0 %4819 }
0x5ba0   :  { %6072 = vmatprep.mubr.msk.f32.mxu1 %vm111_vm4, %v4820_v28 }
0x5ba1   :  { %6073 = vmatmul.mubr.msk.f32.vlgmr.msra.gmra.mrb[42].mxu1 %vm111_vm4, %v4822_v63 }
0x5ba2   :  { %v2097_v14 = vpop.permute.xlu1 %2096  ;;  %6375 = vmatpush3.bf16.msra.mxu1 %v7589_v23 }
0x5ba3   :  { %v2121_v1 = vmul.f32 %v7275_v24, %v2097_v14  ;;  %v2093_v54 = vpop.permute.xlu0 %2092  ;;  %6377 = vmatprep.subr.bf16.mxu1 %v7599_v33 }
0x5ba4   :  { %v2120_v48 = vmul.f32 %v7275_v24, %v2093_v54 }
0x5ba5   :  { %v2145_v40 = vadd.f32 %v7278_v27, %v2121_v1 }
0x5ba6   :  { %v2144_v18 = vadd.f32 %v7278_v27, %v2120_v48  ;;  %6379 = vmatpush3.bf16.msra.mxu1 %v7599_v33 }
0x5ba7   :  { %v3473_v49 = vadd.f32 %v7653_v29, %v2145_v40  ;;  %v5363_v40 = vld [vmem:[%s8014_s3 + $0x30] sm:$0xff] }
0x5ba8   :  { %v3472_v32 = vadd.f32 %v7655_v15, %v2144_v18 }
0x5ba9   :  { %v3475_v55 = vmul.f32 %v3473_v49, %v6864_v22 }
0x5baa   :  { %v3474_v23 = vmul.f32 %v3472_v32, %v6864_v22 }
0x5bab   :  { %v5294_v9 = vmul.f32 -1.442695, %v3475_v55 }
0x5bac   :  { %v5293_v25 = vmul.f32 -1.442695, %v3474_v23 }
0x5bad   :  { %6734 = vpow2.f32 %v5294_v9 }
0x5bae   :  { %6736 = vpow2.f32 %v5293_v25 }
0x5bb7   :  { %v6735_v30 = vpop.eup %6734 }
0x5bb8   :  { %v6737_v24 = vpop.eup %6736  ;;  %v3483_v17 = vadd.f32 1.0, %v6735_v30 }
0x5bb9   :  { %v3482_v36 = vadd.f32 1.0, %v6737_v24 }
0x5bba   :  { %6738 = vrcp.f32 %v3483_v17 }
0x5bbb   :  { %6740 = vrcp.f32 %v3482_v36 }
0x5bc4   :  { %v6739_v27 = vpop.eup %6738 }
0x5bc5   :  { %v6741_v33 = vpop.eup %6740  ;;  %v3489_v29 = vmul.f32 %v6739_v27, %v6864_v22 }
0x5bc6   :  { %v3488_v15 = vmul.f32 %v6741_v33, %v6864_v22 }
0x5bc7   :  { %v7903_v38 = vadd.f32 %v3489_v29, %v6868_v31 }
0x5bc8   :  { %v7906_v2 = vadd.f32 %v3488_v15, %v6868_v31 }
0x5bc9   :  { %3498 = vrot.lane.b32.xlu1 %v7903_v38, %s6774_s28  ;;  %v3493_v26 = vmul.f32 %v7903_v38, %v7569_v39 }
0x5bca   :  { %3496 = vrot.lane.b32.xlu0 %v7906_v2, %s6774_s28  ;;  %v3492_v21 = vmul.f32 %v7906_v2, %v7571_v0  ;;  %v5362_v0 = vld [vmem:[%s8014_s3 + $0x28] sm:$0xff] }
0x5bcb   :  { %v6380_v32 = vpack.c.bf16 %v5363_v40, %v5362_v0 }
0x5bcd   :  { %6381 = vmatprep.subr.bf16.mxu0 %v6380_v32 }
0x5bce   :  { %6383 = vmatpush3.bf16.msra.mxu0 %v6380_v32 }
0x5c3b   :  { %v3499_v7 = vpop.permute.xlu1 %3498 }
0x5c3c   :  { %v3497_v53 = vpop.permute.xlu0 %3496  ;;  %v3503_v60 = vmul.f32 %v3499_v7, %v7903_v38 }
0x5c3d   :  { %v3502_v45 = vmul.f32 %v3497_v53, %v7906_v2 }
0x5c74   :  { %v6074_v41 = vpop.f32.mrb[42].mxu1 }
0x5c75   :  { %v4903_v59 = vadd.f32 %v6074_v41, %v3702_v13  ;;  %v4893_v3 = vpop.f32.mrb[43].mxu1  ;;  %v5366_v41 = vld [vmem:[%s8014_s3 + $0x48] sm:$0xff] }
0x5c76   :  { %v4902_v62 = vadd.f32 %v4893_v3, %v3697_v37 }
0x5c77   :  { %v4905_v16 = vmul.f32 %v4903_v59, %v6864_v22 }
0x5c78   :  { %v4904_v42 = vmul.f32 %v4902_v62, %v6864_v22  ;;  %v7974_v62 = vrot.slane %v5366_v41, %v6832_v11 }
0x5c79   :  { %v5357_v6 = vmul.f32 -1.442695, %v4905_v16 }
0x5c7a   :  { %v5356_v46 = vmul.f32 -1.442695, %v4904_v42 }
0x5c7b   :  { %6742 = vpow2.f32 %v5357_v6 }
0x5c7c   :  { %6744 = vpow2.f32 %v5356_v46 }
0x5c85   :  { %v6743_v61 = vpop.eup %6742 }
0x5c86   :  { %v6745_v5 = vpop.eup %6744  ;;  %v4913_v43 = vadd.f32 1.0, %v6743_v61 }
0x5c87   :  { %v4912_v44 = vadd.f32 1.0, %v6745_v5 }
0x5c88   :  { %6746 = vrcp.f32 %v4913_v43 }
0x5c89   :  { %6748 = vrcp.f32 %v4912_v44 }
0x5c92   :  { %v6747_v12 = vpop.eup %6746 }
0x5c93   :  { %v6749_v57 = vpop.eup %6748  ;;  %v4919_v35 = vmul.f32 %v6747_v12, %v6864_v22 }
0x5c94   :  { %v4918_v20 = vmul.f32 %v6749_v57, %v6864_v22 }
0x5c95   :  { %v4921_v52 = vadd.f32 %v4919_v35, %v6868_v31 }
0x5c96   :  { %v4920_v8 = vadd.f32 %v4918_v20, %v6868_v31 }
0x5c97   :  { %4928 = vrot.lane.b32.xlu1 %v4921_v52, %s6774_s28  ;;  %v4923_v54 = vmul.f32 %v4921_v52, %v7875_v47  ;;  %v5364_v47 = vld [vmem:[%s8014_s3 + $0x38] sm:$0xff] }
0x5c98   :  { %4926 = vrot.lane.b32.xlu0 %v4920_v8, %s6774_s28  ;;  %v4922_v48 = vmul.f32 %v4920_v8, %v7877_v50  ;;  %v5365_v50 = vld [vmem:[%s8014_s3 + $0x40] sm:$0xff] }
0x5c99   :  { %v6384_v23 = vpack.c.bf16 %v5365_v50, %v5364_v47 }
0x5c9b   :  { %3508 = vrot.lane.b32.xlu1 %v3503_v60, %s6775_s29  ;;  %6385 = vmatprep.subr.bf16.mxu0 %v6384_v23 }
0x5c9c   :  { %3506 = vrot.lane.b32.xlu0 %v3502_v45, %s6775_s29  ;;  %6387 = vmatpush3.bf16.msra.mxu0 %v6384_v23 }
0x5d09   :  { %v4929_v19 = vpop.permute.xlu1 %4928 }
0x5d0a   :  { %v4933_v51 = vmul.f32 %v4929_v19, %v4921_v52  ;;  %v4927_v58 = vpop.permute.xlu0 %4926 }
0x5d0b   :  { %v4932_v10 = vmul.f32 %v4927_v58, %v4920_v8 }
0x5d0c   :  { %4938 = vrot.lane.b32.xlu1 %v4933_v51, %s6775_s29 }
0x5d0d   :  { %v3509_v56 = vpop.permute.xlu1 %3508  ;;  %4936 = vrot.lane.b32.xlu0 %v4932_v10, %s6775_s29 }
0x5d0e   :  { %v3513_v34 = vadd.f32 %v3509_v56, %v3493_v26  ;;  %v3507_v63 = vpop.permute.xlu0 %3506 }
0x5d0f   :  { %v3512_v28 = vadd.f32 %v3507_v63, %v3492_v21 }
0x5d10   :  { %6750 = vtanh.f32 %v3513_v34 }
0x5d11   :  { %6752 = vtanh.f32 %v3512_v28 }
0x5d1a   :  { %v6751_v14 = vpop.eup %6750 }
0x5d1b   :  { %v6753_v1 = vpop.eup %6752  ;;  %3520 = vrot.lane.b32.xlu1 %v6751_v14, %s6774_s28 }
0x5d1c   :  { %3518 = vrot.lane.b32.xlu0 %v6753_v1, %s6774_s28 }
0x5d7e   :  { %v4939_v39 = vpop.permute.xlu1 %4938 }
0x5d7f   :  { %v7944_v18 = vadd.f32 %v4939_v39, %v4923_v54  ;;  %v4937_v49 = vpop.permute.xlu0 %4936 }
0x5d80   :  { %v7946_v55 = vadd.f32 %v4937_v49, %v4922_v48 }
0x5d81   :  { %6754 = vtanh.f32 %v7944_v18 }
0x5d82   :  { %6756 = vtanh.f32 %v7946_v55 }
0x5d8b   :  { %v6755_v9 = vpop.eup %6754 }
0x5d8c   :  { %v6757_v25 = vpop.eup %6756  ;;  %4950 = vrot.lane.b32.xlu1 %v6755_v9, %s6774_s28 }
0x5d8d   :  { %v3521_v30 = vpop.permute.xlu1 %3520  ;;  %4948 = vrot.lane.b32.xlu0 %v6757_v25, %s6774_s28 }
0x5d8e   :  { %v3525_v24 = vmul.f32 %v3521_v30, %v7903_v38  ;;  %v3519_v17 = vpop.permute.xlu0 %3518 }
0x5d8f   :  { %v3524_v36 = vmul.f32 %v3519_v17, %v7906_v2 }
0x5d90   :  { %3544 = vrot.lane.b32.xlu1 %v3525_v24, %s6775_s29 }
0x5d91   :  { %3542 = vrot.lane.b32.xlu0 %v3524_v36, %s6775_s29 }
0x5dfe   :  { %v4951_v27 = vpop.permute.xlu1 %4950 }
0x5dff   :  { %v4955_v33 = vmul.f32 %v4951_v27, %v4921_v52  ;;  %v4949_v29 = vpop.permute.xlu0 %4948 }
0x5e00   :  { %v4954_v15 = vmul.f32 %v4949_v29, %v4920_v8 }
0x5e01   :  { %4960 = vrot.lane.b32.xlu1 %v4955_v33, %s6775_s29 }
0x5e02   :  { %4958 = vrot.lane.b32.xlu0 %v4954_v15, %s6775_s29  ;;  %v3545_v37 = vpop.permute.xlu1 %3544 }
0x5e03   :  { %v3543_v13 = vpop.permute.xlu0 %3542 }
0x5e04   :  { %5973 = vmatprep.mubr.msk.f32.mxu0 %vm111_vm4, %v3543_v13 }
0x5e05   :  { %5974 = vmatmul.mubr.msk.f32.gmra.mrb[54].mxu0 %vm111_vm4, %v3545_v37 }
0x5e06   :  { %6094 = vmatprep.mubr.msk.f32.mxu0 %vm111_vm4, %v3543_v13 }
0x5e09   :  { %6095 = vmatmul.mubr.msk.f32.vlgmr.msra.gmra.mrb[56].mxu0 %vm111_vm4, %v3545_v37 }
0x5e73   :  { %v4961_v2 = vpop.permute.xlu1 %4960 }
0x5e74   :  { %v4959_v38 = vpop.permute.xlu0 %4958 }
0x5e75   :  { %6083 = vmatprep.mubr.msk.f32.mxu1 %vm111_vm4, %v4959_v38 }
0x5e76   :  { %6084 = vmatmul.mubr.msk.f32.vlgmr.msra.gmra.mrb[44].mxu1 %vm111_vm4, %v4961_v2 }
0x5ed8   :  { %v5975_v59 = vpop.f32.mrb[54].mxu0 }
0x5ed9   :  { %v3706_v3 = vpop.f32.mrb[55].mxu0  ;;  %v3712_v61 = vadd.f32 %v5975_v59, %v7661_v4 }
0x5eda   :  { %v3707_v5 = vadd.f32 %v3706_v3, %v7661_v4 }
0x5edc   :  { %v6096_v16 = vpop.f32.mrb[56].mxu0 }
0x5edd   :  { %v5187_v42 = vadd.f32 %v6096_v16, %v7974_v62  ;;  %v5181_v6 = vpop.f32.mrb[57].mxu0 }
0x5ede   :  { %v5182_v46 = vadd.f32 %v5181_v6, %v7974_v62 }
0x5edf   :  { %5201 = vst [vmem:[%s8016_s4 + $0x8] sm:$0xff] %v5187_v42 }
0x5ee0   :  { %5200 = vst [vmem:[%s8016_s4] sm:$0xff] %v5182_v46 }
0x5f49   :  { %v6085_v11 = vpop.f32.mrb[44].mxu1 }
0x5f4a   :  { %v5042_v43 = vadd.f32 %v6085_v11, %v3712_v61  ;;  %v5032_v44 = vpop.f32.mrb[45].mxu1 }
0x5f4b   :  { %v5041_v12 = vadd.f32 %v5032_v44, %v3707_v5 }
0x5f4c   :  { %v5044_v57 = vmul.f32 %v5042_v43, %v6864_v22 }
0x5f4d   :  { %v5043_v35 = vmul.f32 %v5041_v12, %v6864_v22 }
0x5f4e   :  { %v5361_v20 = vmul.f32 -1.442695, %v5044_v57 }
0x5f4f   :  { %v5360_v52 = vmul.f32 -1.442695, %v5043_v35 }
0x5f50   :  { %6758 = vpow2.f32 %v5361_v20 }
0x5f51   :  { %6760 = vpow2.f32 %v5360_v52 }
0x5f5a   :  { %v6759_v7 = vpop.eup %6758 }
0x5f5b   :  { %v6761_v8 = vpop.eup %6760  ;;  %v5052_v53 = vadd.f32 1.0, %v6759_v7 }
0x5f5c   :  { %v5051_v60 = vadd.f32 1.0, %v6761_v8 }
0x5f5d   :  { %6762 = vrcp.f32 %v5052_v53 }
0x5f5e   :  { %6764 = vrcp.f32 %v5051_v60 }
0x5f67   :  { %v6763_v45 = vpop.eup %6762 }
0x5f68   :  { %v6765_v4 = vpop.eup %6764  ;;  %v5058_v19 = vmul.f32 %v6763_v45, %v6864_v22 }
0x5f69   :  { %v5057_v51 = vmul.f32 %v6765_v4, %v6864_v22 }
0x5f6a   :  { %v5060_v58 = vadd.f32 %v5058_v19, %v6868_v31 }
0x5f6b   :  { %v5059_v10 = vadd.f32 %v5057_v51, %v6868_v31 }
0x5f6c   :  { %5067 = vrot.lane.b32.xlu1 %v5060_v58, %s6774_s28  ;;  %v5062_v63 = vmul.f32 %v5060_v58, %v7944_v18 }
0x5f6d   :  { %5065 = vrot.lane.b32.xlu0 %v5059_v10, %s6774_s28  ;;  %v5061_v22 = vmul.f32 %v5059_v10, %v7946_v55 }
0x5fde   :  { %v5068_v26 = vpop.permute.xlu1 %5067 }
0x5fdf   :  { %v5072_v56 = vmul.f32 %v5068_v26, %v5060_v58  ;;  %v5066_v21 = vpop.permute.xlu0 %5065 }
0x5fe0   :  { %v5071_v34 = vmul.f32 %v5066_v21, %v5059_v10 }
0x5fe1   :  { %5077 = vrot.lane.b32.xlu1 %v5072_v56, %s6775_s29 }
0x5fe2   :  { %5075 = vrot.lane.b32.xlu0 %v5071_v34, %s6775_s29 }
0x6053   :  { %v5078_v28 = vpop.permute.xlu1 %5077 }
0x6054   :  { %v5082_v14 = vadd.f32 %v5078_v28, %v5062_v63  ;;  %v5076_v1 = vpop.permute.xlu0 %5075 }
0x6055   :  { %v5081_v31 = vadd.f32 %v5076_v1, %v5061_v22 }
0x6056   :  { %6766 = vtanh.f32 %v5082_v14 }
0x6057   :  { %6768 = vtanh.f32 %v5081_v31 }
0x6060   :  { %v6767_v54 = vpop.eup %6766 }
0x6061   :  { %v6769_v39 = vpop.eup %6768  ;;  %5089 = vrot.lane.b32.xlu1 %v6767_v54, %s6774_s28 }
0x6062   :  { %5087 = vrot.lane.b32.xlu0 %v6769_v39, %s6774_s28 }
0x60d3   :  { %v5090_v48 = vpop.permute.xlu1 %5089 }
0x60d4   :  { %v5094_v0 = vmul.f32 %v5090_v48, %v5060_v58  ;;  %v5088_v40 = vpop.permute.xlu0 %5087 }
0x60d5   :  { %v5093_v49 = vmul.f32 %v5088_v40, %v5059_v10 }
0x60d6   :  { %5109 = vrot.lane.b32.xlu1 %v5094_v0, %s6775_s29 }
0x60d7   :  { %5107 = vrot.lane.b32.xlu0 %v5093_v49, %s6775_s29 }
0x6148   :  { %v5110_v32 = vpop.permute.xlu1 %5109 }
0x6149   :  { %v5108_v18 = vpop.permute.xlu0 %5107 }
0x614a   :  { %6097 = vmatprep.mubr.msk.f32.mxu0 %vm111_vm4, %v5108_v18 }
0x614b   :  { %6098 = vmatmul.mubr.msk.f32.gmra.mrb[58].mxu0 %vm111_vm4, %v5110_v32 }
0x621e   :  { %v6099_v55 = vpop.f32.mrb[58].mxu0 }
0x621f   :  { %v5197_v47 = vadd.f32 %v6099_v55, %v7974_v62  ;;  %v5191_v50 = vpop.f32.mrb[59].mxu0 }
0x6220   :  { %v5192_v23 = vadd.f32 %v5191_v50, %v7974_v62 }
0x6221   :  { %5203 = vst [vmem:[%s8016_s4 + $0x18] sm:$0xff] %v5197_v47 }
0x6222   :  { %5202 = vst [vmem:[%s8016_s4 + $0x10] sm:$0xff] %v5192_v23 }

</bundles_post_ra>
